<compile_context>
chip_gen: v5e
topology: v5e:2x2
jax: 0.10.0
libtpu: 0.0.40
codegen_flags: <defaults>
</compile_context>

<pallas_src>
import functools

import jax
import jax.numpy as jnp
from jax.experimental import pallas as pl
from jax.experimental.pallas import tpu as pltpu

_LANE = 128
_GRANULE = 16            # bf16 packs 16 rows per vreg -> minimum row-tile granule
_NEG_INF = -1e30         # padded logit lanes -> exp underflows to exactly 0


def _round_up(x, m):
    return (x + m - 1) // m * m


def _cdiv(a, b):
    return -(-a // b)


def _vmem_capacity_bytes():
    """Generation-aware VMEM capacity with a conservative (v7x-sized) fallback."""
    try:
        cap = int(pltpu.get_tpu_info().vmem_capacity_bytes)
        return max(32 * 1024 * 1024, min(cap, 128 * 1024 * 1024))
    except Exception:
        return 64 * 1024 * 1024


def _fused_heads_kernel(x_ref, w1_ref, b1_ref, w2_pos_ref, w2_sense_ref, w2_le_ref,
                        b2_ref, o_ref, *, head_layout):
    """o = per-head softmax( relu(x @ W1_cat + b1)[:, head] @ W2_head + b2_head )."""
    # Layer 1: one wide MXU push over the concatenated hidden dims of all heads.
    h = jnp.dot(x_ref[...], w1_ref[...], preferred_element_type=jnp.float32)
    h = jnp.maximum(h + b1_ref[...], 0.0)            # bias + ReLU in f32
    h = h.astype(jnp.bfloat16)                       # bf16 inputs for layer-2 MXU

    # Layer 2: per-head dot on the head's real hidden slice (no structural zeros),
    # then bias, numerically-stable softmax, lane-dense 128-aligned store.
    w2_refs = (w2_pos_ref, w2_sense_ref, w2_le_ref)
    for (h_off, h_len, o_off, o_len), w2_ref in zip(head_layout, w2_refs):
        s = jnp.dot(h[:, h_off:h_off + h_len], w2_ref[...],
                    preferred_element_type=jnp.float32)
        s = s + b2_ref[:, o_off:o_off + o_len]        # padded lanes -> -1e30
        m = jnp.max(s, axis=-1, keepdims=True)
        e = jnp.exp(s - m)                            # padded lanes -> exactly 0
        denom = jnp.sum(e, axis=-1, keepdims=True)
        o_ref[:, o_off:o_off + o_len] = e / denom     # exact normalization


def fused_heads(x, w1_cat, b1_cat, w2_blocks, b2_cat, head_layout, *, tile_n=None):
    """Run all classifier heads in one row-tiled Pallas program."""
    n, enc = x.shape
    enc_pad, hid_total = w1_cat.shape
    out_total = b2_cat.shape[1]

    capacity = _vmem_capacity_bytes()
    vmem_limit = int(0.9 * capacity)

    # Resident weight bytes, counted double-buffered so the non-Buffered(1)
    # fallback path still fits the same budget.
    w2_bytes = sum(int(w.size) * 2 for w in w2_blocks)
    w_bytes = 2 * (enc_pad * hid_total * 2 + hid_total * 4 + w2_bytes + out_total * 4)

    if tile_n is None:
        per_row = (2 * enc_pad * 2            # x tile (bf16, double-buffered)
                   + 2 * out_total * 4        # out tile (f32, double-buffered)
                   + hid_total * (4 + 2)      # h intermediate (f32 + bf16 copy)
                   + 2 * out_total * 4)       # s / exp intermediates (slack)
        budget = int(0.75 * capacity)
        avail = budget - w_bytes
        # TODO(synk): for very large lemma vocabularies, stream W2_le over an
        # output-column grid axis with a two-pass softmax instead of shrinking tile_n.
        tile_n = (avail // per_row) if avail > per_row * _GRANULE else _GRANULE
        tile_n = min(max(int(tile_n), _GRANULE), 2048)
        if tile_n >= 256:
            tile_n = tile_n // 256 * 256      # MXU-friendly M cadence
    tile_n = _round_up(max(int(tile_n), _GRANULE), _GRANULE)

    n_granule = _round_up(n, _GRANULE)
    tile_n = min(tile_n, n_granule)
    # Guarantee >= 2 grid steps whenever more than one row granule exists so the
    # "parallel" row axis can be sharded across v7x's two TensorCores.
    if n_granule > _GRANULE and tile_n >= n_granule:
        tile_n = _round_up(_cdiv(n_granule, 2), _GRANULE)
    n_pad = _round_up(n, tile_n)

    x_bf = x.astype(jnp.bfloat16)
    x_bf = jnp.pad(x_bf, ((0, n_pad - n), (0, enc_pad - enc)))   # K padded to 128-mult

    def _run(weight_pipeline_mode):
        def const_spec(shape):
            kwargs = {}
            if weight_pipeline_mode is not None:
                kwargs["pipeline_mode"] = weight_pipeline_mode
            return pl.BlockSpec(shape, lambda i: (0, 0), **kwargs)

        kernel = pl.pallas_call(
            functools.partial(_fused_heads_kernel, head_layout=head_layout),
            out_shape=jax.ShapeDtypeStruct((n_pad, out_total), jnp.float32),
            grid_spec=pltpu.PrefetchScalarGridSpec(
                num_scalar_prefetch=0,
                grid=(n_pad // tile_n,),
                in_specs=[
                    pl.BlockSpec((tile_n, enc_pad), lambda i: (i, 0)),   # x: row-tiled
                    const_spec((enc_pad, hid_total)),                    # W1: resident
                    const_spec((1, hid_total)),                          # b1: resident
                    const_spec(w2_blocks[0].shape),                      # W2_pos
                    const_spec(w2_blocks[1].shape),                      # W2_sense
                    const_spec(w2_blocks[2].shape),                      # W2_le
                    const_spec((1, out_total)),                          # b2 (+pad -inf)
                ],
                out_specs=pl.BlockSpec((tile_n, out_total), lambda i: (i, 0)),
            ),
            compiler_params=pltpu.CompilerParams(
                dimension_semantics=("parallel",),     # shard rows across TCs (v7x)
                vmem_limit_bytes=vmem_limit,
            ),
        )
        return kernel(x_bf, w1_cat, b1_cat, *w2_blocks, b2_cat)

    try:
        out = _run(pl.Buffered(1))   # single-buffer constant-index weights
    except Exception:
        out = _run(None)             # fallback: default double buffering
    return out[:n]


def init_head(key, in_dim, hidden, out_dim, out_bias=True, dtype=jnp.float32):
    """Deterministic synthetic init matching nn.Linear shapes (W stored as (in, out))."""
    k1, k2, k3, k4 = jax.random.split(key, 4)
    scale1 = 1.0 / jnp.sqrt(in_dim)
    scale2 = 1.0 / jnp.sqrt(hidden)
    w1 = jax.random.uniform(k1, (in_dim, hidden), dtype, -scale1, scale1)
    b1 = jax.random.uniform(k2, (1, hidden), dtype, -scale1, scale1)
    w2 = jax.random.uniform(k3, (hidden, out_dim), dtype, -scale2, scale2)
    if out_bias:
        b2 = jax.random.uniform(k4, (1, out_dim), dtype, -scale2, scale2)
    else:
        b2 = jnp.zeros((1, out_dim), dtype)   # bias=False -> zero bias
    return w1, b1, w2, b2


class PSDConceptClassifierPallas:
    """JAX/Pallas re-implementation of PSD_Concept_Classifier.forward (inference)."""

    HIDDEN = (256, 256, 1024)   # pos, sense, le hidden widths (matches PyTorch module)

    def __init__(self, concept_src_enc_size, n_target_pos, n_sense, n_high,
                 target_pos_bias=True, sense_bias=True, lemma_bias=True,
                 key=jax.random.PRNGKey(0), tile_n=None):
        self.enc = concept_src_enc_size
        self.enc_pad = _round_up(concept_src_enc_size, _LANE)   # MXU K granule
        self.out_dims = (n_target_pos, n_sense, n_high + 1)
        self.tile_n = tile_n
        k_pos, k_sense, k_le = jax.random.split(key, 3)
        self.head_params = (
            init_head(k_pos, concept_src_enc_size, self.HIDDEN[0], n_target_pos, target_pos_bias),
            init_head(k_sense, concept_src_enc_size, self.HIDDEN[1], n_sense, sense_bias),
            init_head(k_le, concept_src_enc_size, self.HIDDEN[2], n_high + 1, lemma_bias),
        )
        self._build_fused()

    def _build_fused(self):
        hid = self.HIDDEN
        out_pads = tuple(_round_up(d, _LANE) for d in self.out_dims)
        out_total = sum(out_pads)

        # Layer 1: one wide matmul  x @ [W1_pos | W1_sense | W1_le], K zero-padded to 128.
        w1_cat = jnp.concatenate([p[0] for p in self.head_params], axis=1)
        w1_cat = jnp.pad(w1_cat, ((0, self.enc_pad - self.enc), (0, 0)))
        b1_cat = jnp.concatenate([p[1] for p in self.head_params], axis=1)

        # Layer 2: one real (no zero-K) block per head; output lanes padded to 128,
        # padded lanes biased to -1e30 so they softmax to exactly 0.
        w2_blocks = []
        b2_cat = jnp.full((1, out_total), _NEG_INF, jnp.float32)
        head_layout = []
        h_off = 0
        o_off = 0
        for (w1, b1, w2, b2), h, d, p in zip(self.head_params, hid, self.out_dims, out_pads):
            w2_blocks.append(jnp.pad(w2, ((0, 0), (0, p - d))).astype(jnp.bfloat16))
            b2_cat = b2_cat.at[:, o_off:o_off + d].set(b2)
            head_layout.append((h_off, h, o_off, p))
            h_off += h
            o_off += p

        self.w1_cat = w1_cat.astype(jnp.bfloat16)   # bf16 matmul inputs
        self.b1_cat = b1_cat                        # biases stay f32
        self.w2_blocks = tuple(w2_blocks)
        self.b2_cat = b2_cat
        self.head_layout = tuple(head_layout)

    def __call__(self, src_enc_data, batch_sizes):
        # src_enc_data: (N, concept_src_enc_size) packed-sequence data tensor.
        # Dropout is a no-op at inference time.
        slab = fused_heads(src_enc_data, self.w1_cat, self.b1_cat,
                           self.w2_blocks, self.b2_cat, self.head_layout,
                           tile_n=self.tile_n)
        probs = []
        for (_, _, o_off, _), d in zip(self.head_layout, self.out_dims):
            probs.append(slab[:, o_off:o_off + d])
        pos_prob, sense_prob, le_prob = probs
        # PyTorch return order: (target_pos, le, sense) PackedSequences,
        # represented here as (data, batch_sizes) tuples.
        return ((pos_prob, batch_sizes),
                (le_prob, batch_sizes),
                (sense_prob, batch_sizes))


def _ref_head(x, w1, b1, w2, b2):
    """Pure-JAX reference with the same bf16 matmul / f32 accumulate recipe."""
    xb = x.astype(jnp.bfloat16)
    h = jnp.dot(xb, w1.astype(jnp.bfloat16), preferred_element_type=jnp.float32) + b1
    h = jnp.maximum(h, 0.0).astype(jnp.bfloat16)
    s = jnp.dot(h, w2.astype(jnp.bfloat16), preferred_element_type=jnp.float32) + b2
    return jax.nn.softmax(s, axis=-1)


if __name__ == "__main__":
    key = jax.random.PRNGKey(0)
    k_in, k_params = jax.random.split(key)

    # Small synthetic PackedSequence: batch_sizes [6,6,5,4,3,2,1,1] -> N = 28 packed rows.
    batch_sizes = jnp.array([6, 6, 5, 4, 3, 2, 1, 1], dtype=jnp.int32)
    N = int(batch_sizes.sum())
    concept_src_enc_size = 32
    n_target_pos = 8
    n_sense = 8
    n_high = 16  # le head outputs n_high + 1 = 17 classes

    src_enc_data = jax.random.normal(k_in, (N, concept_src_enc_size), jnp.float32)

    # tile_n=16 (bf16 granule) exercises a 2-step row grid on this tiny test problem.
    model = PSDConceptClassifierPallas(
        concept_src_enc_size, n_target_pos, n_sense, n_high,
        target_pos_bias=True, sense_bias=True, lemma_bias=True,
        key=k_params, tile_n=16)

    (pos_ps, le_ps, sense_ps) = model(src_enc_data, batch_sizes)
    pos_prob, _ = pos_ps
    le_prob, _ = le_ps
    sense_prob, _ = sense_ps

    jax.block_until_ready((pos_prob, le_prob, sense_prob))

    # sanity: shapes and softmax rows summing to ~1 (exact division -> tight tolerance)
    assert pos_prob.shape == (N, n_target_pos)
    assert sense_prob.shape == (N, n_sense)
    assert le_prob.shape == (N, n_high + 1)
    assert jnp.allclose(pos_prob.sum(-1), 1.0, atol=1e-4)
    assert jnp.allclose(sense_prob.sum(-1), 1.0, atol=1e-4)
    assert jnp.allclose(le_prob.sum(-1), 1.0, atol=1e-4)

    # correctness vs pure-JAX reference (same bf16 weights / f32 accumulation)
    ref_pos = _ref_head(src_enc_data, *model.head_params[0])
    ref_sense = _ref_head(src_enc_data, *model.head_params[1])
    ref_le = _ref_head(src_enc_data, *model.head_params[2])
    assert jnp.allclose(pos_prob, ref_pos, atol=5e-3)
    assert jnp.allclose(sense_prob, ref_sense, atol=5e-3)
    assert jnp.allclose(le_prob, ref_le, atol=5e-3)

    print("KERNEL_OK")
</pallas_src>

<mosaic_0001>
module attributes {stable_mosaic.version = 11 : i64} {
  func.func @_fused_heads_kernel(%arg0: i32, %arg1: memref<16x128xbf16, #tpu.memory_space<vmem>>, %arg2: memref<128x1536xbf16, #tpu.memory_space<vmem>>, %arg3: memref<1x1536xf32, #tpu.memory_space<vmem>>, %arg4: memref<256x128xbf16, #tpu.memory_space<vmem>>, %arg5: memref<256x128xbf16, #tpu.memory_space<vmem>>, %arg6: memref<1024x128xbf16, #tpu.memory_space<vmem>>, %arg7: memref<1x384xf32, #tpu.memory_space<vmem>>, %arg8: memref<16x384xf32, #tpu.memory_space<vmem>>) attributes {dimension_semantics = [#tpu.dimension_semantics<parallel>], iteration_bounds = array<i64: 2>, scalar_prefetch = 0 : i64, scratch_operands = 0 : i64, tpu.core_type = #tpu.core_type<tc>, window_params = [{transform_indices = @transform_0, window_bounds = array<i64: 16, 128>}, {pipeline_mode = #tpu.pipeline_mode<synchronous>, transform_indices = @transform_1, window_bounds = array<i64: 128, 1536>}, {pipeline_mode = #tpu.pipeline_mode<synchronous>, transform_indices = @transform_2, window_bounds = array<i64: 1, 1536>}, {pipeline_mode = #tpu.pipeline_mode<synchronous>, transform_indices = @transform_3, window_bounds = array<i64: 256, 128>}, {pipeline_mode = #tpu.pipeline_mode<synchronous>, transform_indices = @transform_4, window_bounds = array<i64: 256, 128>}, {pipeline_mode = #tpu.pipeline_mode<synchronous>, transform_indices = @transform_5, window_bounds = array<i64: 1024, 128>}, {pipeline_mode = #tpu.pipeline_mode<synchronous>, transform_indices = @transform_6, window_bounds = array<i64: 1, 384>}, {transform_indices = @transform_7, window_bounds = array<i64: 16, 384>}]} {
    %c0 = arith.constant 0 : index
    %c0_0 = arith.constant 0 : index
    %0 = vector.load %arg1[%c0, %c0_0] : memref<16x128xbf16, #tpu.memory_space<vmem>>, vector<16x128xbf16>
    %c0_1 = arith.constant 0 : index
    %c0_2 = arith.constant 0 : index
    %1 = vector.load %arg2[%c0_1, %c0_2] : memref<128x1536xbf16, #tpu.memory_space<vmem>>, vector<128x1536xbf16>
    %cst = arith.constant dense<0.000000e+00> : vector<16x1536xf32>
    %2 = tpu.matmul %0, %1, %cst {dimension_numbers = #tpu.dot_dimension_numbers<[1], [0], [0], [1], [0, 0, 1, 1], [], []>} : vector<16x128xbf16>, vector<128x1536xbf16>, vector<16x1536xf32> -> vector<16x1536xf32>
    %c0_3 = arith.constant 0 : index
    %c0_4 = arith.constant 0 : index
    %3 = vector.load %arg3[%c0_3, %c0_4] : memref<1x1536xf32, #tpu.memory_space<vmem>>, vector<1x1536xf32>
    %4 = vector.broadcast %3 : vector<1x1536xf32> to vector<16x1536xf32>
    %5 = arith.addf %2, %4 : vector<16x1536xf32>
    %cst_5 = arith.constant 0.000000e+00 : f32
    %6 = vector.broadcast %cst_5 : f32 to vector<16x1536xf32>
    %7 = arith.maximumf %5, %6 : vector<16x1536xf32>
    %8 = arith.truncf %7 : vector<16x1536xf32> to vector<16x1536xbf16>
    %9 = vector.extract_strided_slice %8 {offsets = [0, 0], sizes = [16, 256], strides = [1, 1]} : vector<16x1536xbf16> to vector<16x256xbf16>
    %c0_6 = arith.constant 0 : index
    %c0_7 = arith.constant 0 : index
    %10 = vector.load %arg4[%c0_6, %c0_7] : memref<256x128xbf16, #tpu.memory_space<vmem>>, vector<256x128xbf16>
    %cst_8 = arith.constant dense<0.000000e+00> : vector<16x128xf32>
    %11 = tpu.matmul %9, %10, %cst_8 {dimension_numbers = #tpu.dot_dimension_numbers<[1], [0], [0], [1], [0, 0, 1, 1], [], []>} : vector<16x256xbf16>, vector<256x128xbf16>, vector<16x128xf32> -> vector<16x128xf32>
    %c0_9 = arith.constant 0 : index
    %c0_10 = arith.constant 0 : index
    %12 = vector.load %arg7[%c0_9, %c0_10] : memref<1x384xf32, #tpu.memory_space<vmem>>, vector<1x128xf32>
    %13 = vector.broadcast %12 : vector<1x128xf32> to vector<16x128xf32>
    %14 = arith.addf %11, %13 : vector<16x128xf32>
    %cst_11 = arith.constant dense<0xFF800000> : vector<16xf32>
    %15 = vector.multi_reduction <maximumf>, %14, %cst_11 [1] : vector<16x128xf32> to vector<16xf32>
    %16 = vector.shape_cast %15 : vector<16xf32> to vector<16x1xf32>
    %17 = vector.broadcast %16 : vector<16x1xf32> to vector<16x128xf32>
    %18 = arith.subf %14, %17 : vector<16x128xf32>
    %19 = math.exp %18 : vector<16x128xf32>
    %cst_12 = arith.constant dense<0.000000e+00> : vector<16xf32>
    %20 = vector.multi_reduction <add>, %19, %cst_12 [1] : vector<16x128xf32> to vector<16xf32>
    %21 = vector.shape_cast %20 : vector<16xf32> to vector<16x1xf32>
    %22 = vector.broadcast %21 : vector<16x1xf32> to vector<16x128xf32>
    %23 = arith.divf %19, %22 : vector<16x128xf32>
    %c0_13 = arith.constant 0 : index
    %c0_14 = arith.constant 0 : index
    %24 = vector.load %arg8[%c0_13, %c0_14] : memref<16x384xf32, #tpu.memory_space<vmem>>, vector<16x128xf32>
    tpu.vector_store %arg8[%c0_13, %c0_14], %23 {strides = array<i32>} : memref<16x384xf32, #tpu.memory_space<vmem>>, vector<16x128xf32>,
    %25 = vector.extract_strided_slice %8 {offsets = [0, 256], sizes = [16, 256], strides = [1, 1]} : vector<16x1536xbf16> to vector<16x256xbf16>
    %c0_15 = arith.constant 0 : index
    %c0_16 = arith.constant 0 : index
    %26 = vector.load %arg5[%c0_15, %c0_16] : memref<256x128xbf16, #tpu.memory_space<vmem>>, vector<256x128xbf16>
    %cst_17 = arith.constant dense<0.000000e+00> : vector<16x128xf32>
    %27 = tpu.matmul %25, %26, %cst_17 {dimension_numbers = #tpu.dot_dimension_numbers<[1], [0], [0], [1], [0, 0, 1, 1], [], []>} : vector<16x256xbf16>, vector<256x128xbf16>, vector<16x128xf32> -> vector<16x128xf32>
    %c0_18 = arith.constant 0 : index
    %c128 = arith.constant 128 : index
    %28 = vector.load %arg7[%c0_18, %c128] : memref<1x384xf32, #tpu.memory_space<vmem>>, vector<1x128xf32>
    %29 = vector.broadcast %28 : vector<1x128xf32> to vector<16x128xf32>
    %30 = arith.addf %27, %29 : vector<16x128xf32>
    %cst_19 = arith.constant dense<0xFF800000> : vector<16xf32>
    %31 = vector.multi_reduction <maximumf>, %30, %cst_19 [1] : vector<16x128xf32> to vector<16xf32>
    %32 = vector.shape_cast %31 : vector<16xf32> to vector<16x1xf32>
    %33 = vector.broadcast %32 : vector<16x1xf32> to vector<16x128xf32>
    %34 = arith.subf %30, %33 : vector<16x128xf32>
    %35 = math.exp %34 : vector<16x128xf32>
    %cst_20 = arith.constant dense<0.000000e+00> : vector<16xf32>
    %36 = vector.multi_reduction <add>, %35, %cst_20 [1] : vector<16x128xf32> to vector<16xf32>
    %37 = vector.shape_cast %36 : vector<16xf32> to vector<16x1xf32>
    %38 = vector.broadcast %37 : vector<16x1xf32> to vector<16x128xf32>
    %39 = arith.divf %35, %38 : vector<16x128xf32>
    %c0_21 = arith.constant 0 : index
    %c128_22 = arith.constant 128 : index
    %40 = vector.load %arg8[%c0_21, %c128_22] : memref<16x384xf32, #tpu.memory_space<vmem>>, vector<16x128xf32>
    tpu.vector_store %arg8[%c0_21, %c128_22], %39 {strides = array<i32>} : memref<16x384xf32, #tpu.memory_space<vmem>>, vector<16x128xf32>,
    %41 = vector.extract_strided_slice %8 {offsets = [0, 512], sizes = [16, 1024], strides = [1, 1]} : vector<16x1536xbf16> to vector<16x1024xbf16>
    %c0_23 = arith.constant 0 : index
    %c0_24 = arith.constant 0 : index
    %42 = vector.load %arg6[%c0_23, %c0_24] : memref<1024x128xbf16, #tpu.memory_space<vmem>>, vector<1024x128xbf16>
    %cst_25 = arith.constant dense<0.000000e+00> : vector<16x128xf32>
    %43 = tpu.matmul %41, %42, %cst_25 {dimension_numbers = #tpu.dot_dimension_numbers<[1], [0], [0], [1], [0, 0, 1, 1], [], []>} : vector<16x1024xbf16>, vector<1024x128xbf16>, vector<16x128xf32> -> vector<16x128xf32>
    %c0_26 = arith.constant 0 : index
    %c256 = arith.constant 256 : index
    %44 = vector.load %arg7[%c0_26, %c256] : memref<1x384xf32, #tpu.memory_space<vmem>>, vector<1x128xf32>
    %45 = vector.broadcast %44 : vector<1x128xf32> to vector<16x128xf32>
    %46 = arith.addf %43, %45 : vector<16x128xf32>
    %cst_27 = arith.constant dense<0xFF800000> : vector<16xf32>
    %47 = vector.multi_reduction <maximumf>, %46, %cst_27 [1] : vector<16x128xf32> to vector<16xf32>
    %48 = vector.shape_cast %47 : vector<16xf32> to vector<16x1xf32>
    %49 = vector.broadcast %48 : vector<16x1xf32> to vector<16x128xf32>
    %50 = arith.subf %46, %49 : vector<16x128xf32>
    %51 = math.exp %50 : vector<16x128xf32>
    %cst_28 = arith.constant dense<0.000000e+00> : vector<16xf32>
    %52 = vector.multi_reduction <add>, %51, %cst_28 [1] : vector<16x128xf32> to vector<16xf32>
    %53 = vector.shape_cast %52 : vector<16xf32> to vector<16x1xf32>
    %54 = vector.broadcast %53 : vector<16x1xf32> to vector<16x128xf32>
    %55 = arith.divf %51, %54 : vector<16x128xf32>
    %c0_29 = arith.constant 0 : index
    %c256_30 = arith.constant 256 : index
    %56 = vector.load %arg8[%c0_29, %c256_30] : memref<16x384xf32, #tpu.memory_space<vmem>>, vector<16x128xf32>
    tpu.vector_store %arg8[%c0_29, %c256_30], %55 {strides = array<i32>} : memref<16x384xf32, #tpu.memory_space<vmem>>, vector<16x128xf32>,
    return
  }
  func.func @transform_0(%arg0: i32) -> (i32, i32) {
    %c0_i32 = arith.constant 0 : i32
    %c0_i32_0 = arith.constant 0 : i32
    return %arg0, %c0_i32 : i32, i32
  }
  func.func @transform_1(%arg0: i32) -> (i32, i32) {
    %c0_i32 = arith.constant 0 : i32
    %c0_i32_0 = arith.constant 0 : i32
    %c0_i32_1 = arith.constant 0 : i32
    return %c0_i32, %c0_i32_0 : i32, i32
  }
  func.func @transform_2(%arg0: i32) -> (i32, i32) {
    %c0_i32 = arith.constant 0 : i32
    %c0_i32_0 = arith.constant 0 : i32
    %c0_i32_1 = arith.constant 0 : i32
    return %c0_i32, %c0_i32_0 : i32, i32
  }
  func.func @transform_3(%arg0: i32) -> (i32, i32) {
    %c0_i32 = arith.constant 0 : i32
    %c0_i32_0 = arith.constant 0 : i32
    %c0_i32_1 = arith.constant 0 : i32
    return %c0_i32, %c0_i32_0 : i32, i32
  }
  func.func @transform_4(%arg0: i32) -> (i32, i32) {
    %c0_i32 = arith.constant 0 : i32
    %c0_i32_0 = arith.constant 0 : i32
    %c0_i32_1 = arith.constant 0 : i32
    return %c0_i32, %c0_i32_0 : i32, i32
  }
  func.func @transform_5(%arg0: i32) -> (i32, i32) {
    %c0_i32 = arith.constant 0 : i32
    %c0_i32_0 = arith.constant 0 : i32
    %c0_i32_1 = arith.constant 0 : i32
    return %c0_i32, %c0_i32_0 : i32, i32
  }
  func.func @transform_6(%arg0: i32) -> (i32, i32) {
    %c0_i32 = arith.constant 0 : i32
    %c0_i32_0 = arith.constant 0 : i32
    %c0_i32_1 = arith.constant 0 : i32
    return %c0_i32, %c0_i32_0 : i32, i32
  }
  func.func @transform_7(%arg0: i32) -> (i32, i32) {
    %c0_i32 = arith.constant 0 : i32
    %c0_i32_0 = arith.constant 0 : i32
    return %arg0, %c0_i32 : i32, i32
  }
}

module attributes {stable_mosaic.version = 11 : i64} {
  func.func @_fused_heads_kernel(%arg0: i32, %arg1: memref<16x128xbf16, #tpu.memory_space<vmem>>, %arg2: memref<128x1536xbf16, #tpu.memory_space<vmem>>, %arg3: memref<1x1536xf32, #tpu.memory_space<vmem>>, %arg4: memref<256x128xbf16, #tpu.memory_space<vmem>>, %arg5: memref<256x128xbf16, #tpu.memory_space<vmem>>, %arg6: memref<1024x128xbf16, #tpu.memory_space<vmem>>, %arg7: memref<1x384xf32, #tpu.memory_space<vmem>>, %arg8: memref<16x384xf32, #tpu.memory_space<vmem>>) attributes {dimension_semantics = [#tpu.dimension_semantics<parallel>], iteration_bounds = array<i64: 2>, scalar_prefetch = 0 : i64, scratch_operands = 0 : i64, tpu.core_type = #tpu.core_type<tc>, window_params = [{transform_indices = @transform_0, window_bounds = array<i64: 16, 128>}, {pipeline_mode = #tpu.pipeline_mode<synchronous>, transform_indices = @transform_1, window_bounds = array<i64: 128, 1536>}, {pipeline_mode = #tpu.pipeline_mode<synchronous>, transform_indices = @transform_2, window_bounds = array<i64: 1, 1536>}, {pipeline_mode = #tpu.pipeline_mode<synchronous>, transform_indices = @transform_3, window_bounds = array<i64: 256, 128>}, {pipeline_mode = #tpu.pipeline_mode<synchronous>, transform_indices = @transform_4, window_bounds = array<i64: 256, 128>}, {pipeline_mode = #tpu.pipeline_mode<synchronous>, transform_indices = @transform_5, window_bounds = array<i64: 1024, 128>}, {pipeline_mode = #tpu.pipeline_mode<synchronous>, transform_indices = @transform_6, window_bounds = array<i64: 1, 384>}, {transform_indices = @transform_7, window_bounds = array<i64: 16, 384>}]} {
    %c0 = arith.constant 0 : index
    %c0_0 = arith.constant 0 : index
    %0 = vector.load %arg1[%c0, %c0_0] : memref<16x128xbf16, #tpu.memory_space<vmem>>, vector<16x128xbf16>
    %c0_1 = arith.constant 0 : index
    %c0_2 = arith.constant 0 : index
    %1 = vector.load %arg2[%c0_1, %c0_2] : memref<128x1536xbf16, #tpu.memory_space<vmem>>, vector<128x1536xbf16>
    %cst = arith.constant dense<0.000000e+00> : vector<16x1536xf32>
    %2 = tpu.matmul %0, %1, %cst {dimension_numbers = #tpu.dot_dimension_numbers<[1], [0], [0], [1], [0, 0, 1, 1], [], []>} : vector<16x128xbf16>, vector<128x1536xbf16>, vector<16x1536xf32> -> vector<16x1536xf32>
    %c0_3 = arith.constant 0 : index
    %c0_4 = arith.constant 0 : index
    %3 = vector.load %arg3[%c0_3, %c0_4] : memref<1x1536xf32, #tpu.memory_space<vmem>>, vector<1x1536xf32>
    %4 = vector.broadcast %3 : vector<1x1536xf32> to vector<16x1536xf32>
    %5 = arith.addf %2, %4 : vector<16x1536xf32>
    %cst_5 = arith.constant 0.000000e+00 : f32
    %6 = vector.broadcast %cst_5 : f32 to vector<16x1536xf32>
    %7 = arith.maximumf %5, %6 : vector<16x1536xf32>
    %8 = arith.truncf %7 : vector<16x1536xf32> to vector<16x1536xbf16>
    %9 = vector.extract_strided_slice %8 {offsets = [0, 0], sizes = [16, 256], strides = [1, 1]} : vector<16x1536xbf16> to vector<16x256xbf16>
    %c0_6 = arith.constant 0 : index
    %c0_7 = arith.constant 0 : index
    %10 = vector.load %arg4[%c0_6, %c0_7] : memref<256x128xbf16, #tpu.memory_space<vmem>>, vector<256x128xbf16>
    %cst_8 = arith.constant dense<0.000000e+00> : vector<16x128xf32>
    %11 = tpu.matmul %9, %10, %cst_8 {dimension_numbers = #tpu.dot_dimension_numbers<[1], [0], [0], [1], [0, 0, 1, 1], [], []>} : vector<16x256xbf16>, vector<256x128xbf16>, vector<16x128xf32> -> vector<16x128xf32>
    %c0_9 = arith.constant 0 : index
    %c0_10 = arith.constant 0 : index
    %12 = vector.load %arg7[%c0_9, %c0_10] : memref<1x384xf32, #tpu.memory_space<vmem>>, vector<1x128xf32>
    %13 = vector.broadcast %12 : vector<1x128xf32> to vector<16x128xf32>
    %14 = arith.addf %11, %13 : vector<16x128xf32>
    %cst_11 = arith.constant dense<0xFF800000> : vector<16xf32>
    %15 = vector.multi_reduction <maximumf>, %14, %cst_11 [1] : vector<16x128xf32> to vector<16xf32>
    %16 = vector.shape_cast %15 : vector<16xf32> to vector<16x1xf32>
    %17 = vector.broadcast %16 : vector<16x1xf32> to vector<16x128xf32>
    %18 = arith.subf %14, %17 : vector<16x128xf32>
    %19 = math.exp %18 : vector<16x128xf32>
    %cst_12 = arith.constant dense<0.000000e+00> : vector<16xf32>
    %20 = vector.multi_reduction <add>, %19, %cst_12 [1] : vector<16x128xf32> to vector<16xf32>
    %21 = vector.shape_cast %20 : vector<16xf32> to vector<16x1xf32>
    %22 = vector.broadcast %21 : vector<16x1xf32> to vector<16x128xf32>
    %23 = arith.divf %19, %22 : vector<16x128xf32>
    %c0_13 = arith.constant 0 : index
    %c0_14 = arith.constant 0 : index
    %24 = vector.load %arg8[%c0_13, %c0_14] : memref<16x384xf32, #tpu.memory_space<vmem>>, vector<16x128xf32>
    tpu.vector_store %arg8[%c0_13, %c0_14], %23 {strides = array<i32>} : memref<16x384xf32, #tpu.memory_space<vmem>>, vector<16x128xf32>,
    %25 = vector.extract_strided_slice %8 {offsets = [0, 256], sizes = [16, 256], strides = [1, 1]} : vector<16x1536xbf16> to vector<16x256xbf16>
    %c0_15 = arith.constant 0 : index
    %c0_16 = arith.constant 0 : index
    %26 = vector.load %arg5[%c0_15, %c0_16] : memref<256x128xbf16, #tpu.memory_space<vmem>>, vector<256x128xbf16>
    %cst_17 = arith.constant dense<0.000000e+00> : vector<16x128xf32>
    %27 = tpu.matmul %25, %26, %cst_17 {dimension_numbers = #tpu.dot_dimension_numbers<[1], [0], [0], [1], [0, 0, 1, 1], [], []>} : vector<16x256xbf16>, vector<256x128xbf16>, vector<16x128xf32> -> vector<16x128xf32>
    %c0_18 = arith.constant 0 : index
    %c128 = arith.constant 128 : index
    %28 = vector.load %arg7[%c0_18, %c128] : memref<1x384xf32, #tpu.memory_space<vmem>>, vector<1x128xf32>
    %29 = vector.broadcast %28 : vector<1x128xf32> to vector<16x128xf32>
    %30 = arith.addf %27, %29 : vector<16x128xf32>
    %cst_19 = arith.constant dense<0xFF800000> : vector<16xf32>
    %31 = vector.multi_reduction <maximumf>, %30, %cst_19 [1] : vector<16x128xf32> to vector<16xf32>
    %32 = vector.shape_cast %31 : vector<16xf32> to vector<16x1xf32>
    %33 = vector.broadcast %32 : vector<16x1xf32> to vector<16x128xf32>
    %34 = arith.subf %30, %33 : vector<16x128xf32>
    %35 = math.exp %34 : vector<16x128xf32>
    %cst_20 = arith.constant dense<0.000000e+00> : vector<16xf32>
    %36 = vector.multi_reduction <add>, %35, %cst_20 [1] : vector<16x128xf32> to vector<16xf32>
    %37 = vector.shape_cast %36 : vector<16xf32> to vector<16x1xf32>
    %38 = vector.broadcast %37 : vector<16x1xf32> to vector<16x128xf32>
    %39 = arith.divf %35, %38 : vector<16x128xf32>
    %c0_21 = arith.constant 0 : index
    %c128_22 = arith.constant 128 : index
    %40 = vector.load %arg8[%c0_21, %c128_22] : memref<16x384xf32, #tpu.memory_space<vmem>>, vector<16x128xf32>
    tpu.vector_store %arg8[%c0_21, %c128_22], %39 {strides = array<i32>} : memref<16x384xf32, #tpu.memory_space<vmem>>, vector<16x128xf32>,
    %41 = vector.extract_strided_slice %8 {offsets = [0, 512], sizes = [16, 1024], strides = [1, 1]} : vector<16x1536xbf16> to vector<16x1024xbf16>
    %c0_23 = arith.constant 0 : index
    %c0_24 = arith.constant 0 : index
    %42 = vector.load %arg6[%c0_23, %c0_24] : memref<1024x128xbf16, #tpu.memory_space<vmem>>, vector<1024x128xbf16>
    %cst_25 = arith.constant dense<0.000000e+00> : vector<16x128xf32>
    %43 = tpu.matmul %41, %42, %cst_25 {dimension_numbers = #tpu.dot_dimension_numbers<[1], [0], [0], [1], [0, 0, 1, 1], [], []>} : vector<16x1024xbf16>, vector<1024x128xbf16>, vector<16x128xf32> -> vector<16x128xf32>
    %c0_26 = arith.constant 0 : index
    %c256 = arith.constant 256 : index
    %44 = vector.load %arg7[%c0_26, %c256] : memref<1x384xf32, #tpu.memory_space<vmem>>, vector<1x128xf32>
    %45 = vector.broadcast %44 : vector<1x128xf32> to vector<16x128xf32>
    %46 = arith.addf %43, %45 : vector<16x128xf32>
    %cst_27 = arith.constant dense<0xFF800000> : vector<16xf32>
    %47 = vector.multi_reduction <maximumf>, %46, %cst_27 [1] : vector<16x128xf32> to vector<16xf32>
    %48 = vector.shape_cast %47 : vector<16xf32> to vector<16x1xf32>
    %49 = vector.broadcast %48 : vector<16x1xf32> to vector<16x128xf32>
    %50 = arith.subf %46, %49 : vector<16x128xf32>
    %51 = math.exp %50 : vector<16x128xf32>
    %cst_28 = arith.constant dense<0.000000e+00> : vector<16xf32>
    %52 = vector.multi_reduction <add>, %51, %cst_28 [1] : vector<16x128xf32> to vector<16xf32>
    %53 = vector.shape_cast %52 : vector<16xf32> to vector<16x1xf32>
    %54 = vector.broadcast %53 : vector<16x1xf32> to vector<16x128xf32>
    %55 = arith.divf %51, %54 : vector<16x128xf32>
    %c0_29 = arith.constant 0 : index
    %c256_30 = arith.constant 256 : index
    %56 = vector.load %arg8[%c0_29, %c256_30] : memref<16x384xf32, #tpu.memory_space<vmem>>, vector<16x128xf32>
    tpu.vector_store %arg8[%c0_29, %c256_30], %55 {strides = array<i32>} : memref<16x384xf32, #tpu.memory_space<vmem>>, vector<16x128xf32>,
    return
  }
  func.func @transform_0(%arg0: i32) -> (i32, i32) {
    %c0_i32 = arith.constant 0 : i32
    %c0_i32_0 = arith.constant 0 : i32
    return %arg0, %c0_i32 : i32, i32
  }
  func.func @transform_1(%arg0: i32) -> (i32, i32) {
    %c0_i32 = arith.constant 0 : i32
    %c0_i32_0 = arith.constant 0 : i32
    %c0_i32_1 = arith.constant 0 : i32
    return %c0_i32, %c0_i32_0 : i32, i32
  }
  func.func @transform_2(%arg0: i32) -> (i32, i32) {
    %c0_i32 = arith.constant 0 : i32
    %c0_i32_0 = arith.constant 0 : i32
    %c0_i32_1 = arith.constant 0 : i32
    return %c0_i32, %c0_i32_0 : i32, i32
  }
  func.func @transform_3(%arg0: i32) -> (i32, i32) {
    %c0_i32 = arith.constant 0 : i32
    %c0_i32_0 = arith.constant 0 : i32
    %c0_i32_1 = arith.constant 0 : i32
    return %c0_i32, %c0_i32_0 : i32, i32
  }
  func.func @transform_4(%arg0: i32) -> (i32, i32) {
    %c0_i32 = arith.constant 0 : i32
    %c0_i32_0 = arith.constant 0 : i32
    %c0_i32_1 = arith.constant 0 : i32
    return %c0_i32, %c0_i32_0 : i32, i32
  }
  func.func @transform_5(%arg0: i32) -> (i32, i32) {
    %c0_i32 = arith.constant 0 : i32
    %c0_i32_0 = arith.constant 0 : i32
    %c0_i32_1 = arith.constant 0 : i32
    return %c0_i32, %c0_i32_0 : i32, i32
  }
  func.func @transform_6(%arg0: i32) -> (i32, i32) {
    %c0_i32 = arith.constant 0 : i32
    %c0_i32_0 = arith.constant 0 : i32
    %c0_i32_1 = arith.constant 0 : i32
    return %c0_i32, %c0_i32_0 : i32, i32
  }
  func.func @transform_7(%arg0: i32) -> (i32, i32) {
    %c0_i32 = arith.constant 0 : i32
    %c0_i32_0 = arith.constant 0 : i32
    return %arg0, %c0_i32 : i32, i32
  }
}

</mosaic_0001>

<bundles_post_ra>
// kernel: tpu_custom_call.1
= control target key start
LH: loop header
LB: loop body
LE: loop exit
PB: predicated region body
PF: predicated region fallthrough
CT: control target
= control target key end

     0   :  { %s4162_s0 = inlined_call_operand.hbm [shape: bf16[32,128], index: 0, kind: input, shape index: {}]   ;;  %s4163_s1 = inlined_call_operand.hbm [shape: bf16[128,1536], index: 1, kind: input, shape index: {}]   ;;  %s4164_s2 = inlined_call_operand.hbm [shape: f32[1,1536], index: 2, kind: input, shape index: {}]   ;;  %s4165_s3 = inlined_call_operand.hbm [shape: bf16[256,128], index: 3, kind: input, shape index: {}]   ;;  %s4166_s4 = inlined_call_operand.hbm [shape: bf16[256,128], index: 4, kind: input, shape index: {}]   ;;  %s4167_s5 = inlined_call_operand.hbm [shape: bf16[1024,128], index: 5, kind: input, shape index: {}]   ;;  %s4168_s6 = inlined_call_operand.vmem [shape: f32[1,384], index: 6, kind: input, shape index: {}]   ;;  %s4169_s7 = inlined_call_operand.hbm [shape: f32[32,384], index: 7, kind: output, shape index: {}]  }
   0x1   :  { %4172 = sst [smem:[#allocation19_spill]] %s4163_s1 }
   0x2   :  { %12 = vsyncpa [#allocation3], 0 }
   0x3   :  { %14 = vsyncpa [#allocation3 + $0x1], 0 }
   0x4   :  { %15 = vsyncpa [#allocation6], 0 }
   0x5   :  { %16 = vsyncpa [#allocation9], 0 }
   0x6   :  { %17 = vsyncpa [#allocation12], 0 }
   0x7   :  { %18 = vsyncpa [#allocation4], 0 }
   0x8   :  { %20 = vsyncpa [#allocation4 + $0x1], 0  ;;  %s3914_s24 = smov 0   ;;  %s3916_s25 = smov 0  }
   0x9   :  { %s3918_s26 = smov 0   ;;  %s3920_s27 = smov 0  }
   0xa LB: > { %s4173_s1 = sld [smem:[#allocation19_spill]]  ;;  %s3938_s8 = sadd.s32 4294967295, %s3861_s27   ;;  %s3861_s27 = sphi %s3920_s27, %s4186_s27   ;;  %s3857_s26 = sphi %s3918_s26, %s4185_s26   ;;  %s3853_s25 = sphi %s3916_s25, %s4184_s25   ;;  %s3849_s24 = sphi %s3914_s24, %s4183_s24  }
   0xb   : > { %p2483_p0 = scmp.ge.s32.totalorder %s3861_s27, 1  ;;  %p47_p1 = scmp.eq.s32.totalorder %s3938_s8, 0 }
   0xc   : > { %p209_p2 = scmp.lt.s32.totalorder %s3861_s27, 3  ;;  %s3863_s10 = smov [#allocation5]  }
   0xd   : > { %s222_s11 = sshll.u32 %s3863_s10, 4  ;;  %s246_s14 = sshll.u32 %s4165_s3, 4  ;;  %s223_s11 = int_to_ptr.vmem [resolvable:$true] %s222_s11  ;;  %s247_s14 = int_to_ptr.hbm [resolvable:$true] %s246_s14 }
   0xe   : > { %p3943_p3 = pnand %p2483_p0, %p209_p2  ;;  %s3864_s16 = smov [#allocation8]  }
   0xf   : > { %s248_s17 = sshll.u32 %s3864_s16, 4  ;;  %s3865_s18 = smov 768   ;;  %s249_s17 = int_to_ptr.vmem [resolvable:$true] %s248_s17 }
  0x10   : > { %s220_s30 = sshll.u32 %s4173_s1, 4  ;;  %p3497_p4 = pneg %p3943_p3  ;;  %s221_s30 = int_to_ptr.hbm [resolvable:$true] %s220_s30 }
  0x11   : > { %s3866_s19 = smov 48   ;;  %s4170_s20 = smov 64  }
  0x12   : > { %p3955_p6 = pnand %p3497_p4, %p47_p1  ;;  %s4171_s21 = smov 4  }
  0x13   : > { %s235_s28 = sshll.u32 %s4164_s2, 4  ;;  %s3869_s29 = smov [#allocation7]   ;;  %s236_s28 = int_to_ptr.hbm [resolvable:$true] %s235_s28 }
  0x14   : > { %3500 = dma.hbm_to_vmem [thread:$0]  (!%p3955_p6), %s221_s30, 12288, %s223_s11, [#allocation6], %s3865_s18, %s3865_s18, %s3866_s19  }
  0x15   : > { %3506 = dma.hbm_to_vmem [thread:$0]  (!%p3955_p6), %s247_s14, 2048, %s249_s17, [#allocation9], %s4170_s20, %s4170_s20, %s4171_s21  }
  0x16   : > { %s237_s10 = sshll.u32 %s3869_s29, 4  ;;  %s260_s12 = sshll.u32 %s4166_s4, 4  ;;  %s238_s10 = int_to_ptr.vmem [resolvable:$true] %s237_s10  ;;  %s261_s12 = int_to_ptr.hbm [resolvable:$true] %s260_s12 }
  0x17   : > { %3503 = dma.hbm_to_vmem [thread:$0]  (!%p3955_p6), %s236_s28, 192, %s238_s10, [#allocation6]  }
  0x18   : > { %s3870_s13 = smov [#allocation10]   ;;  %s274_s18 = sshll.u32 %s4167_s5, 4  ;;  %s275_s18 = int_to_ptr.hbm [resolvable:$true] %s274_s18 }
  0x19   : > { %s262_s14 = sshll.u32 %s3870_s13, 4  ;;  %s3871_s19 = smov [#allocation11]   ;;  %s263_s14 = int_to_ptr.vmem [resolvable:$true] %s262_s14 }
  0x1a   : > { %3509 = dma.hbm_to_vmem [thread:$0]  (!%p3955_p6), %s261_s12, 2048, %s263_s14, [#allocation9], %s4170_s20, %s4170_s20, %s4171_s21  }
  0x1b   : > { %s276_s22 = sshll.u32 %s3871_s19, 4  ;;  %s2482_s23 = sadd.s32 4294967294, %s3861_s27   ;;  %s277_s22 = int_to_ptr.vmem [resolvable:$true] %s276_s22 }
  0x1c   : > { %3512 = dma.hbm_to_vmem [thread:$0]  (!%p3955_p6), %s275_s18, 8192, %s277_s22, [#allocation12], %s4170_s20, %s4170_s20, %s4171_s21  }
  0x1d   : > { %s3989_s28 = sadd.s32 1, %s3861_s27   ;;  %s33_s29 = sadd.s32 1, %s3857_s26 }
  0x1e   : > { %s30_s10 = ssub.s32 %s3861_s27, %s3989_s28  ;;  %p40_p7 = scmp.ne.s32.totalorder %s3857_s26, %s3853_s25 }
  0x1f   : > { %p31_p8 = scmp.eq.s32.totalorder %s30_s10, 0  ;;  %p41_p9 = scmp.eq.s32.totalorder %s3861_s27, 0 }
  0x20   : > { %p46_p10 = scmp.ne.s32.totalorder %s3853_s25, %s3849_s24  ;;  %p196_p11 = scmp.eq.s32.totalorder %s3938_s8, 1 }
  0x21   : > { %s4001_s30 = scalar_select %p31_p8, %s3857_s26, %s33_s29  }
  0x22   : > { %p4005_p12 = por %p47_p1, %p46_p10  ;;  %p4009_p13 = por %p196_p11, %p40_p7 }
  0x23   : > { %p202_p0 = scmp.eq.s32.totalorder %s2482_s23, 1  ;;  %p42_p2 = por %p41_p9, %p40_p7 }
  0x24   : > { %s293_s12 = sand.u32 1, %s3857_s26   ;;  %p3526_p6 = scmp.lt.s32.totalorder %s3861_s27, 2 }
  0x25   : > { %p4014_p4 = por %p202_p0, %p46_p10  ;;  %s2490_s14 = sshll.u32 %s293_s12, 3 }
  0x26   : > { %s3277_s16 = sshll.u32 %s3861_s27, 3  ;;  %s297_s29 = scalar_lea.vmem [#allocation2], %s2490_s14 }
  0x27   : > { %s302_s19 = scalar_lea.hbm %s4162_s0, %s3277_s16  ;;  %s305_s10 = sshll.u32 %s297_s29, 4  ;;  %s306_s10 = int_to_ptr.vmem [resolvable:$true] %s305_s10 }
  0x28   : > { %s303_s22 = sshll.u32 %s302_s19, 4  ;;  %p4023_p8 = pnand %p3526_p6, %p42_p2  ;;  %s304_s22 = int_to_ptr.hbm [resolvable:$true] %s303_s22 }
  0x29   : > { %s294_s20 = scalar_lea.sflag [#allocation3], %s293_s12  ;;  %s3753_s21 = sshra.s32 %s304_s22, 4  ;;  %s3754_s21 = int_to_ptr.hbm [resolvable:$true] %s3753_s21 }
  0x2a   : > { %s3755_s1 = scalar_lea.hbm %s3754_s21, 8  ;;  %p3757_p9 = pneg %p4023_p8 }
  0x2b   : > { %p3756_p7 = scmp.ne.s32.totalorder %s3754_s21, %s3755_s1  ;;  %s3760_s14 = scalar_lea.hbm %s4162_s0, 16 }
  0x2c   : > { %p3761_p0 = scmp.lt.s32.totalorder %s3754_s21, %s4162_s0  ;;  %p3762_p2 = scmp.lt.s32.totalorder %s3760_s14, %s3755_s1 }
  0x2d   : > { %p3758_p10 = pnand %p3757_p9, %p3756_p7 }
  0x2e   : > { %p3763_p6 = por %p3762_p2, %p3761_p0 }
  0x2f   : > { %p3759_p11 = pneg %p3758_p10 }
  0x31   : > { %p3764_p5 = pnand %p3763_p6, %p3759_p11 }
  0x33   : > { %3767 = shalt.err (!%p3764_p5)
}
  0x34   : > { %s4180_s12 = smov 4   ;;  %s4181_s29 = smov 64  }
  0x35   : > { %3516 = dma.hbm_to_vmem [thread:$0]  (!%p4023_p8), %s304_s22, 128, %s306_s10, %s294_s20, %s4181_s29, %s4181_s29, %s4180_s12  }
  0x36   : > { %317 = sbr.rel (%p3943_p3) target bundleno = 727 (0x2d7), region = 48  ;;  %s4043_s16 = sand.u32 (!%p3943_p3), 1, %s3853_s25  }
  0x37   : > { %s2494_s21 = sshll.u32 (!%p3943_p3), %s4043_s16, 3  ;;  %s320_s1 = scalar_lea.sflag (!%p3943_p3), [#allocation3], %s4043_s16 }
  0x38   : > { %s4047_s17 = scalar_lea.vmem (!%p3943_p3), [#allocation2], %s2494_s21 }
  0x3b   : > { %3828 = dma.done.wait (%p4005_p12), %s320_s1, 128  }
  0x3c   : > { %3830 = vsyncadd (%p4005_p12), %s320_s1, 4294967168 }
  0x3d   : > { %3832 = dma.done.wait (%p47_p1), [#allocation6], 12480  }
  0x3e   : > { %3834 = vsyncadd (%p47_p1), [#allocation6], 4294954816 }
  0x3f   : > { %3836 = dma.done.wait (%p47_p1), [#allocation9], 4096  }
  0x40   : > { %3838 = vsyncadd (%p47_p1), [#allocation9], 4294963200 }
  0x41   : > { %3840 = dma.done.wait (%p47_p1), [#allocation12], 8192  }
  0x42   : > { %3842 = vsyncadd (%p47_p1), [#allocation12], 4294959104  ;;  %v2842_v0 = vld [vmem:[#allocation5 + $0x2a0] sm:$0xf]  ;;  %v3369_v1 = vld [vmem:[#allocation5 + $0x2cc] sm:$0xf0] }
  0x43   : > { %v3363_v2 = vld [vmem:[#allocation5 + $0x2a4] sm:$0xf]  ;;  %v2843_v3 = vor.u32 %v3369_v1, %v2842_v0  ;;  %v2844_v4 = vld [vmem:[#allocation5 + $0x2d0] sm:$0xf0]  ;;  %v2850_v5 = vld [vmem:[#allocation5 + $0x2a8] sm:$0xf] }
  0x44   : > { %v3370_v6 = vld [vmem:[#allocation5 + $0x2d4] sm:$0xf0]  ;;  %v2847_v7 = vor.u32 %v3363_v2, %v2844_v4  ;;  %v3364_v9 = vld [vmem:[#allocation5 + $0x2ac] sm:$0xf]  ;;  %v2852_v10 = vld [vmem:[#allocation5 + $0x2d8] sm:$0xf0] }
  0x45   : > { %v2851_v8 = vor.u32 %v3370_v6, %v2850_v5  ;;  %v2794_v11 = vld [vmem:[#allocation5 + $0x240] sm:$0xf]  ;;  %994 = vmatpush.bf16.msra.mxu0 %v2843_v3  ;;  %v2855_v12 = vor.u32 %v3364_v9, %v2852_v10  ;;  %v3357_v13 = vld [vmem:[#allocation5 + $0x26c] sm:$0xf0]  ;;  %v3351_v14 = vld [vmem:[#allocation5 + $0x244] sm:$0xf] }
  0x46   : > { %v2796_v15 = vld [vmem:[#allocation5 + $0x270] sm:$0xf0]  ;;  %1008 = vmatpush.bf16.msra.mxu1 %v2847_v7  ;;  %v2795_v16 = vor.u32 %v3357_v13, %v2794_v11  ;;  %v2802_v18 = vld [vmem:[#allocation5 + $0x248] sm:$0xf]  ;;  %v3358_v19 = vld [vmem:[#allocation5 + $0x274] sm:$0xf0] }
  0x47   : > { %1022 = vmatpush.bf16.msra.mxu2 %v2851_v8  ;;  %v2799_v17 = vor.u32 %v3351_v14, %v2796_v15  ;;  %v3352_v20 = vld [vmem:[#allocation5 + $0x24c] sm:$0xf]  ;;  %1036 = vmatpush.bf16.msra.mxu3 %v2855_v12  ;;  %v2803_v21 = vor.u32 %v3358_v19, %v2802_v18  ;;  %v2804_v22 = vld [vmem:[#allocation5 + $0x278] sm:$0xf0]  ;;  %v2746_v23 = vld [vmem:[#allocation5 + $0x1e0] sm:$0xf] }
  0x48   : > { %v3345_v24 = vld [vmem:[#allocation5 + $0x20c] sm:$0xf0]  ;;  %v2807_v25 = vor.u32 %v3352_v20, %v2804_v22  ;;  %v3339_v26 = vld [vmem:[#allocation5 + $0x1e4] sm:$0xf]  ;;  %v2748_v27 = vld [vmem:[#allocation5 + $0x210] sm:$0xf0] }
  0x49   : > { %v2754_v28 = vld [vmem:[#allocation5 + $0x1e8] sm:$0xf]  ;;  %995 = vmatpush.bf16.msra.mxu0 %v2795_v16  ;;  %v2747_v29 = vor.u32 %v3345_v24, %v2746_v23  ;;  %v3346_v30 = vld [vmem:[#allocation5 + $0x214] sm:$0xf0]  ;;  %v3340_v31 = vld [vmem:[#allocation5 + $0x1ec] sm:$0xf]  ;;  %v2751_v33 = vor.u32 %v3339_v26, %v2748_v27 }
  0x4a   : > { %v2756_v32 = vld [vmem:[#allocation5 + $0x218] sm:$0xf0]  ;;  %1009 = vmatpush.bf16.msra.mxu1 %v2799_v17  ;;  %v2755_v34 = vor.u32 %v3346_v30, %v2754_v28  ;;  %v2698_v35 = vld [vmem:[#allocation5 + $0x180] sm:$0xf]  ;;  %v3333_v36 = vld [vmem:[#allocation5 + $0x1ac] sm:$0xf0] }
  0x4b   : > { %1023 = vmatpush.bf16.msra.mxu2 %v2803_v21  ;;  %v3327_v37 = vld [vmem:[#allocation5 + $0x184] sm:$0xf]  ;;  %1037 = vmatpush.bf16.msra.mxu3 %v2807_v25  ;;  %v2759_v38 = vor.u32 %v3340_v31, %v2756_v32  ;;  %v2700_v39 = vld [vmem:[#allocation5 + $0x1b0] sm:$0xf0]  ;;  %v2706_v40 = vld [vmem:[#allocation5 + $0x188] sm:$0xf]  ;;  %v2699_v44 = vor.u32 %v3333_v36, %v2698_v35 }
  0x4c   : > { %v3334_v41 = vld [vmem:[#allocation5 + $0x1b4] sm:$0xf0]  ;;  %v3328_v42 = vld [vmem:[#allocation5 + $0x18c] sm:$0xf]  ;;  %v2708_v43 = vld [vmem:[#allocation5 + $0x1b8] sm:$0xf0]  ;;  %v2703_v45 = vor.u32 %v3327_v37, %v2700_v39 }
  0x4d   : > { %996 = vmatpush.bf16.msra.mxu0 %v2747_v29  ;;  %v2707_v46 = vor.u32 %v3334_v41, %v2706_v40  ;;  %v2650_v47 = vld [vmem:[#allocation5 + $0x120] sm:$0xf]  ;;  %v3321_v48 = vld [vmem:[#allocation5 + $0x14c] sm:$0xf0]  ;;  %v3315_v49 = vld [vmem:[#allocation5 + $0x124] sm:$0xf]  ;;  %v2711_v50 = vor.u32 %v3328_v42, %v2708_v43 }
  0x4e   : > { %1010 = vmatpush.bf16.msra.mxu1 %v2751_v33  ;;  %v2652_v51 = vld [vmem:[#allocation5 + $0x150] sm:$0xf0]  ;;  %v2658_v52 = vld [vmem:[#allocation5 + $0x128] sm:$0xf]  ;;  %v3322_v53 = vld [vmem:[#allocation5 + $0x154] sm:$0xf0]  ;;  %v2651_v56 = vor.u32 %v3321_v48, %v2650_v47 }
  0x4f   : > { %1024 = vmatpush.bf16.msra.mxu2 %v2755_v34  ;;  %1038 = vmatpush.bf16.msra.mxu3 %v2759_v38  ;;  %v3316_v54 = vld [vmem:[#allocation5 + $0x12c] sm:$0xf]  ;;  %v2660_v55 = vld [vmem:[#allocation5 + $0x158] sm:$0xf0]  ;;  %v2655_v57 = vor.u32 %v3315_v49, %v2652_v51  ;;  %v2659_v58 = vor.u32 %v3322_v53, %v2658_v52  ;;  %v2602_v59 = vld [vmem:[#allocation5 + $0xc0] sm:$0xf] }
  0x50   : > { %v3309_v60 = vld [vmem:[#allocation5 + $0xec] sm:$0xf0]  ;;  %v3303_v61 = vld [vmem:[#allocation5 + $0xc4] sm:$0xf]  ;;  %v2663_v62 = vor.u32 %v3316_v54, %v2660_v55  ;;  %v2604_v63 = vld [vmem:[#allocation5 + $0xf0] sm:$0xf0] }
  0x51   : > { %997 = vmatpush.bf16.msra.mxu0 %v2699_v44  ;;  %v2610_v0 = vld [vmem:[#allocation5 + $0xc8] sm:$0xf]  ;;  %v3310_v1 = vld [vmem:[#allocation5 + $0xf4] sm:$0xf0]  ;;  %v3304_v2 = vld [vmem:[#allocation5 + $0xcc] sm:$0xf]  ;;  %v2603_v4 = vor.u32 %v3309_v60, %v2602_v59  ;;  %v2607_v5 = vor.u32 %v3303_v61, %v2604_v63 }
  0x52   : > { %1011 = vmatpush.bf16.msra.mxu1 %v2703_v45  ;;  %v2612_v3 = vld [vmem:[#allocation5 + $0xf8] sm:$0xf0]  ;;  %v2611_v6 = vor.u32 %v3310_v1, %v2610_v0  ;;  %v2554_v7 = vld [vmem:[#allocation5 + $0x60] sm:$0xf]  ;;  %v3297_v8 = vld [vmem:[#allocation5 + $0x8c] sm:$0xf0] }
  0x53   : > { %1025 = vmatpush.bf16.msra.mxu2 %v2707_v46  ;;  %1039 = vmatpush.bf16.msra.mxu3 %v2711_v50  ;;  %v3291_v9 = vld [vmem:[#allocation5 + $0x64] sm:$0xf]  ;;  %v2615_v10 = vor.u32 %v3304_v2, %v2612_v3  ;;  %v2556_v11 = vld [vmem:[#allocation5 + $0x90] sm:$0xf0]  ;;  %v2562_v12 = vld [vmem:[#allocation5 + $0x68] sm:$0xf]  ;;  %v2555_v16 = vor.u32 %v3297_v8, %v2554_v7 }
  0x54   : > { %v3298_v13 = vld [vmem:[#allocation5 + $0x94] sm:$0xf0]  ;;  %v3292_v14 = vld [vmem:[#allocation5 + $0x6c] sm:$0xf]  ;;  %v2564_v15 = vld [vmem:[#allocation5 + $0x98] sm:$0xf0]  ;;  %v2559_v19 = vor.u32 %v3291_v9, %v2556_v11 }
  0x55   : > { %998 = vmatpush.bf16.msra.mxu0 %v2651_v56  ;;  %v2506_v17 = vld [vmem:[#allocation5] sm:$0xf]  ;;  %v3285_v18 = vld [vmem:[#allocation5 + $0x2c] sm:$0xf0]  ;;  %v2563_v20 = vor.u32 %v3298_v13, %v2562_v12  ;;  %v3279_v21 = vld [vmem:[#allocation5 + $0x4] sm:$0xf]  ;;  %v2567_v24 = vor.u32 %v3292_v14, %v2564_v15 }
  0x56   : > { %1012 = vmatpush.bf16.msra.mxu1 %v2655_v57  ;;  %v2508_v22 = vld [vmem:[#allocation5 + $0x30] sm:$0xf0]  ;;  %v2514_v23 = vld [vmem:[#allocation5 + $0x8] sm:$0xf]  ;;  %v3286_v25 = vld [vmem:[#allocation5 + $0x34] sm:$0xf0]  ;;  %v2507_v31 = vor.u32 %v3285_v18, %v2506_v17 }
  0x57   : > { %1026 = vmatpush.bf16.msra.mxu2 %v2659_v58  ;;  %1040 = vmatpush.bf16.msra.mxu3 %v2663_v62  ;;  %v3280_v26 = vld [vmem:[#allocation5 + $0xc] sm:$0xf]  ;;  %v2516_v27 = vld [vmem:[#allocation5 + $0x38] sm:$0xf0]  ;;  %v2858_v28 = vld [vmem:[#allocation5 + $0x2b0] sm:$0xf]  ;;  %v2511_v35 = vor.u32 %v3279_v21, %v2508_v22  ;;  %v2515_v36 = vor.u32 %v3286_v25, %v2514_v23 }
  0x58   : > { %v3371_v29 = vld [vmem:[#allocation5 + $0x2dc] sm:$0xf0]  ;;  %v3365_v30 = vld [vmem:[#allocation5 + $0x2b4] sm:$0xf]  ;;  %v2860_v32 = vld [vmem:[#allocation5 + $0x2e0] sm:$0xf0]  ;;  %v2519_v39 = vor.u32 %v3280_v26, %v2516_v27 }
  0x59   : > { %999 = vmatpush.bf16.msra.mxu0 %v2603_v4  ;;  %v2866_v33 = vld [vmem:[#allocation5 + $0x2b8] sm:$0xf]  ;;  %v3372_v34 = vld [vmem:[#allocation5 + $0x2e4] sm:$0xf0]  ;;  %v3366_v37 = vld [vmem:[#allocation5 + $0x2bc] sm:$0xf]  ;;  %v2859_v40 = vor.u32 %v3371_v29, %v2858_v28  ;;  %v2863_v42 = vor.u32 %v3365_v30, %v2860_v32 }
  0x5a   : > { %1013 = vmatpush.bf16.msra.mxu1 %v2607_v5  ;;  %v2868_v38 = vld [vmem:[#allocation5 + $0x2e8] sm:$0xf0]  ;;  %v4066_v41 = vld [vmem:[%s4047_s17] sm:$0xff]  ;;  %v2867_v43 = vor.u32 %v3372_v34, %v2866_v33  ;;  %v3359_v45 = vld [vmem:[#allocation5 + $0x27c] sm:$0xf0]  ;;  %s3471_s14 = smul.u32 48, %s4043_s16 }
  0x5b   : > { %1027 = vmatpush.bf16.msra.mxu2 %v2611_v6  ;;  %1041 = vmatpush.bf16.msra.mxu3 %v2615_v10  ;;  %v2810_v44 = vld [vmem:[#allocation5 + $0x250] sm:$0xf]  ;;  %v3353_v46 = vld [vmem:[#allocation5 + $0x254] sm:$0xf]  ;;  %v2871_v47 = vor.u32 %v3366_v37, %v2868_v38  ;;  %v2812_v48 = vld [vmem:[#allocation5 + $0x280] sm:$0xf0] }
  0x5c   : > { %v2818_v49 = vld [vmem:[#allocation5 + $0x258] sm:$0xf]  ;;  %v3360_v50 = vld [vmem:[#allocation5 + $0x284] sm:$0xf0]  ;;  %v3354_v51 = vld [vmem:[#allocation5 + $0x25c] sm:$0xf]  ;;  %v2811_v53 = vor.u32 %v3359_v45, %v2810_v44  ;;  %v2815_v54 = vor.u32 %v3353_v46, %v2812_v48 }
  0x5d   : > { %1000 = vmatpush.bf16.msra.mxu0 %v2555_v16  ;;  %v2820_v52 = vld [vmem:[#allocation5 + $0x288] sm:$0xf0]  ;;  %v2819_v55 = vor.u32 %v3360_v50, %v2818_v49  ;;  %v2762_v56 = vld [vmem:[#allocation5 + $0x1f0] sm:$0xf]  ;;  %v3347_v57 = vld [vmem:[#allocation5 + $0x21c] sm:$0xf0] }
  0x5e   : > { %1014 = vmatpush.bf16.msra.mxu1 %v2559_v19  ;;  %v3341_v58 = vld [vmem:[#allocation5 + $0x1f4] sm:$0xf]  ;;  %v2823_v59 = vor.u32 %v3354_v51, %v2820_v52  ;;  %v2764_v60 = vld [vmem:[#allocation5 + $0x220] sm:$0xf0]  ;;  %v2770_v61 = vld [vmem:[#allocation5 + $0x1f8] sm:$0xf]  ;;  %v2763_v1 = vor.u32 %v3347_v57, %v2762_v56 }
  0x5f   : > { %1028 = vmatpush.bf16.msra.mxu2 %v2563_v20  ;;  %1042 = vmatpush.bf16.msra.mxu3 %v2567_v24  ;;  %v3348_v62 = vld [vmem:[#allocation5 + $0x224] sm:$0xf0]  ;;  %v3342_v63 = vld [vmem:[#allocation5 + $0x1fc] sm:$0xf]  ;;  %v2772_v0 = vld [vmem:[#allocation5 + $0x228] sm:$0xf0]  ;;  %v2767_v2 = vor.u32 %v3341_v58, %v2764_v60 }
  0x60   : > { %v2771_v3 = vor.u32 %v3348_v62, %v2770_v61  ;;  %v2714_v4 = vld [vmem:[#allocation5 + $0x190] sm:$0xf]  ;;  %v3335_v5 = vld [vmem:[#allocation5 + $0x1bc] sm:$0xf0]  ;;  %v3329_v6 = vld [vmem:[#allocation5 + $0x194] sm:$0xf]  ;;  %v2775_v7 = vor.u32 %v3342_v63, %v2772_v0 }
  0x61   : > { %1001 = vmatpush.bf16.msra.mxu0 %v2507_v31  ;;  %v2716_v8 = vld [vmem:[#allocation5 + $0x1c0] sm:$0xf0]  ;;  %v2722_v9 = vld [vmem:[#allocation5 + $0x198] sm:$0xf]  ;;  %v3336_v10 = vld [vmem:[#allocation5 + $0x1c4] sm:$0xf0]  ;;  %v2715_v13 = vor.u32 %v3335_v5, %v2714_v4 }
  0x62   : > { %1015 = vmatpush.bf16.msra.mxu1 %v2511_v35  ;;  %v3330_v11 = vld [vmem:[#allocation5 + $0x19c] sm:$0xf]  ;;  %v2724_v12 = vld [vmem:[#allocation5 + $0x1c8] sm:$0xf0]  ;;  %v2719_v14 = vor.u32 %v3329_v6, %v2716_v8  ;;  %v2723_v15 = vor.u32 %v3336_v10, %v2722_v9  ;;  %v2666_v16 = vld [vmem:[#allocation5 + $0x130] sm:$0xf] }
  0x63   : > { %1029 = vmatpush.bf16.msra.mxu2 %v2515_v36  ;;  %1043 = vmatpush.bf16.msra.mxu3 %v2519_v39  ;;  %v3323_v17 = vld [vmem:[#allocation5 + $0x15c] sm:$0xf0]  ;;  %v3317_v18 = vld [vmem:[#allocation5 + $0x134] sm:$0xf]  ;;  %v2727_v19 = vor.u32 %v3330_v11, %v2724_v12  ;;  %v2668_v20 = vld [vmem:[#allocation5 + $0x160] sm:$0xf0] }
  0x64   : > { %1002 = vmatmul.bf16.vlgmr.msra.gmra.mxu0 %v4066_v41  ;;  %v2674_v21 = vld [vmem:[#allocation5 + $0x138] sm:$0xf]  ;;  %v3324_v22 = vld [vmem:[#allocation5 + $0x164] sm:$0xf0]  ;;  %v3318_v23 = vld [vmem:[#allocation5 + $0x13c] sm:$0xf]  ;;  %v2667_v25 = vor.u32 %v3323_v17, %v2666_v16  ;;  %v2671_v26 = vor.u32 %v3317_v18, %v2668_v20 }
  0x65   : > { %1050 = vmatpush.bf16.msrb.mxu0 %v2859_v40  ;;  %1016 = vmatmul.bf16.vlgmr.msra.gmra.mxu1 %v4066_v41  ;;  %v2676_v24 = vld [vmem:[#allocation5 + $0x168] sm:$0xf0]  ;;  %v2675_v27 = vor.u32 %v3324_v22, %v2674_v21  ;;  %v2618_v28 = vld [vmem:[#allocation5 + $0xd0] sm:$0xf]  ;;  %v3311_v29 = vld [vmem:[#allocation5 + $0xfc] sm:$0xf0] }
  0x66   : > { %1064 = vmatpush.bf16.msrb.mxu1 %v2863_v42  ;;  %1030 = vmatmul.bf16.vlgmr.msra.gmra.mxu2 %v4066_v41  ;;  %v3305_v30 = vld [vmem:[#allocation5 + $0xd4] sm:$0xf]  ;;  %v2679_v31 = vor.u32 %v3318_v23, %v2676_v24  ;;  %v2620_v32 = vld [vmem:[#allocation5 + $0x100] sm:$0xf0]  ;;  %v2626_v33 = vld [vmem:[#allocation5 + $0xd8] sm:$0xf]  ;;  %v2619_v37 = vor.u32 %v3311_v29, %v2618_v28 }
  0x67   : > { %1078 = vmatpush.bf16.msrb.mxu2 %v2867_v43  ;;  %1092 = vmatpush.bf16.msrb.mxu3 %v2871_v47  ;;  %v3312_v34 = vld [vmem:[#allocation5 + $0x104] sm:$0xf0]  ;;  %v3306_v35 = vld [vmem:[#allocation5 + $0xdc] sm:$0xf]  ;;  %v2628_v36 = vld [vmem:[#allocation5 + $0x108] sm:$0xf0]  ;;  %v2623_v38 = vor.u32 %v3305_v30, %v2620_v32 }
  0x68   : > { %1044 = vmatmul.bf16.vlgmr.msra.gmra.mxu3 %v4066_v41  ;;  %v2627_v39 = vor.u32 %v3312_v34, %v2626_v33  ;;  %v2570_v40 = vld [vmem:[#allocation5 + $0x70] sm:$0xf]  ;;  %v3299_v42 = vld [vmem:[#allocation5 + $0x9c] sm:$0xf0]  ;;  %v3293_v43 = vld [vmem:[#allocation5 + $0x74] sm:$0xf]  ;;  %v2631_v44 = vor.u32 %v3306_v35, %v2628_v36 }
  0x69   : > { %1051 = vmatpush.bf16.msrb.mxu0 %v2811_v53  ;;  %v2572_v45 = vld [vmem:[#allocation5 + $0xa0] sm:$0xf0]  ;;  %v2578_v46 = vld [vmem:[#allocation5 + $0x78] sm:$0xf]  ;;  %v3300_v47 = vld [vmem:[#allocation5 + $0xa4] sm:$0xf0]  ;;  %v2571_v50 = vor.u32 %v3299_v42, %v2570_v40 }
  0x6a   : > { %1065 = vmatpush.bf16.msrb.mxu1 %v2815_v54  ;;  %v3294_v48 = vld [vmem:[#allocation5 + $0x7c] sm:$0xf]  ;;  %v2580_v49 = vld [vmem:[#allocation5 + $0xa8] sm:$0xf0]  ;;  %v2522_v51 = vld [vmem:[#allocation5 + $0x10] sm:$0xf]  ;;  %v2575_v53 = vor.u32 %v3293_v43, %v2572_v45  ;;  %v2579_v54 = vor.u32 %v3300_v47, %v2578_v46 }
  0x6b   : > { %1079 = vmatpush.bf16.msrb.mxu2 %v2819_v55  ;;  %1093 = vmatpush.bf16.msrb.mxu3 %v2823_v59  ;;  %v3287_v52 = vld [vmem:[#allocation5 + $0x3c] sm:$0xf0]  ;;  %v3281_v55 = vld [vmem:[#allocation5 + $0x14] sm:$0xf]  ;;  %v2524_v56 = vld [vmem:[#allocation5 + $0x40] sm:$0xf0]  ;;  %v2583_v58 = vor.u32 %v3294_v48, %v2580_v49 }
  0x6c   : > { %v2530_v57 = vld [vmem:[#allocation5 + $0x18] sm:$0xf]  ;;  %v3288_v59 = vld [vmem:[#allocation5 + $0x44] sm:$0xf0]  ;;  %v3282_v60 = vld [vmem:[#allocation5 + $0x1c] sm:$0xf]  ;;  %v2527_v5 = vor.u32 %v3281_v55, %v2524_v56 }
  0x6d   : > { %1052 = vmatpush.bf16.msrb.mxu0 %v2763_v1  ;;  %v2532_v61 = vld [vmem:[#allocation5 + $0x48] sm:$0xf0]  ;;  %v2874_v62 = vld [vmem:[#allocation5 + $0x2c0] sm:$0xf]  ;;  %v3373_v63 = vld [vmem:[#allocation5 + $0x2ec] sm:$0xf0]  ;;  %v2523_v1 = vor.u32 %v3287_v52, %v2522_v51  ;;  %v2531_v6 = vor.u32 %v3288_v59, %v2530_v57 }
  0x6e   : > { %1066 = vmatpush.bf16.msrb.mxu1 %v2767_v2  ;;  %v3367_v0 = vld [vmem:[#allocation5 + $0x2c4] sm:$0xf]  ;;  %v2876_v2 = vld [vmem:[#allocation5 + $0x2f0] sm:$0xf0]  ;;  %v3374_v4 = vld [vmem:[#allocation5 + $0x2f4] sm:$0xf0]  ;;  %v2535_v9 = vor.u32 %v3282_v60, %v2532_v61  ;;  %v2875_v10 = vor.u32 %v3373_v63, %v2874_v62 }
  0x6f   : > { %1080 = vmatpush.bf16.msrb.mxu2 %v2771_v3  ;;  %1094 = vmatpush.bf16.msrb.mxu3 %v2775_v7  ;;  %v2882_v3 = vld [vmem:[#allocation5 + $0x2c8] sm:$0xf]  ;;  %v3368_v7 = vld [vmem:[#allocation5 + $0x2cc] sm:$0xf]  ;;  %v2884_v8 = vld [vmem:[#allocation5 + $0x2f8] sm:$0xf0]  ;;  %v2879_v11 = vor.u32 %v3367_v0, %v2876_v2 }
  0x70   : > { %v2883_v12 = vor.u32 %v3374_v4, %v2882_v3  ;;  %v2887_v16 = vor.u32 %v3368_v7, %v2884_v8  ;;  %v2828_v17 = vld [vmem:[#allocation5 + $0x290] sm:$0xf0]  ;;  %v2834_v18 = vld [vmem:[#allocation5 + $0x268] sm:$0xf]  ;;  %v3356_v20 = vld [vmem:[#allocation5 + $0x26c] sm:$0xf] }
  0x71   : > { %1053 = vmatpush.bf16.msrb.mxu0 %v2715_v13  ;;  %v2826_v13 = vld [vmem:[#allocation5 + $0x260] sm:$0xf]  ;;  %v2836_v21 = vld [vmem:[#allocation5 + $0x298] sm:$0xf0]  ;;  %v2780_v28 = vld [vmem:[#allocation5 + $0x230] sm:$0xf0] }
  0x72   : > { %1067 = vmatpush.bf16.msrb.mxu1 %v2719_v14  ;;  %v3361_v14 = vld [vmem:[#allocation5 + $0x28c] sm:$0xf0]  ;;  %v2778_v23 = vld [vmem:[#allocation5 + $0x200] sm:$0xf]  ;;  %v2839_v29 = vor.u32 %v3356_v20, %v2836_v21  ;;  %v2786_v30 = vld [vmem:[#allocation5 + $0x208] sm:$0xf] }
  0x73   : > { %1081 = vmatpush.bf16.msrb.mxu2 %v2723_v15  ;;  %1095 = vmatpush.bf16.msrb.mxu3 %v2727_v19  ;;  %v3355_v15 = vld [vmem:[#allocation5 + $0x264] sm:$0xf]  ;;  %v3362_v19 = vld [vmem:[#allocation5 + $0x294] sm:$0xf0]  ;;  %v2827_v22 = vor.u32 %v3361_v14, %v2826_v13  ;;  %v3344_v32 = vld [vmem:[#allocation5 + $0x20c] sm:$0xf] }
  0x74   : > { %v2831_v24 = vor.u32 %v3355_v15, %v2828_v17  ;;  %v2788_v33 = vld [vmem:[#allocation5 + $0x238] sm:$0xf0]  ;;  %v2732_v42 = vld [vmem:[#allocation5 + $0x1d0] sm:$0xf0]  ;;  %v2738_v43 = vld [vmem:[#allocation5 + $0x1a8] sm:$0xf] }
  0x75   : > { %1054 = vmatpush.bf16.msrb.mxu0 %v2667_v25  ;;  %v2835_v25 = vor.u32 %v3362_v19, %v2834_v18  ;;  %v2791_v40 = vor.u32 %v3344_v32, %v2788_v33  ;;  %v3332_v45 = vld [vmem:[#allocation5 + $0x1ac] sm:$0xf]  ;;  %v2740_v46 = vld [vmem:[#allocation5 + $0x1d8] sm:$0xf0]  ;;  %v3325_v51 = vld [vmem:[#allocation5 + $0x16c] sm:$0xf0] }
  0x76   : > { %1068 = vmatpush.bf16.msrb.mxu1 %v2671_v26  ;;  %v3349_v26 = vld [vmem:[#allocation5 + $0x22c] sm:$0xf0]  ;;  %v3319_v52 = vld [vmem:[#allocation5 + $0x144] sm:$0xf]  ;;  %v2690_v55 = vld [vmem:[#allocation5 + $0x148] sm:$0xf] }
  0x77   : > { %1082 = vmatpush.bf16.msrb.mxu2 %v2675_v27  ;;  %1096 = vmatpush.bf16.msrb.mxu3 %v2679_v31  ;;  %v3343_v27 = vld [vmem:[#allocation5 + $0x204] sm:$0xf]  ;;  %v3350_v31 = vld [vmem:[#allocation5 + $0x234] sm:$0xf0]  ;;  %v2779_v34 = vor.u32 %v3349_v26, %v2778_v23  ;;  %v3320_v57 = vld [vmem:[#allocation5 + $0x14c] sm:$0xf] }
  0x78   : > { %v2783_v35 = vor.u32 %v3343_v27, %v2780_v28  ;;  %v2787_v36 = vor.u32 %v3350_v31, %v2786_v30  ;;  %v3326_v56 = vld [vmem:[#allocation5 + $0x174] sm:$0xf0]  ;;  %v2634_v62 = vld [vmem:[#allocation5 + $0xe0] sm:$0xf]  ;;  %v3313_v63 = vld [vmem:[#allocation5 + $0x10c] sm:$0xf0] }
  0x79   : > { %1055 = vmatpush.bf16.msrb.mxu0 %v2619_v37  ;;  %v2730_v37 = vld [vmem:[#allocation5 + $0x1a0] sm:$0xf]  ;;  %v2691_v61 = vor.u32 %v3326_v56, %v2690_v55  ;;  %v3307_v0 = vld [vmem:[#allocation5 + $0xe4] sm:$0xf]  ;;  %v2636_v2 = vld [vmem:[#allocation5 + $0x110] sm:$0xf0]  ;;  %v2635_v7 = vor.u32 %v3313_v63, %v2634_v62 }
  0x7a   : > { %1069 = vmatpush.bf16.msrb.mxu1 %v2623_v38  ;;  %v3337_v38 = vld [vmem:[#allocation5 + $0x1cc] sm:$0xf0]  ;;  %v2642_v3 = vld [vmem:[#allocation5 + $0xe8] sm:$0xf]  ;;  %v3314_v4 = vld [vmem:[#allocation5 + $0x114] sm:$0xf0]  ;;  %v2639_v8 = vor.u32 %v3307_v0, %v2636_v2 }
  0x7b   : > { %1083 = vmatpush.bf16.msrb.mxu2 %v2627_v39  ;;  %1097 = vmatpush.bf16.msrb.mxu3 %v2631_v44  ;;  %v3331_v39 = vld [vmem:[#allocation5 + $0x1a4] sm:$0xf]  ;;  %v3338_v44 = vld [vmem:[#allocation5 + $0x1d4] sm:$0xf0]  ;;  %v2731_v47 = vor.u32 %v3337_v38, %v2730_v37  ;;  %v2588_v14 = vld [vmem:[#allocation5 + $0xb0] sm:$0xf0] }
  0x7c   : > { %v2735_v48 = vor.u32 %v3331_v39, %v2732_v42  ;;  %v2739_v49 = vor.u32 %v3338_v44, %v2738_v43  ;;  %v2594_v15 = vld [vmem:[#allocation5 + $0x88] sm:$0xf]  ;;  %v3296_v17 = vld [vmem:[#allocation5 + $0x8c] sm:$0xf]  ;;  %v2596_v18 = vld [vmem:[#allocation5 + $0xb8] sm:$0xf0] }
  0x7d   : > { %1056 = vmatpush.bf16.msrb.mxu0 %v2571_v50  ;;  %v2682_v50 = vld [vmem:[#allocation5 + $0x140] sm:$0xf]  ;;  %v3289_v23 = vld [vmem:[#allocation5 + $0x4c] sm:$0xf0]  ;;  %v2540_v26 = vld [vmem:[#allocation5 + $0x50] sm:$0xf0] }
  0x7e   : > { %1070 = vmatpush.bf16.msrb.mxu1 %v2575_v53  ;;  %v2743_v53 = vor.u32 %v3332_v45, %v2740_v46  ;;  %v2683_v59 = vor.u32 %v3325_v51, %v2682_v50  ;;  %v2546_v27 = vld [vmem:[#allocation5 + $0x28] sm:$0xf]  ;;  %v3290_v28 = vld [vmem:[#allocation5 + $0x54] sm:$0xf0]  ;;  %v2548_v30 = vld [vmem:[#allocation5 + $0x58] sm:$0xf0] }
  0x7f   : > { %1084 = vmatpush.bf16.msrb.mxu2 %v2579_v54  ;;  %1098 = vmatpush.bf16.msrb.mxu3 %v2583_v58  ;;  %v2684_v54 = vld [vmem:[#allocation5 + $0x170] sm:$0xf0]  ;;  %v2692_v58 = vld [vmem:[#allocation5 + $0x178] sm:$0xf0]  ;;  %v2547_v33 = vor.u32 %v3290_v28, %v2546_v27  ;;  %v3398_v37 = vld [vmem:[#allocation10 + $0x38] sm:$0xff]  ;;  %s4115_s18 = scalar_lea.vmem [#allocation13], %s3471_s14 }
  0x80   : > { %v2687_v60 = vor.u32 %v3319_v52, %v2684_v54  ;;  %v3381_v38 = vld [vmem:[#allocation8 + $0x30] sm:$0xff]  ;;  %v3406_v39 = vld [vmem:[#allocation10 + $0x78] sm:$0xff]  ;;  %v3380_v43 = vld [vmem:[#allocation8 + $0x28] sm:$0xff]  ;;  %s3472_s19 = smul.u32 48, %s3938_s8  ;;  %s2358_s8 = sshll.u32 %s4115_s18, 4  ;;  %s2359_s8 = int_to_ptr.vmem [resolvable:$true] %s2358_s8 }
  0x81   : > { %1057 = vmatpush.bf16.msrb.mxu0 %v2523_v1  ;;  %v2695_v1 = vor.u32 %v3320_v57, %v2692_v58  ;;  %v3397_v42 = vld [vmem:[#allocation10 + $0x30] sm:$0xff]  ;;  %v3388_v45 = vld [vmem:[#allocation8 + $0x68] sm:$0xff]  ;;  %v3379_v46 = vld [vmem:[#allocation8 + $0x20] sm:$0xff]  ;;  %s2345_s17 = scalar_lea.sflag [#allocation4], %s4043_s16  ;;  %s3803_s10 = scalar_lea.hbm %s4169_s7, 96 }
  0x82   : > { %1071 = vmatpush.bf16.msrb.mxu1 %v2527_v5  ;;  %v3308_v5 = vld [vmem:[#allocation5 + $0xec] sm:$0xf]  ;;  %v3405_v44 = vld [vmem:[#allocation10 + $0x70] sm:$0xff]  ;;  %v3386_v50 = vld [vmem:[#allocation8 + $0x58] sm:$0xff]  ;;  %s2357_s21 = scalar_lea.hbm %s4169_s7, %s3472_s19 }
  0x83   : > { %1085 = vmatpush.bf16.msrb.mxu2 %v2531_v6  ;;  %1099 = vmatpush.bf16.msrb.mxu3 %v2535_v9  ;;  %v2644_v6 = vld [vmem:[#allocation5 + $0x118] sm:$0xf0]  ;;  %v2643_v9 = vor.u32 %v3314_v4, %v2642_v3  ;;  %v3395_v51 = vld [vmem:[#allocation10 + $0x20] sm:$0xff]  ;;  %v3394_v55 = vld [vmem:[#allocation10 + $0x18] sm:$0xff]  ;;  %s2360_s1 = sshll.u32 %s2357_s21, 4  ;;  %s2361_s1 = int_to_ptr.hbm [resolvable:$true] %s2360_s1 }
  0x84   : > { %1058 = vmatmul.bf16.vlgmr.msrb.gmra.mxu0 %v4066_v41  ;;  %v2647_v13 = vor.u32 %v3308_v5, %v2644_v6  ;;  %v3403_v52 = vld [vmem:[#allocation10 + $0x60] sm:$0xff]  ;;  %v3385_v54 = vld [vmem:[#allocation8 + $0x50] sm:$0xff]  ;;  %v3402_v56 = vld [vmem:[#allocation10 + $0x58] sm:$0xff]  ;;  %s3797_s9 = sshra.s32 %s2361_s1, 4  ;;  %s3798_s9 = int_to_ptr.hbm [resolvable:$true] %s3797_s9 }
  0x85   : > { %1106 = vmatpush.bf16.msra.mxu0 %v2875_v10  ;;  %1072 = vmatmul.bf16.vlgmr.msrb.gmra.mxu1 %v4066_v41  ;;  %v2586_v10 = vld [vmem:[#allocation5 + $0x80] sm:$0xf]  ;;  %v3376_v57 = vld [vmem:[#allocation8 + $0x8] sm:$0xff]  ;;  %v3383_v62 = vld [vmem:[#allocation8 + $0x40] sm:$0xff]  ;;  %s3799_s20 = scalar_lea.hbm %s3798_s9, 48  ;;  %p3804_p12 = scmp.lt.s32.totalorder %s3798_s9, %s4169_s7 }
  0x86   : > { %1120 = vmatpush.bf16.msra.mxu1 %v2879_v11  ;;  %1086 = vmatmul.bf16.vlgmr.msrb.gmra.mxu2 %v4066_v41  ;;  %v3301_v11 = vld [vmem:[#allocation5 + $0xac] sm:$0xf0]  ;;  %v3384_v58 = vld [vmem:[#allocation8 + $0x48] sm:$0xff]  ;;  %v3414_v63 = vld [vmem:[#allocation11 + $0x38] sm:$0xff]  ;;  %p3800_p1 = scmp.ne.s32.totalorder %s3798_s9, %s3799_s20  ;;  %p3805_p8 = scmp.lt.s32.totalorder %s3803_s10, %s3799_s20 }
  0x87   : > { %1134 = vmatpush.bf16.msra.mxu2 %v2883_v12  ;;  %1148 = vmatpush.bf16.msra.mxu3 %v2887_v16  ;;  %v3295_v12 = vld [vmem:[#allocation5 + $0x84] sm:$0xf]  ;;  %v3302_v16 = vld [vmem:[#allocation5 + $0xb4] sm:$0xf0]  ;;  %v2587_v19 = vor.u32 %v3301_v11, %v2586_v10  ;;  %v3413_v3 = vld [vmem:[#allocation11 + $0x30] sm:$0xff] }
  0x88   : > { %1100 = vmatmul.bf16.vlgmr.msrb.gmra.mxu3 %v4066_v41  ;;  %v2591_v20 = vor.u32 %v3295_v12, %v2588_v14  ;;  %v2595_v21 = vor.u32 %v3302_v16, %v2594_v15  ;;  %v3422_v0 = vld [vmem:[#allocation11 + $0x78] sm:$0xff]  ;;  %v3400_v2 = vld [vmem:[#allocation10 + $0x48] sm:$0xff]  ;;  %v3421_v4 = vld [vmem:[#allocation11 + $0x70] sm:$0xff]  ;;  %p3801_p3 = pnand %p3800_p1, %p4009_p13  ;;  %p3806_p7 = por %p3805_p8, %p3804_p12 }
  0x89   : > { %1107 = vmatpush.bf16.msra.mxu0 %v2827_v22  ;;  %v2538_v22 = vld [vmem:[#allocation5 + $0x20] sm:$0xf]  ;;  %v3391_v5 = vld [vmem:[#allocation10] sm:$0xff]  ;;  %v3420_v10 = vld [vmem:[#allocation11 + $0x68] sm:$0xff] }
  0x8a   : > { %1121 = vmatpush.bf16.msra.mxu1 %v2831_v24  ;;  %v3283_v24 = vld [vmem:[#allocation5 + $0x24] sm:$0xf]  ;;  %v2539_v31 = vor.u32 %v3289_v23, %v2538_v22  ;;  %v3399_v6 = vld [vmem:[#allocation10 + $0x40] sm:$0xff]  ;;  %v3429_v12 = vld [vmem:[#allocation11 + $0xb0] sm:$0xff]  ;;  %p3802_p5 = pneg %p3801_p3 }
  0x8b   : > { %1135 = vmatpush.bf16.msra.mxu2 %v2835_v25  ;;  %1149 = vmatpush.bf16.msra.mxu3 %v2839_v29  ;;  %v2599_v25 = vor.u32 %v3296_v17, %v2596_v18  ;;  %v3284_v29 = vld [vmem:[#allocation5 + $0x2c] sm:$0xf]  ;;  %v2543_v32 = vor.u32 %v3283_v24, %v2540_v26  ;;  %v4080_v11 = vld [vmem:[#allocation7] sm:$0xff]  ;;  %v3428_v18 = vld [vmem:[#allocation11 + $0xa8] sm:$0xff] }
  0x8c   : > { %v3411_v14 = vld [vmem:[#allocation11 + $0x20] sm:$0xff]  ;;  %v484_v16 = vperm.slane %v4080_v11, 0  ;;  %v485_v17 = vperm.slane %v4080_v11, 1  ;;  %v3410_v24 = vld [vmem:[#allocation11 + $0x18] sm:$0xff]  ;;  %v486_v28 = vperm.slane %v4080_v11, 2  ;;  %p3807_p9 = pnand %p3806_p7, %p3802_p5 }
  0x8d   : > { %1108 = vmatpush.bf16.msra.mxu0 %v2779_v34  ;;  %v2551_v34 = vor.u32 %v3284_v29, %v2548_v30  ;;  %v3419_v15 = vld [vmem:[#allocation11 + $0x60] sm:$0xff]  ;;  %v487_v29 = vperm.slane %v4080_v11, 3 }
  0x8e   : > { %1122 = vmatpush.bf16.msra.mxu1 %v2783_v35  ;;  %v3382_v35 = vld [vmem:[#allocation8 + $0x38] sm:$0xff]  ;;  %v3427_v26 = vld [vmem:[#allocation11 + $0xa0] sm:$0xff] }
  0x8f   : > { %1136 = vmatpush.bf16.msra.mxu2 %v2787_v36  ;;  %1150 = vmatpush.bf16.msra.mxu3 %v2791_v40  ;;  %v3390_v36 = vld [vmem:[#allocation8 + $0x78] sm:$0xff]  ;;  %v3389_v40 = vld [vmem:[#allocation8 + $0x70] sm:$0xff]  ;;  %v3435_v27 = vld [vmem:[#allocation11 + $0xe0] sm:$0xff] }
  0x91   : > { %1109 = vmatpush.bf16.msra.mxu0 %v2731_v47  ;;  %v3387_v47 = vld [vmem:[#allocation8 + $0x60] sm:$0xff] }
  0x92   : > { %1123 = vmatpush.bf16.msra.mxu1 %v2735_v48  ;;  %v3396_v48 = vld [vmem:[#allocation10 + $0x28] sm:$0xff] }
  0x93   : > { %1137 = vmatpush.bf16.msra.mxu2 %v2739_v49  ;;  %1151 = vmatpush.bf16.msra.mxu3 %v2743_v53  ;;  %v3404_v49 = vld [vmem:[#allocation10 + $0x68] sm:$0xff]  ;;  %v3377_v53 = vld [vmem:[#allocation8 + $0x10] sm:$0xff] }
  0x95   : > { %1110 = vmatpush.bf16.msra.mxu0 %v2683_v59  ;;  %v3393_v59 = vld [vmem:[#allocation10 + $0x10] sm:$0xff] }
  0x96   : > { %1124 = vmatpush.bf16.msra.mxu1 %v2687_v60  ;;  %v3401_v60 = vld [vmem:[#allocation10 + $0x50] sm:$0xff] }
  0x97   : > { %1138 = vmatpush.bf16.msra.mxu2 %v2691_v61  ;;  %1152 = vmatpush.bf16.msra.mxu3 %v2695_v1  ;;  %v3375_v61 = vld [vmem:[#allocation8] sm:$0xff]  ;;  %v3392_v1 = vld [vmem:[#allocation10 + $0x8] sm:$0xff] }
  0x99   : > { %1111 = vmatpush.bf16.msra.mxu0 %v2635_v7  ;;  %v3430_v7 = vld [vmem:[#allocation11 + $0xb8] sm:$0xff] }
  0x9a   : > { %1125 = vmatpush.bf16.msra.mxu1 %v2639_v8  ;;  %v3438_v8 = vld [vmem:[#allocation11 + $0xf8] sm:$0xff] }
  0x9b   : > { %1139 = vmatpush.bf16.msra.mxu2 %v2643_v9  ;;  %1153 = vmatpush.bf16.msra.mxu3 %v2647_v13  ;;  %v3412_v9 = vld [vmem:[#allocation11 + $0x28] sm:$0xff]  ;;  %v3437_v13 = vld [vmem:[#allocation11 + $0xf0] sm:$0xff] }
  0x9d   : > { %1112 = vmatpush.bf16.msra.mxu0 %v2587_v19  ;;  %v3436_v19 = vld [vmem:[#allocation11 + $0xe8] sm:$0xff] }
  0x9e   : > { %1126 = vmatpush.bf16.msra.mxu1 %v2591_v20 }
  0x9f   : > { %1140 = vmatpush.bf16.msra.mxu2 %v2595_v21  ;;  %1154 = vmatpush.bf16.msra.mxu3 %v2599_v25  ;;  %v3418_v25 = vld [vmem:[#allocation11 + $0x58] sm:$0xff] }
  0xa1   : > { %1113 = vmatpush.bf16.msra.mxu0 %v2539_v31 }
  0xa2   : > { %1127 = vmatpush.bf16.msra.mxu1 %v2543_v32  ;;  %v3409_v32 = vld [vmem:[#allocation11 + $0x10] sm:$0xff] }
  0xa3   : > { %1141 = vmatpush.bf16.msra.mxu2 %v2547_v33  ;;  %1155 = vmatpush.bf16.msra.mxu3 %v2551_v34  ;;  %v3417_v33 = vld [vmem:[#allocation11 + $0x50] sm:$0xff] }
  0xa4   : > { %1114 = vmatmul.bf16.vlgmr.msra.gmra.mxu0 %v4066_v41 }
  0xa5   : > { %1340 = vmatpush.bf16.msrb.mxu0 %v3382_v35  ;;  %1128 = vmatmul.bf16.vlgmr.msra.gmra.mxu1 %v4066_v41 }
  0xa6   : > { %1354 = vmatpush.bf16.msrb.mxu1 %v3390_v36  ;;  %1142 = vmatmul.bf16.vlgmr.msra.gmra.mxu2 %v4066_v41 }
  0xa7   : > { %1156 = vmatmul.bf16.vlgmr.msra.gmra.mxu3 %v4066_v41  ;;  %1556 = vmatpush.bf16.msrb.mxu2 %v3398_v37  ;;  %v3378_v41 = vld [vmem:[#allocation8 + $0x18] sm:$0xff] }
  0xa8   : > { %1570 = vmatpush.bf16.msrb.mxu3 %v3406_v39  ;;  %v3426_v37 = vld [vmem:[#allocation11 + $0x98] sm:$0xff] }
  0xa9   : > { %1341 = vmatpush.bf16.msrb.mxu0 %v3381_v38  ;;  %v3434_v38 = vld [vmem:[#allocation11 + $0xd8] sm:$0xff] }
  0xaa   : > { %1355 = vmatpush.bf16.msrb.mxu1 %v3389_v40 }
  0xab   : > { %1557 = vmatpush.bf16.msrb.mxu2 %v3397_v42 }
  0xac   : > { %1571 = vmatpush.bf16.msrb.mxu3 %v3405_v44 }
  0xad   : > { %1342 = vmatpush.bf16.msrb.mxu0 %v3380_v43 }
  0xae   : > { %1356 = vmatpush.bf16.msrb.mxu1 %v3388_v45 }
  0xaf   : > { %1558 = vmatpush.bf16.msrb.mxu2 %v3396_v48 }
  0xb0   : > { %1572 = vmatpush.bf16.msrb.mxu3 %v3404_v49 }
  0xb1   : > { %1343 = vmatpush.bf16.msrb.mxu0 %v3379_v46  ;;  %v3408_v46 = vld [vmem:[#allocation11 + $0x8] sm:$0xff] }
  0xb2   : > { %1357 = vmatpush.bf16.msrb.mxu1 %v3387_v47  ;;  %v3416_v47 = vld [vmem:[#allocation11 + $0x48] sm:$0xff] }
  0xb3   : > { %1559 = vmatpush.bf16.msrb.mxu2 %v3395_v51 }
  0xb4   : > { %1573 = vmatpush.bf16.msrb.mxu3 %v3403_v52 }
  0xb5   : > { %1344 = vmatpush.bf16.msrb.mxu0 %v3378_v41  ;;  %v3425_v41 = vld [vmem:[#allocation11 + $0x90] sm:$0xff] }
  0xb6   : > { %1358 = vmatpush.bf16.msrb.mxu1 %v3386_v50  ;;  %v3433_v50 = vld [vmem:[#allocation11 + $0xd0] sm:$0xff] }
  0xb7   : > { %1560 = vmatpush.bf16.msrb.mxu2 %v3394_v55 }
  0xb8   : > { %1574 = vmatpush.bf16.msrb.mxu3 %v3402_v56  ;;  %v3407_v56 = vld [vmem:[#allocation11] sm:$0xff] }
  0xb9   : > { %1345 = vmatpush.bf16.msrb.mxu0 %v3377_v53 }
  0xba   : > { %1359 = vmatpush.bf16.msrb.mxu1 %v3385_v54 }
  0xbb   : > { %1561 = vmatpush.bf16.msrb.mxu2 %v3393_v59 }
  0xbc   : > { %1575 = vmatpush.bf16.msrb.mxu3 %v3401_v60 }
  0xbd   : > { %1346 = vmatpush.bf16.msrb.mxu0 %v3376_v57  ;;  %v3415_v57 = vld [vmem:[#allocation11 + $0x40] sm:$0xff] }
  0xbe   : > { %1360 = vmatpush.bf16.msrb.mxu1 %v3384_v58 }
  0xbf   : > { %1562 = vmatpush.bf16.msrb.mxu2 %v3392_v1 }
  0xc0   : > { %1576 = vmatpush.bf16.msrb.mxu3 %v3400_v2 }
  0xc1   : > { %1347 = vmatpush.bf16.msrb.mxu0 %v3375_v61 }
  0xc2   : > { %1361 = vmatpush.bf16.msrb.mxu1 %v3383_v62 }
  0xc3   : > { %1563 = vmatpush.bf16.msrb.mxu2 %v3391_v5 }
  0xc4   : > { %1577 = vmatpush.bf16.msrb.mxu3 %v3399_v6 }
  0xc5   : > { %2186 = vmatpush.bf16.msra.mxu0 %v3414_v63  ;;  %v3424_v63 = vld [vmem:[#allocation11 + $0x88] sm:$0xff] }
  0xc6   : > { %2200 = vmatpush.bf16.msra.mxu1 %v3422_v0  ;;  %v3432_v0 = vld [vmem:[#allocation11 + $0xc8] sm:$0xff] }
  0xc7   : > { %2214 = vmatpush.bf16.msra.mxu2 %v3430_v7 }
  0xc8   : > { %2228 = vmatpush.bf16.msra.mxu3 %v3438_v8 }
  0xc9   : > { %2187 = vmatpush.bf16.msra.mxu0 %v3413_v3  ;;  %v3446_v3 = vld [vmem:[#allocation11 + $0x138] sm:$0xff] }
  0xca   : > { %2201 = vmatpush.bf16.msra.mxu1 %v3421_v4  ;;  %v3454_v4 = vld [vmem:[#allocation11 + $0x178] sm:$0xff] }
  0xcb   : > { %2215 = vmatpush.bf16.msra.mxu2 %v3429_v12 }
  0xcc   : > { %2229 = vmatpush.bf16.msra.mxu3 %v3437_v13 }
  0xcd   : > { %2188 = vmatpush.bf16.msra.mxu0 %v3412_v9  ;;  %v3423_v9 = vld [vmem:[#allocation11 + $0x80] sm:$0xff] }
  0xce   : > { %2202 = vmatpush.bf16.msra.mxu1 %v3420_v10  ;;  %v3431_v10 = vld [vmem:[#allocation11 + $0xc0] sm:$0xff] }
  0xcf   : > { %2216 = vmatpush.bf16.msra.mxu2 %v3428_v18 }
  0xd0   : > { %2230 = vmatpush.bf16.msra.mxu3 %v3436_v19  ;;  %v3462_v19 = vld [vmem:[#allocation11 + $0x1b8] sm:$0xff] }
  0xd1   : > { %2189 = vmatpush.bf16.msra.mxu0 %v3411_v14 }
  0xd2   : > { %2203 = vmatpush.bf16.msra.mxu1 %v3419_v15  ;;  %v3445_v15 = vld [vmem:[#allocation11 + $0x130] sm:$0xff] }
  0xd3   : > { %2217 = vmatpush.bf16.msra.mxu2 %v3427_v26  ;;  %v3469_v26 = vld [vmem:[#allocation11 + $0x1f0] sm:$0xff] }
  0xd4   : > { %2231 = vmatpush.bf16.msra.mxu3 %v3435_v27  ;;  %v488_v27 = vperm.slane %v4080_v11, 4 }
  0xd5   : > { %2190 = vmatpush.bf16.msra.mxu0 %v3410_v24  ;;  %v3452_v24 = vld [vmem:[#allocation11 + $0x168] sm:$0xff] }
  0xd6   : > { %2204 = vmatpush.bf16.msra.mxu1 %v3418_v25  ;;  %v3461_v25 = vld [vmem:[#allocation11 + $0x1b0] sm:$0xff] }
  0xd7   : > { %2218 = vmatpush.bf16.msra.mxu2 %v3426_v37  ;;  %v3442_v37 = vld [vmem:[#allocation11 + $0x118] sm:$0xff] }
  0xd8   : > { %2232 = vmatpush.bf16.msra.mxu3 %v3434_v38  ;;  %v3450_v38 = vld [vmem:[#allocation11 + $0x158] sm:$0xff] }
  0xd9   : > { %2191 = vmatpush.bf16.msra.mxu0 %v3409_v32 }
  0xda   : > { %2205 = vmatpush.bf16.msra.mxu1 %v3417_v33  ;;  %v3460_v33 = vld [vmem:[#allocation11 + $0x1a8] sm:$0xff] }
  0xdb   : > { %2219 = vmatpush.bf16.msra.mxu2 %v3425_v41 }
  0xdc   : > { %2233 = vmatpush.bf16.msra.mxu3 %v3433_v50 }
  0xdd   : > { %2192 = vmatpush.bf16.msra.mxu0 %v3408_v46 }
  0xde   : > { %2206 = vmatpush.bf16.msra.mxu1 %v3416_v47 }
  0xdf   : > { %2220 = vmatpush.bf16.msra.mxu2 %v3424_v63 }
  0xe0   : > { %2234 = vmatpush.bf16.msra.mxu3 %v3432_v0  ;;  %v3457_v0 = vld [vmem:[#allocation11 + $0x190] sm:$0xff] }
  0xe1   : > { %v1003_v20 = vpop.f32.mrf.mxu0  ;;  %2193 = vmatpush.bf16.msra.mxu0 %v3407_v56 }
  0xe2   : > { %v1017_v21 = vpop.f32.mrf.mxu1  ;;  %v1004_v22 = vadd.f32 %v1003_v20, %v484_v16  ;;  %2207 = vmatpush.bf16.msra.mxu1 %v3415_v57  ;;  %v3470_v20 = vld [vmem:[#allocation11 + $0x1f8] sm:$0xff]  ;;  %v3440_v57 = vld [vmem:[#allocation11 + $0x108] sm:$0xff] }
  0xe3   : > { %v1018_v23 = vadd.f32 %v1017_v21, %v485_v17  ;;  %2221 = vmatpush.bf16.msra.mxu2 %v3423_v9 }
  0xe4   : > { %v1162_v30 = vmax.f32 %v1004_v22, 0.0  ;;  %2235 = vmatpush.bf16.msra.mxu3 %v3431_v10 }
  0xe5   : > { %v1163_v31 = vmax.f32 %v1018_v23, 0.0  ;;  %v3444_v23 = vld [vmem:[#allocation11 + $0x128] sm:$0xff] }
  0xe7   : > { %v1186_v44 = vpack.c.bf16 %v1163_v31, %v1162_v30  ;;  %v3451_v30 = vld [vmem:[#allocation11 + $0x160] sm:$0xff] }
  0xe9   : > { %v1031_v34 = vpop.f32.mrf.mxu2  ;;  %v1005_v36 = vpop.f32.mrf.mxu0  ;;  %v1236_v53 = vunpack.c.l.b16 %v1186_v44  ;;  %v1237_v54 = vunpack.c.h.b16 %v1186_v44  ;;  %v3467_v44 = vld [vmem:[#allocation11 + $0x1e0] sm:$0xff] }
  0xea   : > { %v1032_v39 = vadd.f32 %v1031_v34, %v486_v28  ;;  %v1006_v42 = vadd.f32 %v1005_v36, %v484_v16  ;;  %v1019_v43 = vpop.f32.mrf.mxu1  ;;  %v3453_v16 = vld [vmem:[#allocation11 + $0x170] sm:$0xff]  ;;  %v3468_v34 = vld [vmem:[#allocation11 + $0x1e8] sm:$0xff] }
  0xeb   : > { %v1045_v35 = vpop.f32.mrf.mxu3  ;;  %v1020_v45 = vadd.f32 %v1019_v43, %v485_v17  ;;  %v3459_v43 = vld [vmem:[#allocation11 + $0x1a0] sm:$0xff] }
  0xec   : > { %v1046_v40 = vadd.f32 %v1045_v35, %v487_v29  ;;  %v1174_v48 = vmax.f32 %v1006_v42, 0.0  ;;  %v1164_v51 = vmax.f32 %v1032_v39, 0.0  ;;  %v490_v39 = vperm.slane %v4080_v11, 6 }
  0xed   : > { %v1175_v49 = vmax.f32 %v1020_v45, 0.0 }
  0xee   : > { %v1165_v52 = vmax.f32 %v1046_v40, 0.0  ;;  %v491_v40 = vperm.slane %v4080_v11, 7 }
  0xef   : > { %v1192_v55 = vpack.c.bf16 %v1175_v49, %v1174_v48  ;;  %v3441_v48 = vld [vmem:[#allocation11 + $0x110] sm:$0xff] }
  0xf0   : > { %v1187_v1 = vpack.c.bf16 %v1165_v52, %v1164_v51  ;;  %v3449_v49 = vld [vmem:[#allocation11 + $0x150] sm:$0xff] }
  0xf1   : > { %v1033_v58 = vpop.f32.mrf.mxu2  ;;  %v1238_v59 = vunpack.c.l.b16 %v1192_v55  ;;  %v1239_v60 = vunpack.c.h.b16 %v1192_v55 }
  0xf2   : > { %v1034_v61 = vadd.f32 %v1033_v58, %v486_v28  ;;  %v1452_v12 = vunpack.c.l.b16 %v1187_v1  ;;  %v1453_v13 = vunpack.c.h.b16 %v1187_v1  ;;  %v489_v28 = vperm.slane %v4080_v11, 5  ;;  %v3458_v11 = vld [vmem:[#allocation11 + $0x198] sm:$0xff]  ;;  %v3448_v58 = vld [vmem:[#allocation11 + $0x148] sm:$0xff]  ;;  %v3465_v1 = vld [vmem:[#allocation11 + $0x1d0] sm:$0xff] }
  0xf3   : > { %v1047_v62 = vpop.f32.mrf.mxu3  ;;  %v1240_v5 = vpack.c.b16 %v1238_v59, %v1236_v53  ;;  %v1241_v6 = vpack.c.b16 %v1239_v60, %v1237_v54  ;;  %v3466_v54 = vld [vmem:[#allocation11 + $0x1d8] sm:$0xff] }
  0xf4   : > { %v1048_v2 = vadd.f32 %v1047_v62, %v487_v29  ;;  %v1176_v7 = vmax.f32 %v1034_v61, 0.0  ;;  %v3443_v29 = vld [vmem:[#allocation11 + $0x120] sm:$0xff] }
  0xf5   : > { %1348 = vmatmul.bf16.vlgmr.msrb.gmra.mxu0 %v1240_v5  ;;  %1362 = vmatmul.bf16.vlgmr.msrb.gmra.mxu1 %v1241_v6 }
  0xf6   : > { %v1177_v8 = vmax.f32 %v1048_v2, 0.0  ;;  %2242 = vmatpush.bf16.msrb.mxu0 %v3446_v3  ;;  %2256 = vmatpush.bf16.msrb.mxu1 %v3454_v4 }
  0xf8   : > { %v1193_v14 = vpack.c.bf16 %v1177_v8, %v1176_v7  ;;  %v3439_v7 = vld [vmem:[#allocation11 + $0x100] sm:$0xff] }
  0xf9   : > { %v3447_v8 = vld [vmem:[#allocation11 + $0x140] sm:$0xff] }
  0xfa   : > { %v1454_v17 = vunpack.c.l.b16 %v1193_v14  ;;  %v1455_v18 = vunpack.c.h.b16 %v1193_v14  ;;  %2243 = vmatpush.bf16.msrb.mxu0 %v3445_v15  ;;  %2257 = vmatpush.bf16.msrb.mxu1 %v3453_v16  ;;  %v3456_v16 = vld [vmem:[#allocation11 + $0x188] sm:$0xff] }
  0xfc   : > { %v1456_v21 = vpack.c.b16 %v1454_v17, %v1452_v12  ;;  %v1457_v22 = vpack.c.b16 %v1455_v18, %v1453_v13  ;;  %v3464_v17 = vld [vmem:[#allocation11 + $0x1c8] sm:$0xff] }
  0xfe   : > { %1564 = vmatmul.bf16.vlgmr.msrb.gmra.mxu2 %v1456_v21  ;;  %1578 = vmatmul.bf16.vlgmr.msrb.gmra.mxu3 %v1457_v22 }
  0xff   : > { %2270 = vmatpush.bf16.msrb.mxu2 %v3462_v19  ;;  %2284 = vmatpush.bf16.msrb.mxu3 %v3470_v20 }
 0x100   : > { %2244 = vmatpush.bf16.msrb.mxu0 %v3444_v23  ;;  %2258 = vmatpush.bf16.msrb.mxu1 %v3452_v24 }
 0x101   : > { %v1059_v31 = vpop.f32.mrf.mxu0 }
 0x102   : > { %v1073_v32 = vpop.f32.mrf.mxu1  ;;  %v1060_v35 = vadd.f32 %v1059_v31, %v488_v27 }
 0x103   : > { %2271 = vmatpush.bf16.msrb.mxu2 %v3461_v25  ;;  %2285 = vmatpush.bf16.msrb.mxu3 %v3469_v26  ;;  %v1074_v36 = vadd.f32 %v1073_v32, %v489_v28  ;;  %v3455_v25 = vld [vmem:[#allocation11 + $0x180] sm:$0xff] }
 0x104   : > { %2245 = vmatpush.bf16.msrb.mxu0 %v3443_v29  ;;  %2259 = vmatpush.bf16.msrb.mxu1 %v3451_v30  ;;  %v1166_v45 = vmax.f32 %v1060_v35, 0.0  ;;  %v3463_v26 = vld [vmem:[#allocation11 + $0x1c0] sm:$0xff]  ;;  %v481_v29 = vld [vmem:[#allocation7 + $0x8] sm:$0xf] }
 0x105   : > { %v1167_v46 = vmax.f32 %v1074_v36, 0.0  ;;  %v492_v30 = vperm.slane %v481_v29, 0  ;;  %v493_v31 = vperm.slane %v481_v29, 1 }
 0x107   : > { %2272 = vmatpush.bf16.msrb.mxu2 %v3460_v33  ;;  %2286 = vmatpush.bf16.msrb.mxu3 %v3468_v34  ;;  %v1188_v55 = vpack.c.bf16 %v1167_v46, %v1166_v45 }
 0x108   : > { %2246 = vmatpush.bf16.msrb.mxu0 %v3442_v37  ;;  %2260 = vmatpush.bf16.msrb.mxu1 %v3450_v38  ;;  %v494_v38 = vperm.slane %v481_v29, 2 }
 0x109   : > { %v1087_v42 = vpop.f32.mrf.mxu2  ;;  %v1061_v51 = vpop.f32.mrf.mxu0  ;;  %v1770_v2 = vunpack.c.l.b16 %v1188_v55  ;;  %v1771_v3 = vunpack.c.h.b16 %v1188_v55 }
 0x10a   : > { %v1088_v41 = vadd.f32 %v1087_v42, %v490_v39  ;;  %v1062_v52 = vadd.f32 %v1061_v51, %v488_v27  ;;  %v1075_v53 = vpop.f32.mrf.mxu1 }
 0x10b   : > { %v1101_v47 = vpop.f32.mrf.mxu3  ;;  %2273 = vmatpush.bf16.msrb.mxu2 %v3459_v43  ;;  %2287 = vmatpush.bf16.msrb.mxu3 %v3467_v44  ;;  %v1076_v56 = vadd.f32 %v1075_v53, %v489_v28 }
 0x10c   : > { %v1102_v50 = vadd.f32 %v1101_v47, %v491_v40  ;;  %2247 = vmatpush.bf16.msrb.mxu0 %v3441_v48  ;;  %2261 = vmatpush.bf16.msrb.mxu1 %v3449_v49  ;;  %v1168_v59 = vmax.f32 %v1088_v41, 0.0  ;;  %v1178_v61 = vmax.f32 %v1062_v52, 0.0 }
 0x10d   : > { %v1179_v62 = vmax.f32 %v1076_v56, 0.0 }
 0x10e   : > { %v1169_v60 = vmax.f32 %v1102_v50, 0.0 }
 0x10f   : > { %2274 = vmatpush.bf16.msrb.mxu2 %v3458_v11  ;;  %2288 = vmatpush.bf16.msrb.mxu3 %v3466_v54  ;;  %v1194_v4 = vpack.c.bf16 %v1179_v62, %v1178_v61 }
 0x110   : > { %2248 = vmatpush.bf16.msrb.mxu0 %v3440_v57  ;;  %2262 = vmatpush.bf16.msrb.mxu1 %v3448_v58  ;;  %v1189_v9 = vpack.c.bf16 %v1169_v60, %v1168_v59 }
 0x111   : > { %v1089_v63 = vpop.f32.mrf.mxu2  ;;  %v1778_v12 = vunpack.c.l.b16 %v1194_v4  ;;  %v1779_v13 = vunpack.c.h.b16 %v1194_v4 }
 0x112   : > { %v1090_v5 = vadd.f32 %v1089_v63, %v490_v39  ;;  %v1772_v20 = vunpack.c.l.b16 %v1189_v9  ;;  %v1773_v21 = vunpack.c.h.b16 %v1189_v9  ;;  %v3576_v9 = vld [vmem:[%s4168_s6] ss:$0 sm:$0xff] }
 0x113   : > { %v1103_v6 = vpop.f32.mrf.mxu3  ;;  %2275 = vmatpush.bf16.msrb.mxu2 %v3457_v0  ;;  %2289 = vmatpush.bf16.msrb.mxu3 %v3465_v1  ;;  %v1786_v18 = vpack.c.b16 %v1778_v12, %v1770_v2  ;;  %v1787_v19 = vpack.c.b16 %v1779_v13, %v1771_v3 }
 0x114   : > { %v1104_v10 = vadd.f32 %v1103_v6, %v491_v40  ;;  %v1180_v14 = vmax.f32 %v1090_v5, 0.0  ;;  %2249 = vmatpush.bf16.msrb.mxu0 %v3439_v7  ;;  %2263 = vmatpush.bf16.msrb.mxu1 %v3447_v8  ;;  %v495_v40 = vperm.slane %v481_v29, 3  ;;  %v3578_v29 = vld [vmem:[%s4168_s6 + $0x2] ss:$0 sm:$0xff] }
 0x115   : > { %2194 = vmatmul.bf16.vlgmr.msra.gmra.mxu0 %v1786_v18  ;;  %2208 = vmatmul.bf16.vlgmr.msra.gmra.mxu1 %v1787_v19  ;;  %v3577_v18 = vld [vmem:[%s4168_s6 + $0x1] ss:$0 sm:$0xff] }
 0x116   : > { %v1181_v15 = vmax.f32 %v1104_v10, 0.0 }
 0x117   : > { %2276 = vmatpush.bf16.msrb.mxu2 %v3456_v16  ;;  %2290 = vmatpush.bf16.msrb.mxu3 %v3464_v17 }
 0x118   : > { %v1195_v22 = vpack.c.bf16 %v1181_v15, %v1180_v14 }
 0x11a   : > { %v1780_v23 = vunpack.c.l.b16 %v1195_v22  ;;  %v1781_v24 = vunpack.c.h.b16 %v1195_v22 }
 0x11b   : > { %2277 = vmatpush.bf16.msrb.mxu2 %v3455_v25  ;;  %2291 = vmatpush.bf16.msrb.mxu3 %v3463_v26 }
 0x11c   : > { %v1788_v27 = vpack.c.b16 %v1780_v23, %v1772_v20  ;;  %v1789_v28 = vpack.c.b16 %v1781_v24, %v1773_v21 }
 0x11e   : > { %2222 = vmatmul.bf16.vlgmr.msra.gmra.mxu2 %v1788_v27  ;;  %2236 = vmatmul.bf16.vlgmr.msra.gmra.mxu3 %v1789_v28 }
 0x121   : > { %v1115_v32 = vpop.f32.mrf.mxu0 }
 0x122   : > { %v1129_v33 = vpop.f32.mrf.mxu1  ;;  %v1116_v34 = vadd.f32 %v1115_v32, %v492_v30 }
 0x123   : > { %v1130_v35 = vadd.f32 %v1129_v33, %v493_v31 }
 0x124   : > { %v1170_v36 = vmax.f32 %v1116_v34, 0.0 }
 0x125   : > { %v1171_v37 = vmax.f32 %v1130_v35, 0.0 }
 0x127   : > { %v1190_v46 = vpack.c.bf16 %v1171_v37, %v1170_v36 }
 0x129   : > { %v1143_v39 = vpop.f32.mrf.mxu2  ;;  %v1117_v43 = vpop.f32.mrf.mxu0  ;;  %v1774_v51 = vunpack.c.l.b16 %v1190_v46  ;;  %v1775_v52 = vunpack.c.h.b16 %v1190_v46 }
 0x12a   : > { %v1157_v42 = vpop.f32.mrf.mxu3  ;;  %v1118_v44 = vadd.f32 %v1117_v43, %v492_v30  ;;  %v1131_v45 = vpop.f32.mrf.mxu1  ;;  %v1144_v48 = vadd.f32 %v1143_v39, %v494_v38 }
 0x12b   : > { %v1132_v47 = vadd.f32 %v1131_v45, %v493_v31  ;;  %v1158_v49 = vadd.f32 %v1157_v42, %v495_v40 }
 0x12c   : > { %v1182_v41 = vmax.f32 %v1118_v44, 0.0  ;;  %v1172_v11 = vmax.f32 %v1144_v48, 0.0 }
 0x12d   : > { %v1183_v50 = vmax.f32 %v1132_v47, 0.0  ;;  %v1173_v54 = vmax.f32 %v1158_v49, 0.0 }
 0x12f   : > { %v1196_v53 = vpack.c.bf16 %v1183_v50, %v1182_v41  ;;  %v1191_v0 = vpack.c.bf16 %v1173_v54, %v1172_v11 }
 0x131   : > { %v1145_v55 = vpop.f32.mrf.mxu2  ;;  %v1782_v56 = vunpack.c.l.b16 %v1196_v53  ;;  %v1783_v57 = vunpack.c.h.b16 %v1196_v53  ;;  %v1776_v3 = vunpack.c.l.b16 %v1191_v0  ;;  %v1777_v4 = vunpack.c.h.b16 %v1191_v0 }
 0x132   : > { %v1146_v58 = vadd.f32 %v1145_v55, %v494_v38  ;;  %v1159_v59 = vpop.f32.mrf.mxu3 }
 0x133   : > { %v1160_v60 = vadd.f32 %v1159_v59, %v495_v40  ;;  %v1790_v61 = vpack.c.b16 %v1782_v56, %v1774_v51  ;;  %v1791_v62 = vpack.c.b16 %v1783_v57, %v1775_v52 }
 0x134   : > { %v1184_v63 = vmax.f32 %v1146_v58, 0.0 }
 0x135   : > { %v1185_v1 = vmax.f32 %v1160_v60, 0.0  ;;  %2250 = vmatmul.bf16.vlgmr.msrb.gmra.mxu0 %v1790_v61  ;;  %2264 = vmatmul.bf16.vlgmr.msrb.gmra.mxu1 %v1791_v62 }
 0x137   : > { %v1197_v2 = vpack.c.bf16 %v1185_v1, %v1184_v63 }
 0x139   : > { %v1784_v5 = vunpack.c.l.b16 %v1197_v2  ;;  %v1785_v6 = vunpack.c.h.b16 %v1197_v2 }
 0x13b   : > { %v1792_v7 = vpack.c.b16 %v1784_v5, %v1776_v3  ;;  %v1793_v8 = vpack.c.b16 %v1785_v6, %v1777_v4 }
 0x13d   : > { %2278 = vmatmul.bf16.vlgmr.msrb.gmra.mxu2 %v1792_v7  ;;  %2292 = vmatmul.bf16.vlgmr.msrb.gmra.mxu3 %v1793_v8 }
 0x172   : > { %v1349_v10 = vpop.f32.mrf.mxu0  ;;  %v1363_v12 = vpop.f32.mrf.mxu1 }
 0x173   : > { %v1350_v13 = vadd.f32 %v3576_v9, %v1349_v10 }
 0x175   : > { %v1364_v14 = vadd.f32 %v1363_v12, %v1350_v13 }
 0x177   : > { %1368 = vmax.xlane.f32.xlu0 %v1364_v14 }
 0x17a   : > { %v1351_v15 = vpop.f32.mrf.mxu0  ;;  %v1365_v16 = vpop.f32.mrf.mxu1 }
 0x17b   : > { %v1352_v17 = vadd.f32 %v3576_v9, %v1351_v15 }
 0x17d   : > { %v1366_v19 = vadd.f32 %v1365_v16, %v1352_v17 }
 0x17f   : > { %1370 = vmax.xlane.f32.xlu0 %v1366_v19 }
 0x181   : > { %v1565_v20 = vpop.f32.mrf.mxu2  ;;  %v1579_v21 = vpop.f32.mrf.mxu3 }
 0x182   : > { %v1566_v22 = vadd.f32 %v3577_v18, %v1565_v20 }
 0x184   : > { %v1580_v23 = vadd.f32 %v1579_v21, %v1566_v22 }
 0x186   : > { %1584 = vmax.xlane.f32.xlu1 %v1580_v23 }
 0x189   : > { %v1567_v24 = vpop.f32.mrf.mxu2  ;;  %v1581_v25 = vpop.f32.mrf.mxu3 }
 0x18a   : > { %v1568_v26 = vadd.f32 %v3577_v18, %v1567_v24 }
 0x18c   : > { %v1582_v27 = vadd.f32 %v1581_v25, %v1568_v26 }
 0x18e   : > { %1586 = vmax.xlane.f32.xlu1 %v1582_v27 }
 0x192   : > { %v2195_v28 = vpop.f32.mrf.mxu0  ;;  %v2209_v30 = vpop.f32.mrf.mxu1 }
 0x193   : > { %v2196_v31 = vadd.f32 %v3578_v29, %v2195_v28 }
 0x195   : > { %v2210_v35 = vadd.f32 %v2209_v30, %v2196_v31 }
 0x19a   : > { %v2197_v32 = vpop.f32.mrf.mxu0  ;;  %v2211_v36 = vpop.f32.mrf.mxu1 }
 0x19b   : > { %v2198_v39 = vadd.f32 %v3578_v29, %v2197_v32 }
 0x19d   : > { %v2212_v44 = vadd.f32 %v2211_v36, %v2198_v39 }
 0x1a1   : > { %v2223_v33 = vpop.f32.mrf.mxu2  ;;  %v2237_v34 = vpop.f32.mrf.mxu3 }
 0x1a2   : > { %v2224_v37 = vadd.f32 %v2223_v33, %v2210_v35 }
 0x1a4   : > { %v2238_v43 = vadd.f32 %v2237_v34, %v2224_v37 }
 0x1a9   : > { %v2225_v40 = vpop.f32.mrf.mxu2  ;;  %v2239_v42 = vpop.f32.mrf.mxu3 }
 0x1aa   : > { %v2226_v47 = vadd.f32 %v2225_v40, %v2212_v44 }
 0x1ac   : > { %v2240_v51 = vadd.f32 %v2239_v42, %v2226_v47 }
 0x1b2   : > { %v2251_v38 = vpop.f32.mrf.mxu0  ;;  %v2265_v46 = vpop.f32.mrf.mxu1 }
 0x1b3   : > { %v2252_v45 = vadd.f32 %v2251_v38, %v2238_v43 }
 0x1b5   : > { %v2266_v48 = vadd.f32 %v2265_v46, %v2252_v45 }
 0x1ba   : > { %v2253_v49 = vpop.f32.mrf.mxu0  ;;  %v2267_v54 = vpop.f32.mrf.mxu1 }
 0x1bb   : > { %v2254_v53 = vadd.f32 %v2253_v49, %v2240_v51 }
 0x1bd   : > { %v2268_v55 = vadd.f32 %v2267_v54, %v2254_v53 }
 0x1c0   : > { %v2279_v41 = vpop.f32.mrf.mxu2  ;;  %v2293_v50 = vpop.f32.mrf.mxu3 }
 0x1c1   : > { %v2280_v52 = vadd.f32 %v2279_v41, %v2266_v48 }
 0x1c3   : > { %v2294_v11 = vadd.f32 %v2293_v50, %v2280_v52 }
 0x1c5   : > { %2298 = vmax.xlane.f32.xlu2 %v2294_v11 }
 0x1c8   : > { %v2281_v56 = vpop.f32.mrf.mxu2  ;;  %v2295_v58 = vpop.f32.mrf.mxu3 }
 0x1c9   : > { %v2282_v57 = vadd.f32 %v2281_v56, %v2268_v55 }
 0x1cb   : > { %v2296_v59 = vadd.f32 %v2295_v58, %v2282_v57 }
 0x1cd   : > { %2300 = vmax.xlane.f32.xlu2 %v2296_v59 }
 0x1ea   : > { %v1369_v60 = vpop.xlane.xlu0 %1368 }
 0x1eb   : > { %v1372_v61 = vsub.f32 %v1364_v14, %v1369_v60 }
 0x1ed   : > { %v1374_v62 = vmul.f32 1.442695, %v1372_v61 }
 0x1ef   : > { %3579 = vpow2.f32 %v1374_v62 }
 0x1f2   : > { %v1371_v63 = vpop.xlane.xlu0 %1370 }
 0x1f3   : > { %v1373_v0 = vsub.f32 %v1366_v19, %v1371_v63 }
 0x1f5   : > { %v3580_v1 = vpop.eup %3579  ;;  %v1376_v2 = vmul.f32 1.442695, %v1373_v0 }
 0x1f6   : > { %1378 = vadd.xlane.f32.xlu0 %v3580_v1 }
 0x1f7   : > { %3581 = vpow2.f32 %v1376_v2 }
 0x1f9   : > { %v1585_v3 = vpop.xlane.xlu1 %1584 }
 0x1fa   : > { %v1588_v4 = vsub.f32 %v1580_v23, %v1585_v3 }
 0x1fc   : > { %v1590_v5 = vmul.f32 1.442695, %v1588_v4 }
 0x1fd   : > { %v4099_v6 = vpop.eup %3581 }
 0x1fe   : > { %3583 = vpow2.f32 %v1590_v5  ;;  %1380 = vadd.xlane.f32.xlu1 %v4099_v6 }
 0x201   : > { %v1587_v7 = vpop.xlane.xlu1 %1586 }
 0x202   : > { %v1589_v8 = vsub.f32 %v1582_v27, %v1587_v7 }
 0x204   : > { %v4102_v9 = vpop.eup %3583  ;;  %v1592_v10 = vmul.f32 1.442695, %v1589_v8 }
 0x205   : > { %1594 = vadd.xlane.f32.xlu2 %v4102_v9 }
 0x206   : > { %3585 = vpow2.f32 %v1592_v10 }
 0x20c   : > { %v4105_v12 = vpop.eup %3585 }
 0x20d   : > { %1596 = vadd.xlane.f32.xlu0 %v4105_v12 }
 0x238   : > { %v2299_v13 = vpop.xlane.xlu2 %2298 }
 0x239   : > { %v2302_v14 = vsub.f32 %v2294_v11, %v2299_v13 }
 0x23b   : > { %v2304_v15 = vmul.f32 1.442695, %v2302_v14 }
 0x23d   : > { %3587 = vpow2.f32 %v2304_v15 }
 0x240   : > { %v2301_v16 = vpop.xlane.xlu2 %2300 }
 0x241   : > { %v2303_v17 = vsub.f32 %v2296_v59, %v2301_v16 }
 0x243   : > { %v4108_v18 = vpop.eup %3587  ;;  %v2306_v19 = vmul.f32 1.442695, %v2303_v17 }
 0x244   : > { %2308 = vadd.xlane.f32.xlu1 %v4108_v18 }
 0x245   : > { %3589 = vpow2.f32 %v2306_v19 }
 0x24b   : > { %v4111_v20 = vpop.eup %3589 }
 0x24c   : > { %2310 = vadd.xlane.f32.xlu2 %v4111_v20 }
 0x269   : > { %v1379_v21 = vpop.xlane.xlu0 %1378 }
 0x26a   : > { %3591 = vrcp.f32 %v1379_v21  ;;  %v1393_v26 = vand.u32 2147483648, %v1379_v21  ;;  %v1391_v28 = vand.u32 2147483647, %v1379_v21  ;;  %vm1387_vm1 = vweird.f32 %v1379_v21 }
 0x26c   : > { %v1394_v32 = vor.u32 1.1754944e-38, %v1393_v26  ;;  %vm1392_vm3 = vcmp.eq.f32.partialorder %v1391_v28, 8.507059e+37 }
 0x270   : > { %v3592_v22 = vpop.eup %3591 }
 0x271   : > { %v1383_v23 = vmul.f32 %v3592_v22, %v1379_v21  ;;  %v1381_v24 = vpop.xlane.xlu1 %1380  ;;  %vm1388_vm0 = vweird.f32 %v3592_v22 }
 0x272   : > { %3593 = vrcp.f32 %v1381_v24  ;;  %vm1389_vm2 = vmor %vm1387_vm1, %vm1388_vm0  ;;  %v1408_v38 = vand.u32 2147483648, %v1381_v24  ;;  %v1406_v42 = vand.u32 2147483647, %v1381_v24  ;;  %vm1402_vm5 = vweird.f32 %v1381_v24 }
 0x273   : > { %v1384_v25 = vsub.f32 1.0, %v1383_v23 }
 0x274   : > { %v1409_v46 = vor.u32 1.1754944e-38, %v1408_v38  ;;  %vm1407_vm7 = vcmp.eq.f32.partialorder %v1406_v42, 8.507059e+37 }
 0x275   : > { %v1385_v27 = vmul.f32 %v3592_v22, %v1384_v25 }
 0x277   : > { %v1386_v30 = vadd.f32 %v3592_v22, %v1385_v27 }
 0x278   : > { %v1595_v29 = vpop.xlane.xlu2 %1594  ;;  %v3594_v31 = vpop.eup %3593 }
 0x279   : > { %3595 = vrcp.f32 %v1595_v29  ;;  %v1390_v33 = vsel %vm1389_vm2, %v3592_v22, %v1386_v30  ;;  %v1398_v34 = vmul.f32 %v3594_v31, %v1381_v24  ;;  %vm1403_vm4 = vweird.f32 %v3594_v31 }
 0x27a   : > { %v1395_v35 = vsel %vm1392_vm3, %v1394_v32, %v1390_v33  ;;  %vm1404_vm6 = vmor %vm1402_vm5, %vm1403_vm4  ;;  %v1609_v49 = vand.u32 2147483648, %v1595_v29  ;;  %v1607_v51 = vand.u32 2147483647, %v1595_v29  ;;  %vm1603_vm9 = vweird.f32 %v1595_v29 }
 0x27b   : > { %v1396_v36 = vmul.f32 %v3580_v1, %v1395_v35  ;;  %v1399_v37 = vsub.f32 1.0, %v1398_v34 }
 0x27c   : > { %v1610_v54 = vor.u32 1.1754944e-38, %v1609_v49  ;;  %vm1608_vm11 = vcmp.eq.f32.partialorder %v1607_v51, 8.507059e+37 }
 0x27d   : > { %1412 = vst [vmem:[%s4115_s18] sm:$0xff] %v1396_v36  ;;  %v1400_v40 = vmul.f32 %v3594_v31, %v1399_v37 }
 0x27f   : > { %v3596_v39 = vpop.eup %3595  ;;  %v1401_v45 = vadd.f32 %v3594_v31, %v1400_v40 }
 0x280   : > { %v1599_v43 = vmul.f32 %v3596_v39, %v1595_v29  ;;  %v1597_v44 = vpop.xlane.xlu0 %1596  ;;  %vm1604_vm8 = vweird.f32 %v3596_v39 }
 0x281   : > { %3597 = vrcp.f32 %v1597_v44  ;;  %v1405_v48 = vsel %vm1404_vm6, %v3594_v31, %v1401_v45  ;;  %vm1605_vm10 = vmor %vm1603_vm9, %vm1604_vm8  ;;  %v1624_v60 = vand.u32 2147483648, %v1597_v44  ;;  %v1622_v62 = vand.u32 2147483647, %v1597_v44 }
 0x282   : > { %v1600_v47 = vsub.f32 1.0, %v1599_v43  ;;  %v1410_v41 = vsel %vm1407_vm7, %v1409_v46, %v1405_v48  ;;  %vm1618_vm13 = vweird.f32 %v1597_v44 }
 0x283   : > { %v1411_v52 = vmul.f32 %v4099_v6, %v1410_v41  ;;  %v1625_v0 = vor.u32 1.1754944e-38, %v1624_v60  ;;  %vm1623_vm15 = vcmp.eq.f32.partialorder %v1622_v62, 8.507059e+37 }
 0x284   : > { %v1601_v50 = vmul.f32 %v3596_v39, %v1600_v47 }
 0x285   : > { %1413 = vst [vmem:[%s4115_s18 + $0x18] sm:$0xff] %v1411_v52 }
 0x286   : > { %v1602_v53 = vadd.f32 %v3596_v39, %v1601_v50 }
 0x287   : > { %v3598_v11 = vpop.eup %3597 }
 0x288   : > { %v1606_v55 = vsel %vm1605_vm10, %v3596_v39, %v1602_v53  ;;  %v1614_v56 = vmul.f32 %v3598_v11, %v1597_v44  ;;  %vm1619_vm12 = vweird.f32 %v3598_v11 }
 0x289   : > { %v1611_v57 = vsel %vm1608_vm11, %v1610_v54, %v1606_v55  ;;  %vm1620_vm14 = vmor %vm1618_vm13, %vm1619_vm12 }
 0x28a   : > { %v1612_v58 = vmul.f32 %v4102_v9, %v1611_v57  ;;  %v1615_v59 = vsub.f32 1.0, %v1614_v56 }
 0x28c   : > { %1628 = vst [vmem:[%s4115_s18 + $0x8] sm:$0xff] %v1612_v58  ;;  %v1616_v61 = vmul.f32 %v3598_v11, %v1615_v59 }
 0x28e   : > { %v1617_v63 = vadd.f32 %v3598_v11, %v1616_v61 }
 0x290   : > { %v1621_v1 = vsel %vm1620_vm14, %v3598_v11, %v1617_v63 }
 0x291   : > { %v1626_v2 = vsel %vm1623_vm15, %v1625_v0, %v1621_v1 }
 0x292   : > { %v1627_v3 = vmul.f32 %v4105_v12, %v1626_v2 }
 0x294   : > { %1629 = vst [vmem:[%s4115_s18 + $0x20] sm:$0xff] %v1627_v3 }
 0x2b7   : > { %v2309_v4 = vpop.xlane.xlu1 %2308 }
 0x2b8   : > { %3599 = vrcp.f32 %v2309_v4  ;;  %v2323_v9 = vand.u32 2147483648, %v2309_v4  ;;  %v2321_v13 = vand.u32 2147483647, %v2309_v4  ;;  %vm2317_vm1 = vweird.f32 %v2309_v4 }
 0x2ba   : > { %v2324_v16 = vor.u32 1.1754944e-38, %v2323_v9  ;;  %vm2322_vm3 = vcmp.eq.f32.partialorder %v2321_v13, 8.507059e+37 }
 0x2be   : > { %v3600_v5 = vpop.eup %3599 }
 0x2bf   : > { %v2313_v6 = vmul.f32 %v3600_v5, %v2309_v4  ;;  %v2311_v7 = vpop.xlane.xlu2 %2310  ;;  %vm2318_vm0 = vweird.f32 %v3600_v5 }
 0x2c0   : > { %3601 = vrcp.f32 %v2311_v7  ;;  %vm2319_vm2 = vmor %vm2317_vm1, %vm2318_vm0  ;;  %v2338_v23 = vand.u32 2147483648, %v2311_v7  ;;  %v2336_v25 = vand.u32 2147483647, %v2311_v7  ;;  %vm2332_vm5 = vweird.f32 %v2311_v7 }
 0x2c1   : > { %v2314_v8 = vsub.f32 1.0, %v2313_v6 }
 0x2c2   : > { %v2339_v27 = vor.u32 1.1754944e-38, %v2338_v23  ;;  %vm2337_vm7 = vcmp.eq.f32.partialorder %v2336_v25, 8.507059e+37 }
 0x2c3   : > { %v2315_v10 = vmul.f32 %v3600_v5, %v2314_v8 }
 0x2c5   : > { %v2316_v14 = vadd.f32 %v3600_v5, %v2315_v10 }
 0x2c6   : > { %v3602_v15 = vpop.eup %3601 }
 0x2c7   : > { %v2320_v12 = vsel %vm2319_vm2, %v3600_v5, %v2316_v14  ;;  %v2328_v17 = vmul.f32 %v3602_v15, %v2311_v7  ;;  %vm2333_vm4 = vweird.f32 %v3602_v15 }
 0x2c8   : > { %v2325_v19 = vsel %vm2322_vm3, %v2324_v16, %v2320_v12  ;;  %vm2334_vm6 = vmor %vm2332_vm5, %vm2333_vm4 }
 0x2c9   : > { %v2326_v21 = vmul.f32 %v4108_v18, %v2325_v19  ;;  %v2329_v22 = vsub.f32 1.0, %v2328_v17 }
 0x2cb   : > { %2342 = vst [vmem:[%s4115_s18 + $0x10] sm:$0xff] %v2326_v21  ;;  %v2330_v24 = vmul.f32 %v3602_v15, %v2329_v22 }
 0x2cd   : > { %v2331_v26 = vadd.f32 %v3602_v15, %v2330_v24 }
 0x2cf   : > { %v2335_v18 = vsel %vm2334_vm6, %v3602_v15, %v2331_v26 }
 0x2d0   : > { %v2340_v28 = vsel %vm2337_vm7, %v2339_v27, %v2335_v18 }
 0x2d1   : > { %v2341_v29 = vmul.f32 %v4111_v20, %v2340_v28 }
 0x2d3   : > { %2343 = vst [vmem:[%s4115_s18 + $0x28] sm:$0xff] %v2341_v29 }
 0x2d4   : > { %3810 = shalt.err (!%p3807_p9)
}
 0x2d5   : > { %s3872_s16 = smov 384   ;;  %s3873_s18 = smov 24  }
 0x2d6   : > { %3495 = dma.vmem_to_hbm [thread:$0]  (%p4009_p13), %s2359_s8, 768, %s2361_s1, %s2345_s17, %s3872_s16, %s3872_s16, %s3873_s18  }
 0x2d7 PF: > { %s2375_s19 = sand.u32 1, %s3849_s24   ;;  %p4182_p10 = scmp.ge.s32.totalorder %s3861_s27, 2 }
 0x2d8   : > { %s2376_s12 = scalar_lea.sflag [#allocation4], %s2375_s19 }
 0x2d9   : > { %p3518_p11 = pnand %p4182_p10, %p4014_p4 }
 0x2db   : > { %p3519_p0 = pneg %p3518_p11 }
 0x2dd   : > { %3844 = dma.done.wait (%p3519_p0), %s2376_s12, 768  }
 0x2de   : > { %3846 = vsyncadd (%p3519_p0), %s2376_s12, 4294966528  ;;  %p23_p2 = scmp.ge.s32.totalorder %s3989_s28, 4   ;;  %s4183_s24 = smov %s3853_s25 }
 0x2df   : > { %s4184_s25 = smov %s3857_s26  ;;  %s4185_s26 = smov %s4001_s30 }
 0x2e0   : > { %s4186_s27 = smov %s3989_s28  ;;  %25 = sbr.rel (!%p23_p2) target bundleno = 10 (0xa), region = 113 }
 0x2e5   :  { %2382 = vsyncpa [#allocation3], 1 }
 0x2e6   :  { %2384 = vsyncpa [#allocation3 + $0x1], 1 }
 0x2e7   :  { %2385 = vsyncpa [#allocation6], 1 }
 0x2e8   :  { %2386 = vsyncpa [#allocation9], 1 }
 0x2e9   :  { %2387 = vsyncpa [#allocation12], 1 }
 0x2ea   :  { %2388 = vsyncpa [#allocation4], 1 }
 0x2eb   :  { %2390 = vsyncpa [#allocation4 + $0x1], 1 }

// kernel: tpu_custom_call.1
= control target key start
LH: loop header
LB: loop body
LE: loop exit
PB: predicated region body
PF: predicated region fallthrough
CT: control target
= control target key end

     0   :  { %s4162_s0 = inlined_call_operand.hbm [shape: bf16[32,128], index: 0, kind: input, shape index: {}]   ;;  %s4163_s1 = inlined_call_operand.hbm [shape: bf16[128,1536], index: 1, kind: input, shape index: {}]   ;;  %s4164_s2 = inlined_call_operand.hbm [shape: f32[1,1536], index: 2, kind: input, shape index: {}]   ;;  %s4165_s3 = inlined_call_operand.hbm [shape: bf16[256,128], index: 3, kind: input, shape index: {}]   ;;  %s4166_s4 = inlined_call_operand.hbm [shape: bf16[256,128], index: 4, kind: input, shape index: {}]   ;;  %s4167_s5 = inlined_call_operand.hbm [shape: bf16[1024,128], index: 5, kind: input, shape index: {}]   ;;  %s4168_s6 = inlined_call_operand.vmem [shape: f32[1,384], index: 6, kind: input, shape index: {}]   ;;  %s4169_s7 = inlined_call_operand.hbm [shape: f32[32,384], index: 7, kind: output, shape index: {}]  }
   0x1   :  { %4172 = sst [smem:[#allocation19_spill]] %s4163_s1 }
   0x2   :  { %12 = vsyncpa [#allocation3], 0 }
   0x3   :  { %14 = vsyncpa [#allocation3 + $0x1], 0 }
   0x4   :  { %15 = vsyncpa [#allocation6], 0 }
   0x5   :  { %16 = vsyncpa [#allocation9], 0 }
   0x6   :  { %17 = vsyncpa [#allocation12], 0 }
   0x7   :  { %18 = vsyncpa [#allocation4], 0 }
   0x8   :  { %20 = vsyncpa [#allocation4 + $0x1], 0  ;;  %s3914_s24 = smov 0   ;;  %s3916_s25 = smov 0  }
   0x9   :  { %s3918_s26 = smov 0   ;;  %s3920_s27 = smov 0  }
   0xa LB: > { %s4173_s1 = sld [smem:[#allocation19_spill]]  ;;  %s3938_s8 = sadd.s32 4294967295, %s3861_s27   ;;  %s3861_s27 = sphi %s3920_s27, %s4186_s27   ;;  %s3857_s26 = sphi %s3918_s26, %s4185_s26   ;;  %s3853_s25 = sphi %s3916_s25, %s4184_s25   ;;  %s3849_s24 = sphi %s3914_s24, %s4183_s24  }
   0xb   : > { %p2483_p0 = scmp.ge.s32.totalorder %s3861_s27, 1  ;;  %p47_p1 = scmp.eq.s32.totalorder %s3938_s8, 0 }
   0xc   : > { %p209_p2 = scmp.lt.s32.totalorder %s3861_s27, 3  ;;  %s3863_s10 = smov [#allocation5]  }
   0xd   : > { %s222_s11 = sshll.u32 %s3863_s10, 4  ;;  %s246_s14 = sshll.u32 %s4165_s3, 4  ;;  %s223_s11 = int_to_ptr.vmem [resolvable:$true] %s222_s11  ;;  %s247_s14 = int_to_ptr.hbm [resolvable:$true] %s246_s14 }
   0xe   : > { %p3943_p3 = pnand %p2483_p0, %p209_p2  ;;  %s3864_s16 = smov [#allocation8]  }
   0xf   : > { %s248_s17 = sshll.u32 %s3864_s16, 4  ;;  %s3865_s18 = smov 768   ;;  %s249_s17 = int_to_ptr.vmem [resolvable:$true] %s248_s17 }
  0x10   : > { %s220_s30 = sshll.u32 %s4173_s1, 4  ;;  %p3497_p4 = pneg %p3943_p3  ;;  %s221_s30 = int_to_ptr.hbm [resolvable:$true] %s220_s30 }
  0x11   : > { %s3866_s19 = smov 48   ;;  %s4170_s20 = smov 64  }
  0x12   : > { %p3955_p6 = pnand %p3497_p4, %p47_p1  ;;  %s4171_s21 = smov 4  }
  0x13   : > { %s235_s28 = sshll.u32 %s4164_s2, 4  ;;  %s3869_s29 = smov [#allocation7]   ;;  %s236_s28 = int_to_ptr.hbm [resolvable:$true] %s235_s28 }
  0x14   : > { %3500 = dma.hbm_to_vmem [thread:$0]  (!%p3955_p6), %s221_s30, 12288, %s223_s11, [#allocation6], %s3865_s18, %s3865_s18, %s3866_s19  }
  0x15   : > { %3506 = dma.hbm_to_vmem [thread:$0]  (!%p3955_p6), %s247_s14, 2048, %s249_s17, [#allocation9], %s4170_s20, %s4170_s20, %s4171_s21  }
  0x16   : > { %s237_s10 = sshll.u32 %s3869_s29, 4  ;;  %s260_s12 = sshll.u32 %s4166_s4, 4  ;;  %s238_s10 = int_to_ptr.vmem [resolvable:$true] %s237_s10  ;;  %s261_s12 = int_to_ptr.hbm [resolvable:$true] %s260_s12 }
  0x17   : > { %3503 = dma.hbm_to_vmem [thread:$0]  (!%p3955_p6), %s236_s28, 192, %s238_s10, [#allocation6]  }
  0x18   : > { %s3870_s13 = smov [#allocation10]   ;;  %s274_s18 = sshll.u32 %s4167_s5, 4  ;;  %s275_s18 = int_to_ptr.hbm [resolvable:$true] %s274_s18 }
  0x19   : > { %s262_s14 = sshll.u32 %s3870_s13, 4  ;;  %s3871_s19 = smov [#allocation11]   ;;  %s263_s14 = int_to_ptr.vmem [resolvable:$true] %s262_s14 }
  0x1a   : > { %3509 = dma.hbm_to_vmem [thread:$0]  (!%p3955_p6), %s261_s12, 2048, %s263_s14, [#allocation9], %s4170_s20, %s4170_s20, %s4171_s21  }
  0x1b   : > { %s276_s22 = sshll.u32 %s3871_s19, 4  ;;  %s2482_s23 = sadd.s32 4294967294, %s3861_s27   ;;  %s277_s22 = int_to_ptr.vmem [resolvable:$true] %s276_s22 }
  0x1c   : > { %3512 = dma.hbm_to_vmem [thread:$0]  (!%p3955_p6), %s275_s18, 8192, %s277_s22, [#allocation12], %s4170_s20, %s4170_s20, %s4171_s21  }
  0x1d   : > { %s3989_s28 = sadd.s32 1, %s3861_s27   ;;  %s33_s29 = sadd.s32 1, %s3857_s26 }
  0x1e   : > { %s30_s10 = ssub.s32 %s3861_s27, %s3989_s28  ;;  %p40_p7 = scmp.ne.s32.totalorder %s3857_s26, %s3853_s25 }
  0x1f   : > { %p31_p8 = scmp.eq.s32.totalorder %s30_s10, 0  ;;  %p41_p9 = scmp.eq.s32.totalorder %s3861_s27, 0 }
  0x20   : > { %p46_p10 = scmp.ne.s32.totalorder %s3853_s25, %s3849_s24  ;;  %p196_p11 = scmp.eq.s32.totalorder %s3938_s8, 1 }
  0x21   : > { %s4001_s30 = scalar_select %p31_p8, %s3857_s26, %s33_s29  }
  0x22   : > { %p4005_p12 = por %p47_p1, %p46_p10  ;;  %p4009_p13 = por %p196_p11, %p40_p7 }
  0x23   : > { %p202_p0 = scmp.eq.s32.totalorder %s2482_s23, 1  ;;  %p42_p2 = por %p41_p9, %p40_p7 }
  0x24   : > { %s293_s12 = sand.u32 1, %s3857_s26   ;;  %p3526_p6 = scmp.lt.s32.totalorder %s3861_s27, 2 }
  0x25   : > { %p4014_p4 = por %p202_p0, %p46_p10  ;;  %s2490_s14 = sshll.u32 %s293_s12, 3 }
  0x26   : > { %s3277_s16 = sshll.u32 %s3861_s27, 3  ;;  %s297_s29 = scalar_lea.vmem [#allocation2], %s2490_s14 }
  0x27   : > { %s302_s19 = scalar_lea.hbm %s4162_s0, %s3277_s16  ;;  %s305_s10 = sshll.u32 %s297_s29, 4  ;;  %s306_s10 = int_to_ptr.vmem [resolvable:$true] %s305_s10 }
  0x28   : > { %s303_s22 = sshll.u32 %s302_s19, 4  ;;  %p4023_p8 = pnand %p3526_p6, %p42_p2  ;;  %s304_s22 = int_to_ptr.hbm [resolvable:$true] %s303_s22 }
  0x29   : > { %s294_s20 = scalar_lea.sflag [#allocation3], %s293_s12  ;;  %s3753_s21 = sshra.s32 %s304_s22, 4  ;;  %s3754_s21 = int_to_ptr.hbm [resolvable:$true] %s3753_s21 }
  0x2a   : > { %s3755_s1 = scalar_lea.hbm %s3754_s21, 8  ;;  %p3757_p9 = pneg %p4023_p8 }
  0x2b   : > { %p3756_p7 = scmp.ne.s32.totalorder %s3754_s21, %s3755_s1  ;;  %s3760_s14 = scalar_lea.hbm %s4162_s0, 16 }
  0x2c   : > { %p3761_p0 = scmp.lt.s32.totalorder %s3754_s21, %s4162_s0  ;;  %p3762_p2 = scmp.lt.s32.totalorder %s3760_s14, %s3755_s1 }
  0x2d   : > { %p3758_p10 = pnand %p3757_p9, %p3756_p7 }
  0x2e   : > { %p3763_p6 = por %p3762_p2, %p3761_p0 }
  0x2f   : > { %p3759_p11 = pneg %p3758_p10 }
  0x31   : > { %p3764_p5 = pnand %p3763_p6, %p3759_p11 }
  0x33   : > { %3767 = shalt.err (!%p3764_p5)
}
  0x34   : > { %s4180_s12 = smov 4   ;;  %s4181_s29 = smov 64  }
  0x35   : > { %3516 = dma.hbm_to_vmem [thread:$0]  (!%p4023_p8), %s304_s22, 128, %s306_s10, %s294_s20, %s4181_s29, %s4181_s29, %s4180_s12  }
  0x36   : > { %317 = sbr.rel (%p3943_p3) target bundleno = 727 (0x2d7), region = 48  ;;  %s4043_s16 = sand.u32 (!%p3943_p3), 1, %s3853_s25  }
  0x37   : > { %s2494_s21 = sshll.u32 (!%p3943_p3), %s4043_s16, 3  ;;  %s320_s1 = scalar_lea.sflag (!%p3943_p3), [#allocation3], %s4043_s16 }
  0x38   : > { %s4047_s17 = scalar_lea.vmem (!%p3943_p3), [#allocation2], %s2494_s21 }
  0x3b   : > { %3828 = dma.done.wait (%p4005_p12), %s320_s1, 128  }
  0x3c   : > { %3830 = vsyncadd (%p4005_p12), %s320_s1, 4294967168 }
  0x3d   : > { %3832 = dma.done.wait (%p47_p1), [#allocation6], 12480  }
  0x3e   : > { %3834 = vsyncadd (%p47_p1), [#allocation6], 4294954816 }
  0x3f   : > { %3836 = dma.done.wait (%p47_p1), [#allocation9], 4096  }
  0x40   : > { %3838 = vsyncadd (%p47_p1), [#allocation9], 4294963200 }
  0x41   : > { %3840 = dma.done.wait (%p47_p1), [#allocation12], 8192  }
  0x42   : > { %3842 = vsyncadd (%p47_p1), [#allocation12], 4294959104  ;;  %v2842_v0 = vld [vmem:[#allocation5 + $0x2a0] sm:$0xf]  ;;  %v3369_v1 = vld [vmem:[#allocation5 + $0x2cc] sm:$0xf0] }
  0x43   : > { %v3363_v2 = vld [vmem:[#allocation5 + $0x2a4] sm:$0xf]  ;;  %v2843_v3 = vor.u32 %v3369_v1, %v2842_v0  ;;  %v2844_v4 = vld [vmem:[#allocation5 + $0x2d0] sm:$0xf0]  ;;  %v2850_v5 = vld [vmem:[#allocation5 + $0x2a8] sm:$0xf] }
  0x44   : > { %v3370_v6 = vld [vmem:[#allocation5 + $0x2d4] sm:$0xf0]  ;;  %v2847_v7 = vor.u32 %v3363_v2, %v2844_v4  ;;  %v3364_v9 = vld [vmem:[#allocation5 + $0x2ac] sm:$0xf]  ;;  %v2852_v10 = vld [vmem:[#allocation5 + $0x2d8] sm:$0xf0] }
  0x45   : > { %v2851_v8 = vor.u32 %v3370_v6, %v2850_v5  ;;  %v2794_v11 = vld [vmem:[#allocation5 + $0x240] sm:$0xf]  ;;  %994 = vmatpush.bf16.msra.mxu0 %v2843_v3  ;;  %v2855_v12 = vor.u32 %v3364_v9, %v2852_v10  ;;  %v3357_v13 = vld [vmem:[#allocation5 + $0x26c] sm:$0xf0]  ;;  %v3351_v14 = vld [vmem:[#allocation5 + $0x244] sm:$0xf] }
  0x46   : > { %v2796_v15 = vld [vmem:[#allocation5 + $0x270] sm:$0xf0]  ;;  %1008 = vmatpush.bf16.msra.mxu1 %v2847_v7  ;;  %v2795_v16 = vor.u32 %v3357_v13, %v2794_v11  ;;  %v2802_v18 = vld [vmem:[#allocation5 + $0x248] sm:$0xf]  ;;  %v3358_v19 = vld [vmem:[#allocation5 + $0x274] sm:$0xf0] }
  0x47   : > { %1022 = vmatpush.bf16.msra.mxu2 %v2851_v8  ;;  %v2799_v17 = vor.u32 %v3351_v14, %v2796_v15  ;;  %v3352_v20 = vld [vmem:[#allocation5 + $0x24c] sm:$0xf]  ;;  %1036 = vmatpush.bf16.msra.mxu3 %v2855_v12  ;;  %v2803_v21 = vor.u32 %v3358_v19, %v2802_v18  ;;  %v2804_v22 = vld [vmem:[#allocation5 + $0x278] sm:$0xf0]  ;;  %v2746_v23 = vld [vmem:[#allocation5 + $0x1e0] sm:$0xf] }
  0x48   : > { %v3345_v24 = vld [vmem:[#allocation5 + $0x20c] sm:$0xf0]  ;;  %v2807_v25 = vor.u32 %v3352_v20, %v2804_v22  ;;  %v3339_v26 = vld [vmem:[#allocation5 + $0x1e4] sm:$0xf]  ;;  %v2748_v27 = vld [vmem:[#allocation5 + $0x210] sm:$0xf0] }
  0x49   : > { %v2754_v28 = vld [vmem:[#allocation5 + $0x1e8] sm:$0xf]  ;;  %995 = vmatpush.bf16.msra.mxu0 %v2795_v16  ;;  %v2747_v29 = vor.u32 %v3345_v24, %v2746_v23  ;;  %v3346_v30 = vld [vmem:[#allocation5 + $0x214] sm:$0xf0]  ;;  %v3340_v31 = vld [vmem:[#allocation5 + $0x1ec] sm:$0xf]  ;;  %v2751_v33 = vor.u32 %v3339_v26, %v2748_v27 }
  0x4a   : > { %v2756_v32 = vld [vmem:[#allocation5 + $0x218] sm:$0xf0]  ;;  %1009 = vmatpush.bf16.msra.mxu1 %v2799_v17  ;;  %v2755_v34 = vor.u32 %v3346_v30, %v2754_v28  ;;  %v2698_v35 = vld [vmem:[#allocation5 + $0x180] sm:$0xf]  ;;  %v3333_v36 = vld [vmem:[#allocation5 + $0x1ac] sm:$0xf0] }
  0x4b   : > { %1023 = vmatpush.bf16.msra.mxu2 %v2803_v21  ;;  %v3327_v37 = vld [vmem:[#allocation5 + $0x184] sm:$0xf]  ;;  %1037 = vmatpush.bf16.msra.mxu3 %v2807_v25  ;;  %v2759_v38 = vor.u32 %v3340_v31, %v2756_v32  ;;  %v2700_v39 = vld [vmem:[#allocation5 + $0x1b0] sm:$0xf0]  ;;  %v2706_v40 = vld [vmem:[#allocation5 + $0x188] sm:$0xf]  ;;  %v2699_v44 = vor.u32 %v3333_v36, %v2698_v35 }
  0x4c   : > { %v3334_v41 = vld [vmem:[#allocation5 + $0x1b4] sm:$0xf0]  ;;  %v3328_v42 = vld [vmem:[#allocation5 + $0x18c] sm:$0xf]  ;;  %v2708_v43 = vld [vmem:[#allocation5 + $0x1b8] sm:$0xf0]  ;;  %v2703_v45 = vor.u32 %v3327_v37, %v2700_v39 }
  0x4d   : > { %996 = vmatpush.bf16.msra.mxu0 %v2747_v29  ;;  %v2707_v46 = vor.u32 %v3334_v41, %v2706_v40  ;;  %v2650_v47 = vld [vmem:[#allocation5 + $0x120] sm:$0xf]  ;;  %v3321_v48 = vld [vmem:[#allocation5 + $0x14c] sm:$0xf0]  ;;  %v3315_v49 = vld [vmem:[#allocation5 + $0x124] sm:$0xf]  ;;  %v2711_v50 = vor.u32 %v3328_v42, %v2708_v43 }
  0x4e   : > { %1010 = vmatpush.bf16.msra.mxu1 %v2751_v33  ;;  %v2652_v51 = vld [vmem:[#allocation5 + $0x150] sm:$0xf0]  ;;  %v2658_v52 = vld [vmem:[#allocation5 + $0x128] sm:$0xf]  ;;  %v3322_v53 = vld [vmem:[#allocation5 + $0x154] sm:$0xf0]  ;;  %v2651_v56 = vor.u32 %v3321_v48, %v2650_v47 }
  0x4f   : > { %1024 = vmatpush.bf16.msra.mxu2 %v2755_v34  ;;  %1038 = vmatpush.bf16.msra.mxu3 %v2759_v38  ;;  %v3316_v54 = vld [vmem:[#allocation5 + $0x12c] sm:$0xf]  ;;  %v2660_v55 = vld [vmem:[#allocation5 + $0x158] sm:$0xf0]  ;;  %v2655_v57 = vor.u32 %v3315_v49, %v2652_v51  ;;  %v2659_v58 = vor.u32 %v3322_v53, %v2658_v52  ;;  %v2602_v59 = vld [vmem:[#allocation5 + $0xc0] sm:$0xf] }
  0x50   : > { %v3309_v60 = vld [vmem:[#allocation5 + $0xec] sm:$0xf0]  ;;  %v3303_v61 = vld [vmem:[#allocation5 + $0xc4] sm:$0xf]  ;;  %v2663_v62 = vor.u32 %v3316_v54, %v2660_v55  ;;  %v2604_v63 = vld [vmem:[#allocation5 + $0xf0] sm:$0xf0] }
  0x51   : > { %997 = vmatpush.bf16.msra.mxu0 %v2699_v44  ;;  %v2610_v0 = vld [vmem:[#allocation5 + $0xc8] sm:$0xf]  ;;  %v3310_v1 = vld [vmem:[#allocation5 + $0xf4] sm:$0xf0]  ;;  %v3304_v2 = vld [vmem:[#allocation5 + $0xcc] sm:$0xf]  ;;  %v2603_v4 = vor.u32 %v3309_v60, %v2602_v59  ;;  %v2607_v5 = vor.u32 %v3303_v61, %v2604_v63 }
  0x52   : > { %1011 = vmatpush.bf16.msra.mxu1 %v2703_v45  ;;  %v2612_v3 = vld [vmem:[#allocation5 + $0xf8] sm:$0xf0]  ;;  %v2611_v6 = vor.u32 %v3310_v1, %v2610_v0  ;;  %v2554_v7 = vld [vmem:[#allocation5 + $0x60] sm:$0xf]  ;;  %v3297_v8 = vld [vmem:[#allocation5 + $0x8c] sm:$0xf0] }
  0x53   : > { %1025 = vmatpush.bf16.msra.mxu2 %v2707_v46  ;;  %1039 = vmatpush.bf16.msra.mxu3 %v2711_v50  ;;  %v3291_v9 = vld [vmem:[#allocation5 + $0x64] sm:$0xf]  ;;  %v2615_v10 = vor.u32 %v3304_v2, %v2612_v3  ;;  %v2556_v11 = vld [vmem:[#allocation5 + $0x90] sm:$0xf0]  ;;  %v2562_v12 = vld [vmem:[#allocation5 + $0x68] sm:$0xf]  ;;  %v2555_v16 = vor.u32 %v3297_v8, %v2554_v7 }
  0x54   : > { %v3298_v13 = vld [vmem:[#allocation5 + $0x94] sm:$0xf0]  ;;  %v3292_v14 = vld [vmem:[#allocation5 + $0x6c] sm:$0xf]  ;;  %v2564_v15 = vld [vmem:[#allocation5 + $0x98] sm:$0xf0]  ;;  %v2559_v19 = vor.u32 %v3291_v9, %v2556_v11 }
  0x55   : > { %998 = vmatpush.bf16.msra.mxu0 %v2651_v56  ;;  %v2506_v17 = vld [vmem:[#allocation5] sm:$0xf]  ;;  %v3285_v18 = vld [vmem:[#allocation5 + $0x2c] sm:$0xf0]  ;;  %v2563_v20 = vor.u32 %v3298_v13, %v2562_v12  ;;  %v3279_v21 = vld [vmem:[#allocation5 + $0x4] sm:$0xf]  ;;  %v2567_v24 = vor.u32 %v3292_v14, %v2564_v15 }
  0x56   : > { %1012 = vmatpush.bf16.msra.mxu1 %v2655_v57  ;;  %v2508_v22 = vld [vmem:[#allocation5 + $0x30] sm:$0xf0]  ;;  %v2514_v23 = vld [vmem:[#allocation5 + $0x8] sm:$0xf]  ;;  %v3286_v25 = vld [vmem:[#allocation5 + $0x34] sm:$0xf0]  ;;  %v2507_v31 = vor.u32 %v3285_v18, %v2506_v17 }
  0x57   : > { %1026 = vmatpush.bf16.msra.mxu2 %v2659_v58  ;;  %1040 = vmatpush.bf16.msra.mxu3 %v2663_v62  ;;  %v3280_v26 = vld [vmem:[#allocation5 + $0xc] sm:$0xf]  ;;  %v2516_v27 = vld [vmem:[#allocation5 + $0x38] sm:$0xf0]  ;;  %v2858_v28 = vld [vmem:[#allocation5 + $0x2b0] sm:$0xf]  ;;  %v2511_v35 = vor.u32 %v3279_v21, %v2508_v22  ;;  %v2515_v36 = vor.u32 %v3286_v25, %v2514_v23 }
  0x58   : > { %v3371_v29 = vld [vmem:[#allocation5 + $0x2dc] sm:$0xf0]  ;;  %v3365_v30 = vld [vmem:[#allocation5 + $0x2b4] sm:$0xf]  ;;  %v2860_v32 = vld [vmem:[#allocation5 + $0x2e0] sm:$0xf0]  ;;  %v2519_v39 = vor.u32 %v3280_v26, %v2516_v27 }
  0x59   : > { %999 = vmatpush.bf16.msra.mxu0 %v2603_v4  ;;  %v2866_v33 = vld [vmem:[#allocation5 + $0x2b8] sm:$0xf]  ;;  %v3372_v34 = vld [vmem:[#allocation5 + $0x2e4] sm:$0xf0]  ;;  %v3366_v37 = vld [vmem:[#allocation5 + $0x2bc] sm:$0xf]  ;;  %v2859_v40 = vor.u32 %v3371_v29, %v2858_v28  ;;  %v2863_v42 = vor.u32 %v3365_v30, %v2860_v32 }
  0x5a   : > { %1013 = vmatpush.bf16.msra.mxu1 %v2607_v5  ;;  %v2868_v38 = vld [vmem:[#allocation5 + $0x2e8] sm:$0xf0]  ;;  %v4066_v41 = vld [vmem:[%s4047_s17] sm:$0xff]  ;;  %v2867_v43 = vor.u32 %v3372_v34, %v2866_v33  ;;  %v3359_v45 = vld [vmem:[#allocation5 + $0x27c] sm:$0xf0]  ;;  %s3471_s14 = smul.u32 48, %s4043_s16 }
  0x5b   : > { %1027 = vmatpush.bf16.msra.mxu2 %v2611_v6  ;;  %1041 = vmatpush.bf16.msra.mxu3 %v2615_v10  ;;  %v2810_v44 = vld [vmem:[#allocation5 + $0x250] sm:$0xf]  ;;  %v3353_v46 = vld [vmem:[#allocation5 + $0x254] sm:$0xf]  ;;  %v2871_v47 = vor.u32 %v3366_v37, %v2868_v38  ;;  %v2812_v48 = vld [vmem:[#allocation5 + $0x280] sm:$0xf0] }
  0x5c   : > { %v2818_v49 = vld [vmem:[#allocation5 + $0x258] sm:$0xf]  ;;  %v3360_v50 = vld [vmem:[#allocation5 + $0x284] sm:$0xf0]  ;;  %v3354_v51 = vld [vmem:[#allocation5 + $0x25c] sm:$0xf]  ;;  %v2811_v53 = vor.u32 %v3359_v45, %v2810_v44  ;;  %v2815_v54 = vor.u32 %v3353_v46, %v2812_v48 }
  0x5d   : > { %1000 = vmatpush.bf16.msra.mxu0 %v2555_v16  ;;  %v2820_v52 = vld [vmem:[#allocation5 + $0x288] sm:$0xf0]  ;;  %v2819_v55 = vor.u32 %v3360_v50, %v2818_v49  ;;  %v2762_v56 = vld [vmem:[#allocation5 + $0x1f0] sm:$0xf]  ;;  %v3347_v57 = vld [vmem:[#allocation5 + $0x21c] sm:$0xf0] }
  0x5e   : > { %1014 = vmatpush.bf16.msra.mxu1 %v2559_v19  ;;  %v3341_v58 = vld [vmem:[#allocation5 + $0x1f4] sm:$0xf]  ;;  %v2823_v59 = vor.u32 %v3354_v51, %v2820_v52  ;;  %v2764_v60 = vld [vmem:[#allocation5 + $0x220] sm:$0xf0]  ;;  %v2770_v61 = vld [vmem:[#allocation5 + $0x1f8] sm:$0xf]  ;;  %v2763_v1 = vor.u32 %v3347_v57, %v2762_v56 }
  0x5f   : > { %1028 = vmatpush.bf16.msra.mxu2 %v2563_v20  ;;  %1042 = vmatpush.bf16.msra.mxu3 %v2567_v24  ;;  %v3348_v62 = vld [vmem:[#allocation5 + $0x224] sm:$0xf0]  ;;  %v3342_v63 = vld [vmem:[#allocation5 + $0x1fc] sm:$0xf]  ;;  %v2772_v0 = vld [vmem:[#allocation5 + $0x228] sm:$0xf0]  ;;  %v2767_v2 = vor.u32 %v3341_v58, %v2764_v60 }
  0x60   : > { %v2771_v3 = vor.u32 %v3348_v62, %v2770_v61  ;;  %v2714_v4 = vld [vmem:[#allocation5 + $0x190] sm:$0xf]  ;;  %v3335_v5 = vld [vmem:[#allocation5 + $0x1bc] sm:$0xf0]  ;;  %v3329_v6 = vld [vmem:[#allocation5 + $0x194] sm:$0xf]  ;;  %v2775_v7 = vor.u32 %v3342_v63, %v2772_v0 }
  0x61   : > { %1001 = vmatpush.bf16.msra.mxu0 %v2507_v31  ;;  %v2716_v8 = vld [vmem:[#allocation5 + $0x1c0] sm:$0xf0]  ;;  %v2722_v9 = vld [vmem:[#allocation5 + $0x198] sm:$0xf]  ;;  %v3336_v10 = vld [vmem:[#allocation5 + $0x1c4] sm:$0xf0]  ;;  %v2715_v13 = vor.u32 %v3335_v5, %v2714_v4 }
  0x62   : > { %1015 = vmatpush.bf16.msra.mxu1 %v2511_v35  ;;  %v3330_v11 = vld [vmem:[#allocation5 + $0x19c] sm:$0xf]  ;;  %v2724_v12 = vld [vmem:[#allocation5 + $0x1c8] sm:$0xf0]  ;;  %v2719_v14 = vor.u32 %v3329_v6, %v2716_v8  ;;  %v2723_v15 = vor.u32 %v3336_v10, %v2722_v9  ;;  %v2666_v16 = vld [vmem:[#allocation5 + $0x130] sm:$0xf] }
  0x63   : > { %1029 = vmatpush.bf16.msra.mxu2 %v2515_v36  ;;  %1043 = vmatpush.bf16.msra.mxu3 %v2519_v39  ;;  %v3323_v17 = vld [vmem:[#allocation5 + $0x15c] sm:$0xf0]  ;;  %v3317_v18 = vld [vmem:[#allocation5 + $0x134] sm:$0xf]  ;;  %v2727_v19 = vor.u32 %v3330_v11, %v2724_v12  ;;  %v2668_v20 = vld [vmem:[#allocation5 + $0x160] sm:$0xf0] }
  0x64   : > { %1002 = vmatmul.bf16.vlgmr.msra.gmra.mxu0 %v4066_v41  ;;  %v2674_v21 = vld [vmem:[#allocation5 + $0x138] sm:$0xf]  ;;  %v3324_v22 = vld [vmem:[#allocation5 + $0x164] sm:$0xf0]  ;;  %v3318_v23 = vld [vmem:[#allocation5 + $0x13c] sm:$0xf]  ;;  %v2667_v25 = vor.u32 %v3323_v17, %v2666_v16  ;;  %v2671_v26 = vor.u32 %v3317_v18, %v2668_v20 }
  0x65   : > { %1050 = vmatpush.bf16.msrb.mxu0 %v2859_v40  ;;  %1016 = vmatmul.bf16.vlgmr.msra.gmra.mxu1 %v4066_v41  ;;  %v2676_v24 = vld [vmem:[#allocation5 + $0x168] sm:$0xf0]  ;;  %v2675_v27 = vor.u32 %v3324_v22, %v2674_v21  ;;  %v2618_v28 = vld [vmem:[#allocation5 + $0xd0] sm:$0xf]  ;;  %v3311_v29 = vld [vmem:[#allocation5 + $0xfc] sm:$0xf0] }
  0x66   : > { %1064 = vmatpush.bf16.msrb.mxu1 %v2863_v42  ;;  %1030 = vmatmul.bf16.vlgmr.msra.gmra.mxu2 %v4066_v41  ;;  %v3305_v30 = vld [vmem:[#allocation5 + $0xd4] sm:$0xf]  ;;  %v2679_v31 = vor.u32 %v3318_v23, %v2676_v24  ;;  %v2620_v32 = vld [vmem:[#allocation5 + $0x100] sm:$0xf0]  ;;  %v2626_v33 = vld [vmem:[#allocation5 + $0xd8] sm:$0xf]  ;;  %v2619_v37 = vor.u32 %v3311_v29, %v2618_v28 }
  0x67   : > { %1078 = vmatpush.bf16.msrb.mxu2 %v2867_v43  ;;  %1092 = vmatpush.bf16.msrb.mxu3 %v2871_v47  ;;  %v3312_v34 = vld [vmem:[#allocation5 + $0x104] sm:$0xf0]  ;;  %v3306_v35 = vld [vmem:[#allocation5 + $0xdc] sm:$0xf]  ;;  %v2628_v36 = vld [vmem:[#allocation5 + $0x108] sm:$0xf0]  ;;  %v2623_v38 = vor.u32 %v3305_v30, %v2620_v32 }
  0x68   : > { %1044 = vmatmul.bf16.vlgmr.msra.gmra.mxu3 %v4066_v41  ;;  %v2627_v39 = vor.u32 %v3312_v34, %v2626_v33  ;;  %v2570_v40 = vld [vmem:[#allocation5 + $0x70] sm:$0xf]  ;;  %v3299_v42 = vld [vmem:[#allocation5 + $0x9c] sm:$0xf0]  ;;  %v3293_v43 = vld [vmem:[#allocation5 + $0x74] sm:$0xf]  ;;  %v2631_v44 = vor.u32 %v3306_v35, %v2628_v36 }
  0x69   : > { %1051 = vmatpush.bf16.msrb.mxu0 %v2811_v53  ;;  %v2572_v45 = vld [vmem:[#allocation5 + $0xa0] sm:$0xf0]  ;;  %v2578_v46 = vld [vmem:[#allocation5 + $0x78] sm:$0xf]  ;;  %v3300_v47 = vld [vmem:[#allocation5 + $0xa4] sm:$0xf0]  ;;  %v2571_v50 = vor.u32 %v3299_v42, %v2570_v40 }
  0x6a   : > { %1065 = vmatpush.bf16.msrb.mxu1 %v2815_v54  ;;  %v3294_v48 = vld [vmem:[#allocation5 + $0x7c] sm:$0xf]  ;;  %v2580_v49 = vld [vmem:[#allocation5 + $0xa8] sm:$0xf0]  ;;  %v2522_v51 = vld [vmem:[#allocation5 + $0x10] sm:$0xf]  ;;  %v2575_v53 = vor.u32 %v3293_v43, %v2572_v45  ;;  %v2579_v54 = vor.u32 %v3300_v47, %v2578_v46 }
  0x6b   : > { %1079 = vmatpush.bf16.msrb.mxu2 %v2819_v55  ;;  %1093 = vmatpush.bf16.msrb.mxu3 %v2823_v59  ;;  %v3287_v52 = vld [vmem:[#allocation5 + $0x3c] sm:$0xf0]  ;;  %v3281_v55 = vld [vmem:[#allocation5 + $0x14] sm:$0xf]  ;;  %v2524_v56 = vld [vmem:[#allocation5 + $0x40] sm:$0xf0]  ;;  %v2583_v58 = vor.u32 %v3294_v48, %v2580_v49 }
  0x6c   : > { %v2530_v57 = vld [vmem:[#allocation5 + $0x18] sm:$0xf]  ;;  %v3288_v59 = vld [vmem:[#allocation5 + $0x44] sm:$0xf0]  ;;  %v3282_v60 = vld [vmem:[#allocation5 + $0x1c] sm:$0xf]  ;;  %v2527_v5 = vor.u32 %v3281_v55, %v2524_v56 }
  0x6d   : > { %1052 = vmatpush.bf16.msrb.mxu0 %v2763_v1  ;;  %v2532_v61 = vld [vmem:[#allocation5 + $0x48] sm:$0xf0]  ;;  %v2874_v62 = vld [vmem:[#allocation5 + $0x2c0] sm:$0xf]  ;;  %v3373_v63 = vld [vmem:[#allocation5 + $0x2ec] sm:$0xf0]  ;;  %v2523_v1 = vor.u32 %v3287_v52, %v2522_v51  ;;  %v2531_v6 = vor.u32 %v3288_v59, %v2530_v57 }
  0x6e   : > { %1066 = vmatpush.bf16.msrb.mxu1 %v2767_v2  ;;  %v3367_v0 = vld [vmem:[#allocation5 + $0x2c4] sm:$0xf]  ;;  %v2876_v2 = vld [vmem:[#allocation5 + $0x2f0] sm:$0xf0]  ;;  %v3374_v4 = vld [vmem:[#allocation5 + $0x2f4] sm:$0xf0]  ;;  %v2535_v9 = vor.u32 %v3282_v60, %v2532_v61  ;;  %v2875_v10 = vor.u32 %v3373_v63, %v2874_v62 }
  0x6f   : > { %1080 = vmatpush.bf16.msrb.mxu2 %v2771_v3  ;;  %1094 = vmatpush.bf16.msrb.mxu3 %v2775_v7  ;;  %v2882_v3 = vld [vmem:[#allocation5 + $0x2c8] sm:$0xf]  ;;  %v3368_v7 = vld [vmem:[#allocation5 + $0x2cc] sm:$0xf]  ;;  %v2884_v8 = vld [vmem:[#allocation5 + $0x2f8] sm:$0xf0]  ;;  %v2879_v11 = vor.u32 %v3367_v0, %v2876_v2 }
  0x70   : > { %v2883_v12 = vor.u32 %v3374_v4, %v2882_v3  ;;  %v2887_v16 = vor.u32 %v3368_v7, %v2884_v8  ;;  %v2828_v17 = vld [vmem:[#allocation5 + $0x290] sm:$0xf0]  ;;  %v2834_v18 = vld [vmem:[#allocation5 + $0x268] sm:$0xf]  ;;  %v3356_v20 = vld [vmem:[#allocation5 + $0x26c] sm:$0xf] }
  0x71   : > { %1053 = vmatpush.bf16.msrb.mxu0 %v2715_v13  ;;  %v2826_v13 = vld [vmem:[#allocation5 + $0x260] sm:$0xf]  ;;  %v2836_v21 = vld [vmem:[#allocation5 + $0x298] sm:$0xf0]  ;;  %v2780_v28 = vld [vmem:[#allocation5 + $0x230] sm:$0xf0] }
  0x72   : > { %1067 = vmatpush.bf16.msrb.mxu1 %v2719_v14  ;;  %v3361_v14 = vld [vmem:[#allocation5 + $0x28c] sm:$0xf0]  ;;  %v2778_v23 = vld [vmem:[#allocation5 + $0x200] sm:$0xf]  ;;  %v2839_v29 = vor.u32 %v3356_v20, %v2836_v21  ;;  %v2786_v30 = vld [vmem:[#allocation5 + $0x208] sm:$0xf] }
  0x73   : > { %1081 = vmatpush.bf16.msrb.mxu2 %v2723_v15  ;;  %1095 = vmatpush.bf16.msrb.mxu3 %v2727_v19  ;;  %v3355_v15 = vld [vmem:[#allocation5 + $0x264] sm:$0xf]  ;;  %v3362_v19 = vld [vmem:[#allocation5 + $0x294] sm:$0xf0]  ;;  %v2827_v22 = vor.u32 %v3361_v14, %v2826_v13  ;;  %v3344_v32 = vld [vmem:[#allocation5 + $0x20c] sm:$0xf] }
  0x74   : > { %v2831_v24 = vor.u32 %v3355_v15, %v2828_v17  ;;  %v2788_v33 = vld [vmem:[#allocation5 + $0x238] sm:$0xf0]  ;;  %v2732_v42 = vld [vmem:[#allocation5 + $0x1d0] sm:$0xf0]  ;;  %v2738_v43 = vld [vmem:[#allocation5 + $0x1a8] sm:$0xf] }
  0x75   : > { %1054 = vmatpush.bf16.msrb.mxu0 %v2667_v25  ;;  %v2835_v25 = vor.u32 %v3362_v19, %v2834_v18  ;;  %v2791_v40 = vor.u32 %v3344_v32, %v2788_v33  ;;  %v3332_v45 = vld [vmem:[#allocation5 + $0x1ac] sm:$0xf]  ;;  %v2740_v46 = vld [vmem:[#allocation5 + $0x1d8] sm:$0xf0]  ;;  %v3325_v51 = vld [vmem:[#allocation5 + $0x16c] sm:$0xf0] }
  0x76   : > { %1068 = vmatpush.bf16.msrb.mxu1 %v2671_v26  ;;  %v3349_v26 = vld [vmem:[#allocation5 + $0x22c] sm:$0xf0]  ;;  %v3319_v52 = vld [vmem:[#allocation5 + $0x144] sm:$0xf]  ;;  %v2690_v55 = vld [vmem:[#allocation5 + $0x148] sm:$0xf] }
  0x77   : > { %1082 = vmatpush.bf16.msrb.mxu2 %v2675_v27  ;;  %1096 = vmatpush.bf16.msrb.mxu3 %v2679_v31  ;;  %v3343_v27 = vld [vmem:[#allocation5 + $0x204] sm:$0xf]  ;;  %v3350_v31 = vld [vmem:[#allocation5 + $0x234] sm:$0xf0]  ;;  %v2779_v34 = vor.u32 %v3349_v26, %v2778_v23  ;;  %v3320_v57 = vld [vmem:[#allocation5 + $0x14c] sm:$0xf] }
  0x78   : > { %v2783_v35 = vor.u32 %v3343_v27, %v2780_v28  ;;  %v2787_v36 = vor.u32 %v3350_v31, %v2786_v30  ;;  %v3326_v56 = vld [vmem:[#allocation5 + $0x174] sm:$0xf0]  ;;  %v2634_v62 = vld [vmem:[#allocation5 + $0xe0] sm:$0xf]  ;;  %v3313_v63 = vld [vmem:[#allocation5 + $0x10c] sm:$0xf0] }
  0x79   : > { %1055 = vmatpush.bf16.msrb.mxu0 %v2619_v37  ;;  %v2730_v37 = vld [vmem:[#allocation5 + $0x1a0] sm:$0xf]  ;;  %v2691_v61 = vor.u32 %v3326_v56, %v2690_v55  ;;  %v3307_v0 = vld [vmem:[#allocation5 + $0xe4] sm:$0xf]  ;;  %v2636_v2 = vld [vmem:[#allocation5 + $0x110] sm:$0xf0]  ;;  %v2635_v7 = vor.u32 %v3313_v63, %v2634_v62 }
  0x7a   : > { %1069 = vmatpush.bf16.msrb.mxu1 %v2623_v38  ;;  %v3337_v38 = vld [vmem:[#allocation5 + $0x1cc] sm:$0xf0]  ;;  %v2642_v3 = vld [vmem:[#allocation5 + $0xe8] sm:$0xf]  ;;  %v3314_v4 = vld [vmem:[#allocation5 + $0x114] sm:$0xf0]  ;;  %v2639_v8 = vor.u32 %v3307_v0, %v2636_v2 }
  0x7b   : > { %1083 = vmatpush.bf16.msrb.mxu2 %v2627_v39  ;;  %1097 = vmatpush.bf16.msrb.mxu3 %v2631_v44  ;;  %v3331_v39 = vld [vmem:[#allocation5 + $0x1a4] sm:$0xf]  ;;  %v3338_v44 = vld [vmem:[#allocation5 + $0x1d4] sm:$0xf0]  ;;  %v2731_v47 = vor.u32 %v3337_v38, %v2730_v37  ;;  %v2588_v14 = vld [vmem:[#allocation5 + $0xb0] sm:$0xf0] }
  0x7c   : > { %v2735_v48 = vor.u32 %v3331_v39, %v2732_v42  ;;  %v2739_v49 = vor.u32 %v3338_v44, %v2738_v43  ;;  %v2594_v15 = vld [vmem:[#allocation5 + $0x88] sm:$0xf]  ;;  %v3296_v17 = vld [vmem:[#allocation5 + $0x8c] sm:$0xf]  ;;  %v2596_v18 = vld [vmem:[#allocation5 + $0xb8] sm:$0xf0] }
  0x7d   : > { %1056 = vmatpush.bf16.msrb.mxu0 %v2571_v50  ;;  %v2682_v50 = vld [vmem:[#allocation5 + $0x140] sm:$0xf]  ;;  %v3289_v23 = vld [vmem:[#allocation5 + $0x4c] sm:$0xf0]  ;;  %v2540_v26 = vld [vmem:[#allocation5 + $0x50] sm:$0xf0] }
  0x7e   : > { %1070 = vmatpush.bf16.msrb.mxu1 %v2575_v53  ;;  %v2743_v53 = vor.u32 %v3332_v45, %v2740_v46  ;;  %v2683_v59 = vor.u32 %v3325_v51, %v2682_v50  ;;  %v2546_v27 = vld [vmem:[#allocation5 + $0x28] sm:$0xf]  ;;  %v3290_v28 = vld [vmem:[#allocation5 + $0x54] sm:$0xf0]  ;;  %v2548_v30 = vld [vmem:[#allocation5 + $0x58] sm:$0xf0] }
  0x7f   : > { %1084 = vmatpush.bf16.msrb.mxu2 %v2579_v54  ;;  %1098 = vmatpush.bf16.msrb.mxu3 %v2583_v58  ;;  %v2684_v54 = vld [vmem:[#allocation5 + $0x170] sm:$0xf0]  ;;  %v2692_v58 = vld [vmem:[#allocation5 + $0x178] sm:$0xf0]  ;;  %v2547_v33 = vor.u32 %v3290_v28, %v2546_v27  ;;  %v3398_v37 = vld [vmem:[#allocation10 + $0x38] sm:$0xff]  ;;  %s4115_s18 = scalar_lea.vmem [#allocation13], %s3471_s14 }
  0x80   : > { %v2687_v60 = vor.u32 %v3319_v52, %v2684_v54  ;;  %v3381_v38 = vld [vmem:[#allocation8 + $0x30] sm:$0xff]  ;;  %v3406_v39 = vld [vmem:[#allocation10 + $0x78] sm:$0xff]  ;;  %v3380_v43 = vld [vmem:[#allocation8 + $0x28] sm:$0xff]  ;;  %s3472_s19 = smul.u32 48, %s3938_s8  ;;  %s2358_s8 = sshll.u32 %s4115_s18, 4  ;;  %s2359_s8 = int_to_ptr.vmem [resolvable:$true] %s2358_s8 }
  0x81   : > { %1057 = vmatpush.bf16.msrb.mxu0 %v2523_v1  ;;  %v2695_v1 = vor.u32 %v3320_v57, %v2692_v58  ;;  %v3397_v42 = vld [vmem:[#allocation10 + $0x30] sm:$0xff]  ;;  %v3388_v45 = vld [vmem:[#allocation8 + $0x68] sm:$0xff]  ;;  %v3379_v46 = vld [vmem:[#allocation8 + $0x20] sm:$0xff]  ;;  %s2345_s17 = scalar_lea.sflag [#allocation4], %s4043_s16  ;;  %s3803_s10 = scalar_lea.hbm %s4169_s7, 96 }
  0x82   : > { %1071 = vmatpush.bf16.msrb.mxu1 %v2527_v5  ;;  %v3308_v5 = vld [vmem:[#allocation5 + $0xec] sm:$0xf]  ;;  %v3405_v44 = vld [vmem:[#allocation10 + $0x70] sm:$0xff]  ;;  %v3386_v50 = vld [vmem:[#allocation8 + $0x58] sm:$0xff]  ;;  %s2357_s21 = scalar_lea.hbm %s4169_s7, %s3472_s19 }
  0x83   : > { %1085 = vmatpush.bf16.msrb.mxu2 %v2531_v6  ;;  %1099 = vmatpush.bf16.msrb.mxu3 %v2535_v9  ;;  %v2644_v6 = vld [vmem:[#allocation5 + $0x118] sm:$0xf0]  ;;  %v2643_v9 = vor.u32 %v3314_v4, %v2642_v3  ;;  %v3395_v51 = vld [vmem:[#allocation10 + $0x20] sm:$0xff]  ;;  %v3394_v55 = vld [vmem:[#allocation10 + $0x18] sm:$0xff]  ;;  %s2360_s1 = sshll.u32 %s2357_s21, 4  ;;  %s2361_s1 = int_to_ptr.hbm [resolvable:$true] %s2360_s1 }
  0x84   : > { %1058 = vmatmul.bf16.vlgmr.msrb.gmra.mxu0 %v4066_v41  ;;  %v2647_v13 = vor.u32 %v3308_v5, %v2644_v6  ;;  %v3403_v52 = vld [vmem:[#allocation10 + $0x60] sm:$0xff]  ;;  %v3385_v54 = vld [vmem:[#allocation8 + $0x50] sm:$0xff]  ;;  %v3402_v56 = vld [vmem:[#allocation10 + $0x58] sm:$0xff]  ;;  %s3797_s9 = sshra.s32 %s2361_s1, 4  ;;  %s3798_s9 = int_to_ptr.hbm [resolvable:$true] %s3797_s9 }
  0x85   : > { %1106 = vmatpush.bf16.msra.mxu0 %v2875_v10  ;;  %1072 = vmatmul.bf16.vlgmr.msrb.gmra.mxu1 %v4066_v41  ;;  %v2586_v10 = vld [vmem:[#allocation5 + $0x80] sm:$0xf]  ;;  %v3376_v57 = vld [vmem:[#allocation8 + $0x8] sm:$0xff]  ;;  %v3383_v62 = vld [vmem:[#allocation8 + $0x40] sm:$0xff]  ;;  %s3799_s20 = scalar_lea.hbm %s3798_s9, 48  ;;  %p3804_p12 = scmp.lt.s32.totalorder %s3798_s9, %s4169_s7 }
  0x86   : > { %1120 = vmatpush.bf16.msra.mxu1 %v2879_v11  ;;  %1086 = vmatmul.bf16.vlgmr.msrb.gmra.mxu2 %v4066_v41  ;;  %v3301_v11 = vld [vmem:[#allocation5 + $0xac] sm:$0xf0]  ;;  %v3384_v58 = vld [vmem:[#allocation8 + $0x48] sm:$0xff]  ;;  %v3414_v63 = vld [vmem:[#allocation11 + $0x38] sm:$0xff]  ;;  %p3800_p1 = scmp.ne.s32.totalorder %s3798_s9, %s3799_s20  ;;  %p3805_p8 = scmp.lt.s32.totalorder %s3803_s10, %s3799_s20 }
  0x87   : > { %1134 = vmatpush.bf16.msra.mxu2 %v2883_v12  ;;  %1148 = vmatpush.bf16.msra.mxu3 %v2887_v16  ;;  %v3295_v12 = vld [vmem:[#allocation5 + $0x84] sm:$0xf]  ;;  %v3302_v16 = vld [vmem:[#allocation5 + $0xb4] sm:$0xf0]  ;;  %v2587_v19 = vor.u32 %v3301_v11, %v2586_v10  ;;  %v3413_v3 = vld [vmem:[#allocation11 + $0x30] sm:$0xff] }
  0x88   : > { %1100 = vmatmul.bf16.vlgmr.msrb.gmra.mxu3 %v4066_v41  ;;  %v2591_v20 = vor.u32 %v3295_v12, %v2588_v14  ;;  %v2595_v21 = vor.u32 %v3302_v16, %v2594_v15  ;;  %v3422_v0 = vld [vmem:[#allocation11 + $0x78] sm:$0xff]  ;;  %v3400_v2 = vld [vmem:[#allocation10 + $0x48] sm:$0xff]  ;;  %v3421_v4 = vld [vmem:[#allocation11 + $0x70] sm:$0xff]  ;;  %p3801_p3 = pnand %p3800_p1, %p4009_p13  ;;  %p3806_p7 = por %p3805_p8, %p3804_p12 }
  0x89   : > { %1107 = vmatpush.bf16.msra.mxu0 %v2827_v22  ;;  %v2538_v22 = vld [vmem:[#allocation5 + $0x20] sm:$0xf]  ;;  %v3391_v5 = vld [vmem:[#allocation10] sm:$0xff]  ;;  %v3420_v10 = vld [vmem:[#allocation11 + $0x68] sm:$0xff] }
  0x8a   : > { %1121 = vmatpush.bf16.msra.mxu1 %v2831_v24  ;;  %v3283_v24 = vld [vmem:[#allocation5 + $0x24] sm:$0xf]  ;;  %v2539_v31 = vor.u32 %v3289_v23, %v2538_v22  ;;  %v3399_v6 = vld [vmem:[#allocation10 + $0x40] sm:$0xff]  ;;  %v3429_v12 = vld [vmem:[#allocation11 + $0xb0] sm:$0xff]  ;;  %p3802_p5 = pneg %p3801_p3 }
  0x8b   : > { %1135 = vmatpush.bf16.msra.mxu2 %v2835_v25  ;;  %1149 = vmatpush.bf16.msra.mxu3 %v2839_v29  ;;  %v2599_v25 = vor.u32 %v3296_v17, %v2596_v18  ;;  %v3284_v29 = vld [vmem:[#allocation5 + $0x2c] sm:$0xf]  ;;  %v2543_v32 = vor.u32 %v3283_v24, %v2540_v26  ;;  %v4080_v11 = vld [vmem:[#allocation7] sm:$0xff]  ;;  %v3428_v18 = vld [vmem:[#allocation11 + $0xa8] sm:$0xff] }
  0x8c   : > { %v3411_v14 = vld [vmem:[#allocation11 + $0x20] sm:$0xff]  ;;  %v484_v16 = vperm.slane %v4080_v11, 0  ;;  %v485_v17 = vperm.slane %v4080_v11, 1  ;;  %v3410_v24 = vld [vmem:[#allocation11 + $0x18] sm:$0xff]  ;;  %v486_v28 = vperm.slane %v4080_v11, 2  ;;  %p3807_p9 = pnand %p3806_p7, %p3802_p5 }
  0x8d   : > { %1108 = vmatpush.bf16.msra.mxu0 %v2779_v34  ;;  %v2551_v34 = vor.u32 %v3284_v29, %v2548_v30  ;;  %v3419_v15 = vld [vmem:[#allocation11 + $0x60] sm:$0xff]  ;;  %v487_v29 = vperm.slane %v4080_v11, 3 }
  0x8e   : > { %1122 = vmatpush.bf16.msra.mxu1 %v2783_v35  ;;  %v3382_v35 = vld [vmem:[#allocation8 + $0x38] sm:$0xff]  ;;  %v3427_v26 = vld [vmem:[#allocation11 + $0xa0] sm:$0xff] }
  0x8f   : > { %1136 = vmatpush.bf16.msra.mxu2 %v2787_v36  ;;  %1150 = vmatpush.bf16.msra.mxu3 %v2791_v40  ;;  %v3390_v36 = vld [vmem:[#allocation8 + $0x78] sm:$0xff]  ;;  %v3389_v40 = vld [vmem:[#allocation8 + $0x70] sm:$0xff]  ;;  %v3435_v27 = vld [vmem:[#allocation11 + $0xe0] sm:$0xff] }
  0x91   : > { %1109 = vmatpush.bf16.msra.mxu0 %v2731_v47  ;;  %v3387_v47 = vld [vmem:[#allocation8 + $0x60] sm:$0xff] }
  0x92   : > { %1123 = vmatpush.bf16.msra.mxu1 %v2735_v48  ;;  %v3396_v48 = vld [vmem:[#allocation10 + $0x28] sm:$0xff] }
  0x93   : > { %1137 = vmatpush.bf16.msra.mxu2 %v2739_v49  ;;  %1151 = vmatpush.bf16.msra.mxu3 %v2743_v53  ;;  %v3404_v49 = vld [vmem:[#allocation10 + $0x68] sm:$0xff]  ;;  %v3377_v53 = vld [vmem:[#allocation8 + $0x10] sm:$0xff] }
  0x95   : > { %1110 = vmatpush.bf16.msra.mxu0 %v2683_v59  ;;  %v3393_v59 = vld [vmem:[#allocation10 + $0x10] sm:$0xff] }
  0x96   : > { %1124 = vmatpush.bf16.msra.mxu1 %v2687_v60  ;;  %v3401_v60 = vld [vmem:[#allocation10 + $0x50] sm:$0xff] }
  0x97   : > { %1138 = vmatpush.bf16.msra.mxu2 %v2691_v61  ;;  %1152 = vmatpush.bf16.msra.mxu3 %v2695_v1  ;;  %v3375_v61 = vld [vmem:[#allocation8] sm:$0xff]  ;;  %v3392_v1 = vld [vmem:[#allocation10 + $0x8] sm:$0xff] }
  0x99   : > { %1111 = vmatpush.bf16.msra.mxu0 %v2635_v7  ;;  %v3430_v7 = vld [vmem:[#allocation11 + $0xb8] sm:$0xff] }
  0x9a   : > { %1125 = vmatpush.bf16.msra.mxu1 %v2639_v8  ;;  %v3438_v8 = vld [vmem:[#allocation11 + $0xf8] sm:$0xff] }
  0x9b   : > { %1139 = vmatpush.bf16.msra.mxu2 %v2643_v9  ;;  %1153 = vmatpush.bf16.msra.mxu3 %v2647_v13  ;;  %v3412_v9 = vld [vmem:[#allocation11 + $0x28] sm:$0xff]  ;;  %v3437_v13 = vld [vmem:[#allocation11 + $0xf0] sm:$0xff] }
  0x9d   : > { %1112 = vmatpush.bf16.msra.mxu0 %v2587_v19  ;;  %v3436_v19 = vld [vmem:[#allocation11 + $0xe8] sm:$0xff] }
  0x9e   : > { %1126 = vmatpush.bf16.msra.mxu1 %v2591_v20 }
  0x9f   : > { %1140 = vmatpush.bf16.msra.mxu2 %v2595_v21  ;;  %1154 = vmatpush.bf16.msra.mxu3 %v2599_v25  ;;  %v3418_v25 = vld [vmem:[#allocation11 + $0x58] sm:$0xff] }
  0xa1   : > { %1113 = vmatpush.bf16.msra.mxu0 %v2539_v31 }
  0xa2   : > { %1127 = vmatpush.bf16.msra.mxu1 %v2543_v32  ;;  %v3409_v32 = vld [vmem:[#allocation11 + $0x10] sm:$0xff] }
  0xa3   : > { %1141 = vmatpush.bf16.msra.mxu2 %v2547_v33  ;;  %1155 = vmatpush.bf16.msra.mxu3 %v2551_v34  ;;  %v3417_v33 = vld [vmem:[#allocation11 + $0x50] sm:$0xff] }
  0xa4   : > { %1114 = vmatmul.bf16.vlgmr.msra.gmra.mxu0 %v4066_v41 }
  0xa5   : > { %1340 = vmatpush.bf16.msrb.mxu0 %v3382_v35  ;;  %1128 = vmatmul.bf16.vlgmr.msra.gmra.mxu1 %v4066_v41 }
  0xa6   : > { %1354 = vmatpush.bf16.msrb.mxu1 %v3390_v36  ;;  %1142 = vmatmul.bf16.vlgmr.msra.gmra.mxu2 %v4066_v41 }
  0xa7   : > { %1156 = vmatmul.bf16.vlgmr.msra.gmra.mxu3 %v4066_v41  ;;  %1556 = vmatpush.bf16.msrb.mxu2 %v3398_v37  ;;  %v3378_v41 = vld [vmem:[#allocation8 + $0x18] sm:$0xff] }
  0xa8   : > { %1570 = vmatpush.bf16.msrb.mxu3 %v3406_v39  ;;  %v3426_v37 = vld [vmem:[#allocation11 + $0x98] sm:$0xff] }
  0xa9   : > { %1341 = vmatpush.bf16.msrb.mxu0 %v3381_v38  ;;  %v3434_v38 = vld [vmem:[#allocation11 + $0xd8] sm:$0xff] }
  0xaa   : > { %1355 = vmatpush.bf16.msrb.mxu1 %v3389_v40 }
  0xab   : > { %1557 = vmatpush.bf16.msrb.mxu2 %v3397_v42 }
  0xac   : > { %1571 = vmatpush.bf16.msrb.mxu3 %v3405_v44 }
  0xad   : > { %1342 = vmatpush.bf16.msrb.mxu0 %v3380_v43 }
  0xae   : > { %1356 = vmatpush.bf16.msrb.mxu1 %v3388_v45 }
  0xaf   : > { %1558 = vmatpush.bf16.msrb.mxu2 %v3396_v48 }
  0xb0   : > { %1572 = vmatpush.bf16.msrb.mxu3 %v3404_v49 }
  0xb1   : > { %1343 = vmatpush.bf16.msrb.mxu0 %v3379_v46  ;;  %v3408_v46 = vld [vmem:[#allocation11 + $0x8] sm:$0xff] }
  0xb2   : > { %1357 = vmatpush.bf16.msrb.mxu1 %v3387_v47  ;;  %v3416_v47 = vld [vmem:[#allocation11 + $0x48] sm:$0xff] }
  0xb3   : > { %1559 = vmatpush.bf16.msrb.mxu2 %v3395_v51 }
  0xb4   : > { %1573 = vmatpush.bf16.msrb.mxu3 %v3403_v52 }
  0xb5   : > { %1344 = vmatpush.bf16.msrb.mxu0 %v3378_v41  ;;  %v3425_v41 = vld [vmem:[#allocation11 + $0x90] sm:$0xff] }
  0xb6   : > { %1358 = vmatpush.bf16.msrb.mxu1 %v3386_v50  ;;  %v3433_v50 = vld [vmem:[#allocation11 + $0xd0] sm:$0xff] }
  0xb7   : > { %1560 = vmatpush.bf16.msrb.mxu2 %v3394_v55 }
  0xb8   : > { %1574 = vmatpush.bf16.msrb.mxu3 %v3402_v56  ;;  %v3407_v56 = vld [vmem:[#allocation11] sm:$0xff] }
  0xb9   : > { %1345 = vmatpush.bf16.msrb.mxu0 %v3377_v53 }
  0xba   : > { %1359 = vmatpush.bf16.msrb.mxu1 %v3385_v54 }
  0xbb   : > { %1561 = vmatpush.bf16.msrb.mxu2 %v3393_v59 }
  0xbc   : > { %1575 = vmatpush.bf16.msrb.mxu3 %v3401_v60 }
  0xbd   : > { %1346 = vmatpush.bf16.msrb.mxu0 %v3376_v57  ;;  %v3415_v57 = vld [vmem:[#allocation11 + $0x40] sm:$0xff] }
  0xbe   : > { %1360 = vmatpush.bf16.msrb.mxu1 %v3384_v58 }
  0xbf   : > { %1562 = vmatpush.bf16.msrb.mxu2 %v3392_v1 }
  0xc0   : > { %1576 = vmatpush.bf16.msrb.mxu3 %v3400_v2 }
  0xc1   : > { %1347 = vmatpush.bf16.msrb.mxu0 %v3375_v61 }
  0xc2   : > { %1361 = vmatpush.bf16.msrb.mxu1 %v3383_v62 }
  0xc3   : > { %1563 = vmatpush.bf16.msrb.mxu2 %v3391_v5 }
  0xc4   : > { %1577 = vmatpush.bf16.msrb.mxu3 %v3399_v6 }
  0xc5   : > { %2186 = vmatpush.bf16.msra.mxu0 %v3414_v63  ;;  %v3424_v63 = vld [vmem:[#allocation11 + $0x88] sm:$0xff] }
  0xc6   : > { %2200 = vmatpush.bf16.msra.mxu1 %v3422_v0  ;;  %v3432_v0 = vld [vmem:[#allocation11 + $0xc8] sm:$0xff] }
  0xc7   : > { %2214 = vmatpush.bf16.msra.mxu2 %v3430_v7 }
  0xc8   : > { %2228 = vmatpush.bf16.msra.mxu3 %v3438_v8 }
  0xc9   : > { %2187 = vmatpush.bf16.msra.mxu0 %v3413_v3  ;;  %v3446_v3 = vld [vmem:[#allocation11 + $0x138] sm:$0xff] }
  0xca   : > { %2201 = vmatpush.bf16.msra.mxu1 %v3421_v4  ;;  %v3454_v4 = vld [vmem:[#allocation11 + $0x178] sm:$0xff] }
  0xcb   : > { %2215 = vmatpush.bf16.msra.mxu2 %v3429_v12 }
  0xcc   : > { %2229 = vmatpush.bf16.msra.mxu3 %v3437_v13 }
  0xcd   : > { %2188 = vmatpush.bf16.msra.mxu0 %v3412_v9  ;;  %v3423_v9 = vld [vmem:[#allocation11 + $0x80] sm:$0xff] }
  0xce   : > { %2202 = vmatpush.bf16.msra.mxu1 %v3420_v10  ;;  %v3431_v10 = vld [vmem:[#allocation11 + $0xc0] sm:$0xff] }
  0xcf   : > { %2216 = vmatpush.bf16.msra.mxu2 %v3428_v18 }
  0xd0   : > { %2230 = vmatpush.bf16.msra.mxu3 %v3436_v19  ;;  %v3462_v19 = vld [vmem:[#allocation11 + $0x1b8] sm:$0xff] }
  0xd1   : > { %2189 = vmatpush.bf16.msra.mxu0 %v3411_v14 }
  0xd2   : > { %2203 = vmatpush.bf16.msra.mxu1 %v3419_v15  ;;  %v3445_v15 = vld [vmem:[#allocation11 + $0x130] sm:$0xff] }
  0xd3   : > { %2217 = vmatpush.bf16.msra.mxu2 %v3427_v26  ;;  %v3469_v26 = vld [vmem:[#allocation11 + $0x1f0] sm:$0xff] }
  0xd4   : > { %2231 = vmatpush.bf16.msra.mxu3 %v3435_v27  ;;  %v488_v27 = vperm.slane %v4080_v11, 4 }
  0xd5   : > { %2190 = vmatpush.bf16.msra.mxu0 %v3410_v24  ;;  %v3452_v24 = vld [vmem:[#allocation11 + $0x168] sm:$0xff] }
  0xd6   : > { %2204 = vmatpush.bf16.msra.mxu1 %v3418_v25  ;;  %v3461_v25 = vld [vmem:[#allocation11 + $0x1b0] sm:$0xff] }
  0xd7   : > { %2218 = vmatpush.bf16.msra.mxu2 %v3426_v37  ;;  %v3442_v37 = vld [vmem:[#allocation11 + $0x118] sm:$0xff] }
  0xd8   : > { %2232 = vmatpush.bf16.msra.mxu3 %v3434_v38  ;;  %v3450_v38 = vld [vmem:[#allocation11 + $0x158] sm:$0xff] }
  0xd9   : > { %2191 = vmatpush.bf16.msra.mxu0 %v3409_v32 }
  0xda   : > { %2205 = vmatpush.bf16.msra.mxu1 %v3417_v33  ;;  %v3460_v33 = vld [vmem:[#allocation11 + $0x1a8] sm:$0xff] }
  0xdb   : > { %2219 = vmatpush.bf16.msra.mxu2 %v3425_v41 }
  0xdc   : > { %2233 = vmatpush.bf16.msra.mxu3 %v3433_v50 }
  0xdd   : > { %2192 = vmatpush.bf16.msra.mxu0 %v3408_v46 }
  0xde   : > { %2206 = vmatpush.bf16.msra.mxu1 %v3416_v47 }
  0xdf   : > { %2220 = vmatpush.bf16.msra.mxu2 %v3424_v63 }
  0xe0   : > { %2234 = vmatpush.bf16.msra.mxu3 %v3432_v0  ;;  %v3457_v0 = vld [vmem:[#allocation11 + $0x190] sm:$0xff] }
  0xe1   : > { %v1003_v20 = vpop.f32.mrf.mxu0  ;;  %2193 = vmatpush.bf16.msra.mxu0 %v3407_v56 }
  0xe2   : > { %v1017_v21 = vpop.f32.mrf.mxu1  ;;  %v1004_v22 = vadd.f32 %v1003_v20, %v484_v16  ;;  %2207 = vmatpush.bf16.msra.mxu1 %v3415_v57  ;;  %v3470_v20 = vld [vmem:[#allocation11 + $0x1f8] sm:$0xff]  ;;  %v3440_v57 = vld [vmem:[#allocation11 + $0x108] sm:$0xff] }
  0xe3   : > { %v1018_v23 = vadd.f32 %v1017_v21, %v485_v17  ;;  %2221 = vmatpush.bf16.msra.mxu2 %v3423_v9 }
  0xe4   : > { %v1162_v30 = vmax.f32 %v1004_v22, 0.0  ;;  %2235 = vmatpush.bf16.msra.mxu3 %v3431_v10 }
  0xe5   : > { %v1163_v31 = vmax.f32 %v1018_v23, 0.0  ;;  %v3444_v23 = vld [vmem:[#allocation11 + $0x128] sm:$0xff] }
  0xe7   : > { %v1186_v44 = vpack.c.bf16 %v1163_v31, %v1162_v30  ;;  %v3451_v30 = vld [vmem:[#allocation11 + $0x160] sm:$0xff] }
  0xe9   : > { %v1031_v34 = vpop.f32.mrf.mxu2  ;;  %v1005_v36 = vpop.f32.mrf.mxu0  ;;  %v1236_v53 = vunpack.c.l.b16 %v1186_v44  ;;  %v1237_v54 = vunpack.c.h.b16 %v1186_v44  ;;  %v3467_v44 = vld [vmem:[#allocation11 + $0x1e0] sm:$0xff] }
  0xea   : > { %v1032_v39 = vadd.f32 %v1031_v34, %v486_v28  ;;  %v1006_v42 = vadd.f32 %v1005_v36, %v484_v16  ;;  %v1019_v43 = vpop.f32.mrf.mxu1  ;;  %v3453_v16 = vld [vmem:[#allocation11 + $0x170] sm:$0xff]  ;;  %v3468_v34 = vld [vmem:[#allocation11 + $0x1e8] sm:$0xff] }
  0xeb   : > { %v1045_v35 = vpop.f32.mrf.mxu3  ;;  %v1020_v45 = vadd.f32 %v1019_v43, %v485_v17  ;;  %v3459_v43 = vld [vmem:[#allocation11 + $0x1a0] sm:$0xff] }
  0xec   : > { %v1046_v40 = vadd.f32 %v1045_v35, %v487_v29  ;;  %v1174_v48 = vmax.f32 %v1006_v42, 0.0  ;;  %v1164_v51 = vmax.f32 %v1032_v39, 0.0  ;;  %v490_v39 = vperm.slane %v4080_v11, 6 }
  0xed   : > { %v1175_v49 = vmax.f32 %v1020_v45, 0.0 }
  0xee   : > { %v1165_v52 = vmax.f32 %v1046_v40, 0.0  ;;  %v491_v40 = vperm.slane %v4080_v11, 7 }
  0xef   : > { %v1192_v55 = vpack.c.bf16 %v1175_v49, %v1174_v48  ;;  %v3441_v48 = vld [vmem:[#allocation11 + $0x110] sm:$0xff] }
  0xf0   : > { %v1187_v1 = vpack.c.bf16 %v1165_v52, %v1164_v51  ;;  %v3449_v49 = vld [vmem:[#allocation11 + $0x150] sm:$0xff] }
  0xf1   : > { %v1033_v58 = vpop.f32.mrf.mxu2  ;;  %v1238_v59 = vunpack.c.l.b16 %v1192_v55  ;;  %v1239_v60 = vunpack.c.h.b16 %v1192_v55 }
  0xf2   : > { %v1034_v61 = vadd.f32 %v1033_v58, %v486_v28  ;;  %v1452_v12 = vunpack.c.l.b16 %v1187_v1  ;;  %v1453_v13 = vunpack.c.h.b16 %v1187_v1  ;;  %v489_v28 = vperm.slane %v4080_v11, 5  ;;  %v3458_v11 = vld [vmem:[#allocation11 + $0x198] sm:$0xff]  ;;  %v3448_v58 = vld [vmem:[#allocation11 + $0x148] sm:$0xff]  ;;  %v3465_v1 = vld [vmem:[#allocation11 + $0x1d0] sm:$0xff] }
  0xf3   : > { %v1047_v62 = vpop.f32.mrf.mxu3  ;;  %v1240_v5 = vpack.c.b16 %v1238_v59, %v1236_v53  ;;  %v1241_v6 = vpack.c.b16 %v1239_v60, %v1237_v54  ;;  %v3466_v54 = vld [vmem:[#allocation11 + $0x1d8] sm:$0xff] }
  0xf4   : > { %v1048_v2 = vadd.f32 %v1047_v62, %v487_v29  ;;  %v1176_v7 = vmax.f32 %v1034_v61, 0.0  ;;  %v3443_v29 = vld [vmem:[#allocation11 + $0x120] sm:$0xff] }
  0xf5   : > { %1348 = vmatmul.bf16.vlgmr.msrb.gmra.mxu0 %v1240_v5  ;;  %1362 = vmatmul.bf16.vlgmr.msrb.gmra.mxu1 %v1241_v6 }
  0xf6   : > { %v1177_v8 = vmax.f32 %v1048_v2, 0.0  ;;  %2242 = vmatpush.bf16.msrb.mxu0 %v3446_v3  ;;  %2256 = vmatpush.bf16.msrb.mxu1 %v3454_v4 }
  0xf8   : > { %v1193_v14 = vpack.c.bf16 %v1177_v8, %v1176_v7  ;;  %v3439_v7 = vld [vmem:[#allocation11 + $0x100] sm:$0xff] }
  0xf9   : > { %v3447_v8 = vld [vmem:[#allocation11 + $0x140] sm:$0xff] }
  0xfa   : > { %v1454_v17 = vunpack.c.l.b16 %v1193_v14  ;;  %v1455_v18 = vunpack.c.h.b16 %v1193_v14  ;;  %2243 = vmatpush.bf16.msrb.mxu0 %v3445_v15  ;;  %2257 = vmatpush.bf16.msrb.mxu1 %v3453_v16  ;;  %v3456_v16 = vld [vmem:[#allocation11 + $0x188] sm:$0xff] }
  0xfc   : > { %v1456_v21 = vpack.c.b16 %v1454_v17, %v1452_v12  ;;  %v1457_v22 = vpack.c.b16 %v1455_v18, %v1453_v13  ;;  %v3464_v17 = vld [vmem:[#allocation11 + $0x1c8] sm:$0xff] }
  0xfe   : > { %1564 = vmatmul.bf16.vlgmr.msrb.gmra.mxu2 %v1456_v21  ;;  %1578 = vmatmul.bf16.vlgmr.msrb.gmra.mxu3 %v1457_v22 }
  0xff   : > { %2270 = vmatpush.bf16.msrb.mxu2 %v3462_v19  ;;  %2284 = vmatpush.bf16.msrb.mxu3 %v3470_v20 }
 0x100   : > { %2244 = vmatpush.bf16.msrb.mxu0 %v3444_v23  ;;  %2258 = vmatpush.bf16.msrb.mxu1 %v3452_v24 }
 0x101   : > { %v1059_v31 = vpop.f32.mrf.mxu0 }
 0x102   : > { %v1073_v32 = vpop.f32.mrf.mxu1  ;;  %v1060_v35 = vadd.f32 %v1059_v31, %v488_v27 }
 0x103   : > { %2271 = vmatpush.bf16.msrb.mxu2 %v3461_v25  ;;  %2285 = vmatpush.bf16.msrb.mxu3 %v3469_v26  ;;  %v1074_v36 = vadd.f32 %v1073_v32, %v489_v28  ;;  %v3455_v25 = vld [vmem:[#allocation11 + $0x180] sm:$0xff] }
 0x104   : > { %2245 = vmatpush.bf16.msrb.mxu0 %v3443_v29  ;;  %2259 = vmatpush.bf16.msrb.mxu1 %v3451_v30  ;;  %v1166_v45 = vmax.f32 %v1060_v35, 0.0  ;;  %v3463_v26 = vld [vmem:[#allocation11 + $0x1c0] sm:$0xff]  ;;  %v481_v29 = vld [vmem:[#allocation7 + $0x8] sm:$0xf] }
 0x105   : > { %v1167_v46 = vmax.f32 %v1074_v36, 0.0  ;;  %v492_v30 = vperm.slane %v481_v29, 0  ;;  %v493_v31 = vperm.slane %v481_v29, 1 }
 0x107   : > { %2272 = vmatpush.bf16.msrb.mxu2 %v3460_v33  ;;  %2286 = vmatpush.bf16.msrb.mxu3 %v3468_v34  ;;  %v1188_v55 = vpack.c.bf16 %v1167_v46, %v1166_v45 }
 0x108   : > { %2246 = vmatpush.bf16.msrb.mxu0 %v3442_v37  ;;  %2260 = vmatpush.bf16.msrb.mxu1 %v3450_v38  ;;  %v494_v38 = vperm.slane %v481_v29, 2 }
 0x109   : > { %v1087_v42 = vpop.f32.mrf.mxu2  ;;  %v1061_v51 = vpop.f32.mrf.mxu0  ;;  %v1770_v2 = vunpack.c.l.b16 %v1188_v55  ;;  %v1771_v3 = vunpack.c.h.b16 %v1188_v55 }
 0x10a   : > { %v1088_v41 = vadd.f32 %v1087_v42, %v490_v39  ;;  %v1062_v52 = vadd.f32 %v1061_v51, %v488_v27  ;;  %v1075_v53 = vpop.f32.mrf.mxu1 }
 0x10b   : > { %v1101_v47 = vpop.f32.mrf.mxu3  ;;  %2273 = vmatpush.bf16.msrb.mxu2 %v3459_v43  ;;  %2287 = vmatpush.bf16.msrb.mxu3 %v3467_v44  ;;  %v1076_v56 = vadd.f32 %v1075_v53, %v489_v28 }
 0x10c   : > { %v1102_v50 = vadd.f32 %v1101_v47, %v491_v40  ;;  %2247 = vmatpush.bf16.msrb.mxu0 %v3441_v48  ;;  %2261 = vmatpush.bf16.msrb.mxu1 %v3449_v49  ;;  %v1168_v59 = vmax.f32 %v1088_v41, 0.0  ;;  %v1178_v61 = vmax.f32 %v1062_v52, 0.0 }
 0x10d   : > { %v1179_v62 = vmax.f32 %v1076_v56, 0.0 }
 0x10e   : > { %v1169_v60 = vmax.f32 %v1102_v50, 0.0 }
 0x10f   : > { %2274 = vmatpush.bf16.msrb.mxu2 %v3458_v11  ;;  %2288 = vmatpush.bf16.msrb.mxu3 %v3466_v54  ;;  %v1194_v4 = vpack.c.bf16 %v1179_v62, %v1178_v61 }
 0x110   : > { %2248 = vmatpush.bf16.msrb.mxu0 %v3440_v57  ;;  %2262 = vmatpush.bf16.msrb.mxu1 %v3448_v58  ;;  %v1189_v9 = vpack.c.bf16 %v1169_v60, %v1168_v59 }
 0x111   : > { %v1089_v63 = vpop.f32.mrf.mxu2  ;;  %v1778_v12 = vunpack.c.l.b16 %v1194_v4  ;;  %v1779_v13 = vunpack.c.h.b16 %v1194_v4 }
 0x112   : > { %v1090_v5 = vadd.f32 %v1089_v63, %v490_v39  ;;  %v1772_v20 = vunpack.c.l.b16 %v1189_v9  ;;  %v1773_v21 = vunpack.c.h.b16 %v1189_v9  ;;  %v3576_v9 = vld [vmem:[%s4168_s6] ss:$0 sm:$0xff] }
 0x113   : > { %v1103_v6 = vpop.f32.mrf.mxu3  ;;  %2275 = vmatpush.bf16.msrb.mxu2 %v3457_v0  ;;  %2289 = vmatpush.bf16.msrb.mxu3 %v3465_v1  ;;  %v1786_v18 = vpack.c.b16 %v1778_v12, %v1770_v2  ;;  %v1787_v19 = vpack.c.b16 %v1779_v13, %v1771_v3 }
 0x114   : > { %v1104_v10 = vadd.f32 %v1103_v6, %v491_v40  ;;  %v1180_v14 = vmax.f32 %v1090_v5, 0.0  ;;  %2249 = vmatpush.bf16.msrb.mxu0 %v3439_v7  ;;  %2263 = vmatpush.bf16.msrb.mxu1 %v3447_v8  ;;  %v495_v40 = vperm.slane %v481_v29, 3  ;;  %v3578_v29 = vld [vmem:[%s4168_s6 + $0x2] ss:$0 sm:$0xff] }
 0x115   : > { %2194 = vmatmul.bf16.vlgmr.msra.gmra.mxu0 %v1786_v18  ;;  %2208 = vmatmul.bf16.vlgmr.msra.gmra.mxu1 %v1787_v19  ;;  %v3577_v18 = vld [vmem:[%s4168_s6 + $0x1] ss:$0 sm:$0xff] }
 0x116   : > { %v1181_v15 = vmax.f32 %v1104_v10, 0.0 }
 0x117   : > { %2276 = vmatpush.bf16.msrb.mxu2 %v3456_v16  ;;  %2290 = vmatpush.bf16.msrb.mxu3 %v3464_v17 }
 0x118   : > { %v1195_v22 = vpack.c.bf16 %v1181_v15, %v1180_v14 }
 0x11a   : > { %v1780_v23 = vunpack.c.l.b16 %v1195_v22  ;;  %v1781_v24 = vunpack.c.h.b16 %v1195_v22 }
 0x11b   : > { %2277 = vmatpush.bf16.msrb.mxu2 %v3455_v25  ;;  %2291 = vmatpush.bf16.msrb.mxu3 %v3463_v26 }
 0x11c   : > { %v1788_v27 = vpack.c.b16 %v1780_v23, %v1772_v20  ;;  %v1789_v28 = vpack.c.b16 %v1781_v24, %v1773_v21 }
 0x11e   : > { %2222 = vmatmul.bf16.vlgmr.msra.gmra.mxu2 %v1788_v27  ;;  %2236 = vmatmul.bf16.vlgmr.msra.gmra.mxu3 %v1789_v28 }
 0x121   : > { %v1115_v32 = vpop.f32.mrf.mxu0 }
 0x122   : > { %v1129_v33 = vpop.f32.mrf.mxu1  ;;  %v1116_v34 = vadd.f32 %v1115_v32, %v492_v30 }
 0x123   : > { %v1130_v35 = vadd.f32 %v1129_v33, %v493_v31 }
 0x124   : > { %v1170_v36 = vmax.f32 %v1116_v34, 0.0 }
 0x125   : > { %v1171_v37 = vmax.f32 %v1130_v35, 0.0 }
 0x127   : > { %v1190_v46 = vpack.c.bf16 %v1171_v37, %v1170_v36 }
 0x129   : > { %v1143_v39 = vpop.f32.mrf.mxu2  ;;  %v1117_v43 = vpop.f32.mrf.mxu0  ;;  %v1774_v51 = vunpack.c.l.b16 %v1190_v46  ;;  %v1775_v52 = vunpack.c.h.b16 %v1190_v46 }
 0x12a   : > { %v1157_v42 = vpop.f32.mrf.mxu3  ;;  %v1118_v44 = vadd.f32 %v1117_v43, %v492_v30  ;;  %v1131_v45 = vpop.f32.mrf.mxu1  ;;  %v1144_v48 = vadd.f32 %v1143_v39, %v494_v38 }
 0x12b   : > { %v1132_v47 = vadd.f32 %v1131_v45, %v493_v31  ;;  %v1158_v49 = vadd.f32 %v1157_v42, %v495_v40 }
 0x12c   : > { %v1182_v41 = vmax.f32 %v1118_v44, 0.0  ;;  %v1172_v11 = vmax.f32 %v1144_v48, 0.0 }
 0x12d   : > { %v1183_v50 = vmax.f32 %v1132_v47, 0.0  ;;  %v1173_v54 = vmax.f32 %v1158_v49, 0.0 }
 0x12f   : > { %v1196_v53 = vpack.c.bf16 %v1183_v50, %v1182_v41  ;;  %v1191_v0 = vpack.c.bf16 %v1173_v54, %v1172_v11 }
 0x131   : > { %v1145_v55 = vpop.f32.mrf.mxu2  ;;  %v1782_v56 = vunpack.c.l.b16 %v1196_v53  ;;  %v1783_v57 = vunpack.c.h.b16 %v1196_v53  ;;  %v1776_v3 = vunpack.c.l.b16 %v1191_v0  ;;  %v1777_v4 = vunpack.c.h.b16 %v1191_v0 }
 0x132   : > { %v1146_v58 = vadd.f32 %v1145_v55, %v494_v38  ;;  %v1159_v59 = vpop.f32.mrf.mxu3 }
 0x133   : > { %v1160_v60 = vadd.f32 %v1159_v59, %v495_v40  ;;  %v1790_v61 = vpack.c.b16 %v1782_v56, %v1774_v51  ;;  %v1791_v62 = vpack.c.b16 %v1783_v57, %v1775_v52 }
 0x134   : > { %v1184_v63 = vmax.f32 %v1146_v58, 0.0 }
 0x135   : > { %v1185_v1 = vmax.f32 %v1160_v60, 0.0  ;;  %2250 = vmatmul.bf16.vlgmr.msrb.gmra.mxu0 %v1790_v61  ;;  %2264 = vmatmul.bf16.vlgmr.msrb.gmra.mxu1 %v1791_v62 }
 0x137   : > { %v1197_v2 = vpack.c.bf16 %v1185_v1, %v1184_v63 }
 0x139   : > { %v1784_v5 = vunpack.c.l.b16 %v1197_v2  ;;  %v1785_v6 = vunpack.c.h.b16 %v1197_v2 }
 0x13b   : > { %v1792_v7 = vpack.c.b16 %v1784_v5, %v1776_v3  ;;  %v1793_v8 = vpack.c.b16 %v1785_v6, %v1777_v4 }
 0x13d   : > { %2278 = vmatmul.bf16.vlgmr.msrb.gmra.mxu2 %v1792_v7  ;;  %2292 = vmatmul.bf16.vlgmr.msrb.gmra.mxu3 %v1793_v8 }
 0x172   : > { %v1349_v10 = vpop.f32.mrf.mxu0  ;;  %v1363_v12 = vpop.f32.mrf.mxu1 }
 0x173   : > { %v1350_v13 = vadd.f32 %v3576_v9, %v1349_v10 }
 0x175   : > { %v1364_v14 = vadd.f32 %v1363_v12, %v1350_v13 }
 0x177   : > { %1368 = vmax.xlane.f32.xlu0 %v1364_v14 }
 0x17a   : > { %v1351_v15 = vpop.f32.mrf.mxu0  ;;  %v1365_v16 = vpop.f32.mrf.mxu1 }
 0x17b   : > { %v1352_v17 = vadd.f32 %v3576_v9, %v1351_v15 }
 0x17d   : > { %v1366_v19 = vadd.f32 %v1365_v16, %v1352_v17 }
 0x17f   : > { %1370 = vmax.xlane.f32.xlu0 %v1366_v19 }
 0x181   : > { %v1565_v20 = vpop.f32.mrf.mxu2  ;;  %v1579_v21 = vpop.f32.mrf.mxu3 }
 0x182   : > { %v1566_v22 = vadd.f32 %v3577_v18, %v1565_v20 }
 0x184   : > { %v1580_v23 = vadd.f32 %v1579_v21, %v1566_v22 }
 0x186   : > { %1584 = vmax.xlane.f32.xlu1 %v1580_v23 }
 0x189   : > { %v1567_v24 = vpop.f32.mrf.mxu2  ;;  %v1581_v25 = vpop.f32.mrf.mxu3 }
 0x18a   : > { %v1568_v26 = vadd.f32 %v3577_v18, %v1567_v24 }
 0x18c   : > { %v1582_v27 = vadd.f32 %v1581_v25, %v1568_v26 }
 0x18e   : > { %1586 = vmax.xlane.f32.xlu1 %v1582_v27 }
 0x192   : > { %v2195_v28 = vpop.f32.mrf.mxu0  ;;  %v2209_v30 = vpop.f32.mrf.mxu1 }
 0x193   : > { %v2196_v31 = vadd.f32 %v3578_v29, %v2195_v28 }
 0x195   : > { %v2210_v35 = vadd.f32 %v2209_v30, %v2196_v31 }
 0x19a   : > { %v2197_v32 = vpop.f32.mrf.mxu0  ;;  %v2211_v36 = vpop.f32.mrf.mxu1 }
 0x19b   : > { %v2198_v39 = vadd.f32 %v3578_v29, %v2197_v32 }
 0x19d   : > { %v2212_v44 = vadd.f32 %v2211_v36, %v2198_v39 }
 0x1a1   : > { %v2223_v33 = vpop.f32.mrf.mxu2  ;;  %v2237_v34 = vpop.f32.mrf.mxu3 }
 0x1a2   : > { %v2224_v37 = vadd.f32 %v2223_v33, %v2210_v35 }
 0x1a4   : > { %v2238_v43 = vadd.f32 %v2237_v34, %v2224_v37 }
 0x1a9   : > { %v2225_v40 = vpop.f32.mrf.mxu2  ;;  %v2239_v42 = vpop.f32.mrf.mxu3 }
 0x1aa   : > { %v2226_v47 = vadd.f32 %v2225_v40, %v2212_v44 }
 0x1ac   : > { %v2240_v51 = vadd.f32 %v2239_v42, %v2226_v47 }
 0x1b2   : > { %v2251_v38 = vpop.f32.mrf.mxu0  ;;  %v2265_v46 = vpop.f32.mrf.mxu1 }
 0x1b3   : > { %v2252_v45 = vadd.f32 %v2251_v38, %v2238_v43 }
 0x1b5   : > { %v2266_v48 = vadd.f32 %v2265_v46, %v2252_v45 }
 0x1ba   : > { %v2253_v49 = vpop.f32.mrf.mxu0  ;;  %v2267_v54 = vpop.f32.mrf.mxu1 }
 0x1bb   : > { %v2254_v53 = vadd.f32 %v2253_v49, %v2240_v51 }
 0x1bd   : > { %v2268_v55 = vadd.f32 %v2267_v54, %v2254_v53 }
 0x1c0   : > { %v2279_v41 = vpop.f32.mrf.mxu2  ;;  %v2293_v50 = vpop.f32.mrf.mxu3 }
 0x1c1   : > { %v2280_v52 = vadd.f32 %v2279_v41, %v2266_v48 }
 0x1c3   : > { %v2294_v11 = vadd.f32 %v2293_v50, %v2280_v52 }
 0x1c5   : > { %2298 = vmax.xlane.f32.xlu2 %v2294_v11 }
 0x1c8   : > { %v2281_v56 = vpop.f32.mrf.mxu2  ;;  %v2295_v58 = vpop.f32.mrf.mxu3 }
 0x1c9   : > { %v2282_v57 = vadd.f32 %v2281_v56, %v2268_v55 }
 0x1cb   : > { %v2296_v59 = vadd.f32 %v2295_v58, %v2282_v57 }
 0x1cd   : > { %2300 = vmax.xlane.f32.xlu2 %v2296_v59 }
 0x1ea   : > { %v1369_v60 = vpop.xlane.xlu0 %1368 }
 0x1eb   : > { %v1372_v61 = vsub.f32 %v1364_v14, %v1369_v60 }
 0x1ed   : > { %v1374_v62 = vmul.f32 1.442695, %v1372_v61 }
 0x1ef   : > { %3579 = vpow2.f32 %v1374_v62 }
 0x1f2   : > { %v1371_v63 = vpop.xlane.xlu0 %1370 }
 0x1f3   : > { %v1373_v0 = vsub.f32 %v1366_v19, %v1371_v63 }
 0x1f5   : > { %v3580_v1 = vpop.eup %3579  ;;  %v1376_v2 = vmul.f32 1.442695, %v1373_v0 }
 0x1f6   : > { %1378 = vadd.xlane.f32.xlu0 %v3580_v1 }
 0x1f7   : > { %3581 = vpow2.f32 %v1376_v2 }
 0x1f9   : > { %v1585_v3 = vpop.xlane.xlu1 %1584 }
 0x1fa   : > { %v1588_v4 = vsub.f32 %v1580_v23, %v1585_v3 }
 0x1fc   : > { %v1590_v5 = vmul.f32 1.442695, %v1588_v4 }
 0x1fd   : > { %v4099_v6 = vpop.eup %3581 }
 0x1fe   : > { %3583 = vpow2.f32 %v1590_v5  ;;  %1380 = vadd.xlane.f32.xlu1 %v4099_v6 }
 0x201   : > { %v1587_v7 = vpop.xlane.xlu1 %1586 }
 0x202   : > { %v1589_v8 = vsub.f32 %v1582_v27, %v1587_v7 }
 0x204   : > { %v4102_v9 = vpop.eup %3583  ;;  %v1592_v10 = vmul.f32 1.442695, %v1589_v8 }
 0x205   : > { %1594 = vadd.xlane.f32.xlu2 %v4102_v9 }
 0x206   : > { %3585 = vpow2.f32 %v1592_v10 }
 0x20c   : > { %v4105_v12 = vpop.eup %3585 }
 0x20d   : > { %1596 = vadd.xlane.f32.xlu0 %v4105_v12 }
 0x238   : > { %v2299_v13 = vpop.xlane.xlu2 %2298 }
 0x239   : > { %v2302_v14 = vsub.f32 %v2294_v11, %v2299_v13 }
 0x23b   : > { %v2304_v15 = vmul.f32 1.442695, %v2302_v14 }
 0x23d   : > { %3587 = vpow2.f32 %v2304_v15 }
 0x240   : > { %v2301_v16 = vpop.xlane.xlu2 %2300 }
 0x241   : > { %v2303_v17 = vsub.f32 %v2296_v59, %v2301_v16 }
 0x243   : > { %v4108_v18 = vpop.eup %3587  ;;  %v2306_v19 = vmul.f32 1.442695, %v2303_v17 }
 0x244   : > { %2308 = vadd.xlane.f32.xlu1 %v4108_v18 }
 0x245   : > { %3589 = vpow2.f32 %v2306_v19 }
 0x24b   : > { %v4111_v20 = vpop.eup %3589 }
 0x24c   : > { %2310 = vadd.xlane.f32.xlu2 %v4111_v20 }
 0x269   : > { %v1379_v21 = vpop.xlane.xlu0 %1378 }
 0x26a   : > { %3591 = vrcp.f32 %v1379_v21  ;;  %v1393_v26 = vand.u32 2147483648, %v1379_v21  ;;  %v1391_v28 = vand.u32 2147483647, %v1379_v21  ;;  %vm1387_vm1 = vweird.f32 %v1379_v21 }
 0x26c   : > { %v1394_v32 = vor.u32 1.1754944e-38, %v1393_v26  ;;  %vm1392_vm3 = vcmp.eq.f32.partialorder %v1391_v28, 8.507059e+37 }
 0x270   : > { %v3592_v22 = vpop.eup %3591 }
 0x271   : > { %v1383_v23 = vmul.f32 %v3592_v22, %v1379_v21  ;;  %v1381_v24 = vpop.xlane.xlu1 %1380  ;;  %vm1388_vm0 = vweird.f32 %v3592_v22 }
 0x272   : > { %3593 = vrcp.f32 %v1381_v24  ;;  %vm1389_vm2 = vmor %vm1387_vm1, %vm1388_vm0  ;;  %v1408_v38 = vand.u32 2147483648, %v1381_v24  ;;  %v1406_v42 = vand.u32 2147483647, %v1381_v24  ;;  %vm1402_vm5 = vweird.f32 %v1381_v24 }
 0x273   : > { %v1384_v25 = vsub.f32 1.0, %v1383_v23 }
 0x274   : > { %v1409_v46 = vor.u32 1.1754944e-38, %v1408_v38  ;;  %vm1407_vm7 = vcmp.eq.f32.partialorder %v1406_v42, 8.507059e+37 }
 0x275   : > { %v1385_v27 = vmul.f32 %v3592_v22, %v1384_v25 }
 0x277   : > { %v1386_v30 = vadd.f32 %v3592_v22, %v1385_v27 }
 0x278   : > { %v1595_v29 = vpop.xlane.xlu2 %1594  ;;  %v3594_v31 = vpop.eup %3593 }
 0x279   : > { %3595 = vrcp.f32 %v1595_v29  ;;  %v1390_v33 = vsel %vm1389_vm2, %v3592_v22, %v1386_v30  ;;  %v1398_v34 = vmul.f32 %v3594_v31, %v1381_v24  ;;  %vm1403_vm4 = vweird.f32 %v3594_v31 }
 0x27a   : > { %v1395_v35 = vsel %vm1392_vm3, %v1394_v32, %v1390_v33  ;;  %vm1404_vm6 = vmor %vm1402_vm5, %vm1403_vm4  ;;  %v1609_v49 = vand.u32 2147483648, %v1595_v29  ;;  %v1607_v51 = vand.u32 2147483647, %v1595_v29  ;;  %vm1603_vm9 = vweird.f32 %v1595_v29 }
 0x27b   : > { %v1396_v36 = vmul.f32 %v3580_v1, %v1395_v35  ;;  %v1399_v37 = vsub.f32 1.0, %v1398_v34 }
 0x27c   : > { %v1610_v54 = vor.u32 1.1754944e-38, %v1609_v49  ;;  %vm1608_vm11 = vcmp.eq.f32.partialorder %v1607_v51, 8.507059e+37 }
 0x27d   : > { %1412 = vst [vmem:[%s4115_s18] sm:$0xff] %v1396_v36  ;;  %v1400_v40 = vmul.f32 %v3594_v31, %v1399_v37 }
 0x27f   : > { %v3596_v39 = vpop.eup %3595  ;;  %v1401_v45 = vadd.f32 %v3594_v31, %v1400_v40 }
 0x280   : > { %v1599_v43 = vmul.f32 %v3596_v39, %v1595_v29  ;;  %v1597_v44 = vpop.xlane.xlu0 %1596  ;;  %vm1604_vm8 = vweird.f32 %v3596_v39 }
 0x281   : > { %3597 = vrcp.f32 %v1597_v44  ;;  %v1405_v48 = vsel %vm1404_vm6, %v3594_v31, %v1401_v45  ;;  %vm1605_vm10 = vmor %vm1603_vm9, %vm1604_vm8  ;;  %v1624_v60 = vand.u32 2147483648, %v1597_v44  ;;  %v1622_v62 = vand.u32 2147483647, %v1597_v44 }
 0x282   : > { %v1600_v47 = vsub.f32 1.0, %v1599_v43  ;;  %v1410_v41 = vsel %vm1407_vm7, %v1409_v46, %v1405_v48  ;;  %vm1618_vm13 = vweird.f32 %v1597_v44 }
 0x283   : > { %v1411_v52 = vmul.f32 %v4099_v6, %v1410_v41  ;;  %v1625_v0 = vor.u32 1.1754944e-38, %v1624_v60  ;;  %vm1623_vm15 = vcmp.eq.f32.partialorder %v1622_v62, 8.507059e+37 }
 0x284   : > { %v1601_v50 = vmul.f32 %v3596_v39, %v1600_v47 }
 0x285   : > { %1413 = vst [vmem:[%s4115_s18 + $0x18] sm:$0xff] %v1411_v52 }
 0x286   : > { %v1602_v53 = vadd.f32 %v3596_v39, %v1601_v50 }
 0x287   : > { %v3598_v11 = vpop.eup %3597 }
 0x288   : > { %v1606_v55 = vsel %vm1605_vm10, %v3596_v39, %v1602_v53  ;;  %v1614_v56 = vmul.f32 %v3598_v11, %v1597_v44  ;;  %vm1619_vm12 = vweird.f32 %v3598_v11 }
 0x289   : > { %v1611_v57 = vsel %vm1608_vm11, %v1610_v54, %v1606_v55  ;;  %vm1620_vm14 = vmor %vm1618_vm13, %vm1619_vm12 }
 0x28a   : > { %v1612_v58 = vmul.f32 %v4102_v9, %v1611_v57  ;;  %v1615_v59 = vsub.f32 1.0, %v1614_v56 }
 0x28c   : > { %1628 = vst [vmem:[%s4115_s18 + $0x8] sm:$0xff] %v1612_v58  ;;  %v1616_v61 = vmul.f32 %v3598_v11, %v1615_v59 }
 0x28e   : > { %v1617_v63 = vadd.f32 %v3598_v11, %v1616_v61 }
 0x290   : > { %v1621_v1 = vsel %vm1620_vm14, %v3598_v11, %v1617_v63 }
 0x291   : > { %v1626_v2 = vsel %vm1623_vm15, %v1625_v0, %v1621_v1 }
 0x292   : > { %v1627_v3 = vmul.f32 %v4105_v12, %v1626_v2 }
 0x294   : > { %1629 = vst [vmem:[%s4115_s18 + $0x20] sm:$0xff] %v1627_v3 }
 0x2b7   : > { %v2309_v4 = vpop.xlane.xlu1 %2308 }
 0x2b8   : > { %3599 = vrcp.f32 %v2309_v4  ;;  %v2323_v9 = vand.u32 2147483648, %v2309_v4  ;;  %v2321_v13 = vand.u32 2147483647, %v2309_v4  ;;  %vm2317_vm1 = vweird.f32 %v2309_v4 }
 0x2ba   : > { %v2324_v16 = vor.u32 1.1754944e-38, %v2323_v9  ;;  %vm2322_vm3 = vcmp.eq.f32.partialorder %v2321_v13, 8.507059e+37 }
 0x2be   : > { %v3600_v5 = vpop.eup %3599 }
 0x2bf   : > { %v2313_v6 = vmul.f32 %v3600_v5, %v2309_v4  ;;  %v2311_v7 = vpop.xlane.xlu2 %2310  ;;  %vm2318_vm0 = vweird.f32 %v3600_v5 }
 0x2c0   : > { %3601 = vrcp.f32 %v2311_v7  ;;  %vm2319_vm2 = vmor %vm2317_vm1, %vm2318_vm0  ;;  %v2338_v23 = vand.u32 2147483648, %v2311_v7  ;;  %v2336_v25 = vand.u32 2147483647, %v2311_v7  ;;  %vm2332_vm5 = vweird.f32 %v2311_v7 }
 0x2c1   : > { %v2314_v8 = vsub.f32 1.0, %v2313_v6 }
 0x2c2   : > { %v2339_v27 = vor.u32 1.1754944e-38, %v2338_v23  ;;  %vm2337_vm7 = vcmp.eq.f32.partialorder %v2336_v25, 8.507059e+37 }
 0x2c3   : > { %v2315_v10 = vmul.f32 %v3600_v5, %v2314_v8 }
 0x2c5   : > { %v2316_v14 = vadd.f32 %v3600_v5, %v2315_v10 }
 0x2c6   : > { %v3602_v15 = vpop.eup %3601 }
 0x2c7   : > { %v2320_v12 = vsel %vm2319_vm2, %v3600_v5, %v2316_v14  ;;  %v2328_v17 = vmul.f32 %v3602_v15, %v2311_v7  ;;  %vm2333_vm4 = vweird.f32 %v3602_v15 }
 0x2c8   : > { %v2325_v19 = vsel %vm2322_vm3, %v2324_v16, %v2320_v12  ;;  %vm2334_vm6 = vmor %vm2332_vm5, %vm2333_vm4 }
 0x2c9   : > { %v2326_v21 = vmul.f32 %v4108_v18, %v2325_v19  ;;  %v2329_v22 = vsub.f32 1.0, %v2328_v17 }
 0x2cb   : > { %2342 = vst [vmem:[%s4115_s18 + $0x10] sm:$0xff] %v2326_v21  ;;  %v2330_v24 = vmul.f32 %v3602_v15, %v2329_v22 }
 0x2cd   : > { %v2331_v26 = vadd.f32 %v3602_v15, %v2330_v24 }
 0x2cf   : > { %v2335_v18 = vsel %vm2334_vm6, %v3602_v15, %v2331_v26 }
 0x2d0   : > { %v2340_v28 = vsel %vm2337_vm7, %v2339_v27, %v2335_v18 }
 0x2d1   : > { %v2341_v29 = vmul.f32 %v4111_v20, %v2340_v28 }
 0x2d3   : > { %2343 = vst [vmem:[%s4115_s18 + $0x28] sm:$0xff] %v2341_v29 }
 0x2d4   : > { %3810 = shalt.err (!%p3807_p9)
}
 0x2d5   : > { %s3872_s16 = smov 384   ;;  %s3873_s18 = smov 24  }
 0x2d6   : > { %3495 = dma.vmem_to_hbm [thread:$0]  (%p4009_p13), %s2359_s8, 768, %s2361_s1, %s2345_s17, %s3872_s16, %s3872_s16, %s3873_s18  }
 0x2d7 PF: > { %s2375_s19 = sand.u32 1, %s3849_s24   ;;  %p4182_p10 = scmp.ge.s32.totalorder %s3861_s27, 2 }
 0x2d8   : > { %s2376_s12 = scalar_lea.sflag [#allocation4], %s2375_s19 }
 0x2d9   : > { %p3518_p11 = pnand %p4182_p10, %p4014_p4 }
 0x2db   : > { %p3519_p0 = pneg %p3518_p11 }
 0x2dd   : > { %3844 = dma.done.wait (%p3519_p0), %s2376_s12, 768  }
 0x2de   : > { %3846 = vsyncadd (%p3519_p0), %s2376_s12, 4294966528  ;;  %p23_p2 = scmp.ge.s32.totalorder %s3989_s28, 4   ;;  %s4183_s24 = smov %s3853_s25 }
 0x2df   : > { %s4184_s25 = smov %s3857_s26  ;;  %s4185_s26 = smov %s4001_s30 }
 0x2e0   : > { %s4186_s27 = smov %s3989_s28  ;;  %25 = sbr.rel (!%p23_p2) target bundleno = 10 (0xa), region = 113 }
 0x2e5   :  { %2382 = vsyncpa [#allocation3], 1 }
 0x2e6   :  { %2384 = vsyncpa [#allocation3 + $0x1], 1 }
 0x2e7   :  { %2385 = vsyncpa [#allocation6], 1 }
 0x2e8   :  { %2386 = vsyncpa [#allocation9], 1 }
 0x2e9   :  { %2387 = vsyncpa [#allocation12], 1 }
 0x2ea   :  { %2388 = vsyncpa [#allocation4], 1 }
 0x2eb   :  { %2390 = vsyncpa [#allocation4 + $0x1], 1 }

</bundles_post_ra>
